<compile_context>
chip_gen: v7x
topology: tpu7x:2x2x1
jax: 0.10.0
libtpu: 0.0.40
codegen_flags: <defaults>
</compile_context>

<pallas_src>
import functools

import numpy as np

import jax
import jax.numpy as jnp
from jax.experimental import pallas as pl
from jax.experimental.pallas import tpu as pltpu

C_IN = 3
C_OUT = 2
K = 3
NEG_SLOPE = 1.5236924
ROWS = C_OUT * C_IN  # sublane-fused (co, ci) rows


def _build_edge_masks(D, H, W):
    """(27, D*H*W) float32; mask[tap, f] = 1 iff that tap's shifted read is in-bounds."""
    d = np.arange(D)[:, None, None]
    h = np.arange(H)[None, :, None]
    w = np.arange(W)[None, None, :]
    rows = []
    for dd in (-1, 0, 1):
        for dh in (-1, 0, 1):
            for dw in (-1, 0, 1):
                m = ((d + dd >= 0) & (d + dd < D)
                     & (h + dh >= 0) & (h + dh < H)
                     & (w + dw >= 0) & (w + dw < W))
                rows.append(m.reshape(-1))
    return jnp.asarray(np.stack(rows).astype(np.float32))


def conv3d_lrelu_kernel(b_ref, wm_ref, x_ref, o_ref, xe_ref,
                        *, D, H, W, OFF, XEW, NB):
    # b_ref  : SMEM (C_OUT,)                 f32  bias
    # wm_ref : VMEM (27, ROWS, DHW)          f32  weight * edge-mask table (pre-broadcast)
    # x_ref  : VMEM (NB, C_IN, DHW)          f32  NB batch elements, spatially flattened
    # o_ref  : VMEM (NB, C_OUT, DHW)         f32
    # xe_ref : VMEM (NB, ROWS, XEW)          f32  zero-halo scratch, channels duplicated per co
    DHW = D * H * W

    # In-kernel zero padding: zero the two halo strips once, copy payloads in between.
    xe_ref[:, :, :OFF] = jnp.zeros((NB, ROWS, OFF), jnp.float32)
    xe_ref[:, :, OFF + DHW:] = jnp.zeros((NB, ROWS, XEW - OFF - DHW), jnp.float32)
    for n in range(NB):
        xn = x_ref[n]                                   # (C_IN, DHW)
        xe_ref[n, 0:C_IN, OFF:OFF + DHW] = xn           # rows for co=0
        xe_ref[n, C_IN:ROWS, OFF:OFF + DHW] = xn        # rows for co=1

    accs = [jnp.zeros((ROWS, DHW), jnp.float32) for _ in range(NB)]

    tap = 0
    for dd in (-1, 0, 1):
        for dh in (-1, 0, 1):
            for dw in (-1, 0, 1):
                s = dd * H * W + dh * W + dw
                wmt = wm_ref[tap]                       # (ROWS, DHW), loaded once per tap
                for n in range(NB):
                    win = xe_ref[n, :, OFF + s:OFF + s + DHW]   # (ROWS, DHW) shifted window
                    accs[n] = accs[n] + wmt * win       # one sublane-packed FMA per (tap, n)
                tap += 1

    # Reduce the ci rows within each co, add bias, activate, single (C_OUT, DHW) store.
    for n in range(NB):
        acc = accs[n]
        rows = []
        for co in range(C_OUT):
            r = acc[co * C_IN:co * C_IN + 1, :]
            for ci in range(1, C_IN):
                r = r + acc[co * C_IN + ci:co * C_IN + ci + 1, :]
            rows.append(r + b_ref[co])
        res = jnp.concatenate(rows, axis=0)             # (C_OUT, DHW)
        o_ref[n] = jnp.where(res > 0, res, res * NEG_SLOPE)


def conv3d_leaky(x, w, b, *, batch_block=None):
    N, Cin, D, H, W = x.shape
    assert Cin == C_IN and w.shape == (C_OUT, C_IN, K, K, K) and b.shape == (C_OUT,)
    DHW = D * H * W

    # Fold the whole (small) batch into one grid step on single-TC parts; pass
    # batch_block=1 on v7x to keep a batch grid axis for the two TensorCores.
    NB = batch_block if batch_block is not None else (N if N <= 8 else 1)
    assert N % NB == 0, "batch_block must divide N"
    num_steps = N // NB

    # Flat, lane-dense views (contiguous reshapes: no data movement).
    x_flat = x.reshape(N, C_IN, DHW).astype(jnp.float32)
    b = b.astype(jnp.float32)

    # wm[tap, co*C_IN+ci, f] = w[co, ci, tap] * edge_mask[tap, f]
    masks = _build_edge_masks(D, H, W)                                     # (27, DHW)
    w_cols = jnp.transpose(
        w.astype(jnp.float32).reshape(C_OUT, C_IN, K * K * K), (2, 0, 1)
    ).reshape(K * K * K, ROWS)                                             # (27, ROWS)
    wm = w_cols[:, :, None] * masks[:, None, :]                            # (27, ROWS, DHW)

    s_max = H * W + W + 1                         # largest |flat stencil shift|
    OFF = -(-s_max // 128) * 128                  # 128-aligned left halo >= s_max
    XEW = -(-(OFF + DHW + s_max) // 128) * 128    # scratch row length

    wm_spec_kwargs = {}
    if num_steps > 1:
        # Constant-index block: never double-buffer the largest VMEM tenant.
        wm_spec_kwargs["pipeline_mode"] = pl.Buffered(1)
    wm_spec = pl.BlockSpec((K * K * K, ROWS, DHW), lambda g: (0, 0, 0), **wm_spec_kwargs)

    kernel = functools.partial(conv3d_lrelu_kernel, D=D, H=H, W=W,
                               OFF=OFF, XEW=XEW, NB=NB)
    out = pl.pallas_call(
        kernel,
        out_shape=jax.ShapeDtypeStruct((N, C_OUT, DHW), jnp.float32),
        grid=(num_steps,),
        in_specs=[
            pl.BlockSpec(memory_space=pltpu.MemorySpace.SMEM),             # bias (scalars)
            wm_spec,                                                       # weight*mask table
            pl.BlockSpec((NB, C_IN, DHW), lambda g: (g, 0, 0)),            # input, unpadded
        ],
        out_specs=pl.BlockSpec((NB, C_OUT, DHW), lambda g: (g, 0, 0)),
        scratch_shapes=[pltpu.VMEM((NB, ROWS, XEW), jnp.float32)],
        compiler_params=pltpu.CompilerParams(
            dimension_semantics=("parallel",),
        ),
    )(b, wm, x_flat)
    return out.reshape(N, C_OUT, D, H, W)


if __name__ == "__main__":
    key = jax.random.PRNGKey(0)
    kx, kw, kb = jax.random.split(key, 3)

    # Small NCDHW input consistent with Conv3d(3, 2, 3, padding=1)
    N, D, H, W = 2, 8, 8, 8
    x = jax.random.normal(kx, (N, C_IN, D, H, W), jnp.float32)

    # Deterministic PyTorch-style uniform(-1/sqrt(fan_in), +1/sqrt(fan_in)) init
    fan_in = C_IN * K * K * K
    bound = 1.0 / (fan_in ** 0.5)
    w = jax.random.uniform(kw, (C_OUT, C_IN, K, K, K), jnp.float32, -bound, bound)
    b = jax.random.uniform(kb, (C_OUT,), jnp.float32, -bound, bound)

    out = jax.block_until_ready(conv3d_leaky(x, w, b))

    # Reference: XLA conv (full f32 precision) + same where() post-op.
    ref = jax.lax.conv_general_dilated(
        x, w, window_strides=(1, 1, 1),
        padding=((1, 1), (1, 1), (1, 1)),
        dimension_numbers=("NCDHW", "OIDHW", "NCDHW"),
        precision=jax.lax.Precision.HIGHEST,
    ) + b.reshape(1, C_OUT, 1, 1, 1)
    ref = jnp.where(ref > 0, ref, ref * NEG_SLOPE)

    assert out.shape == (N, C_OUT, D, H, W)
    assert jnp.allclose(out, ref, atol=1e-4, rtol=1e-4)
    print("KERNEL_OK")
</pallas_src>

<mosaic_0001>
module attributes {stable_mosaic.version = 11 : i64} {
  func.func @conv3d_lrelu_kernel(%arg0: i32, %arg1: memref<2xf32, #tpu.memory_space<smem>>, %arg2: memref<27x6x512xf32, #tpu.memory_space<vmem>>, %arg3: memref<2x3x512xf32, #tpu.memory_space<vmem>>, %arg4: memref<2x2x512xf32, #tpu.memory_space<vmem>>, %arg5: memref<2x6x768xf32, #tpu.memory_space<vmem>>) attributes {dimension_semantics = [#tpu.dimension_semantics<parallel>], iteration_bounds = array<i64: 1>, scalar_prefetch = 0 : i64, scratch_operands = 1 : i64, tpu.core_type = #tpu.core_type<tc>, window_params = [{transform_indices = @transform_0, window_bounds = array<i64: 2>}, {pipeline_mode = #tpu.pipeline_mode<synchronous>, transform_indices = @transform_1, window_bounds = array<i64: 27, 6, 512>}, {transform_indices = @transform_2, window_bounds = array<i64: 2, 3, 512>}, {transform_indices = @transform_3, window_bounds = array<i64: 2, 2, 512>}]} {
    %cst = arith.constant 0.000000e+00 : f32
    %0 = vector.broadcast %cst : f32 to vector<2x6x128xf32>
    %c0 = arith.constant 0 : index
    %c0_0 = arith.constant 0 : index
    %c0_1 = arith.constant 0 : index
    %1 = vector.load %arg5[%c0, %c0_0, %c0_1] : memref<2x6x768xf32, #tpu.memory_space<vmem>>, vector<2x6x128xf32>
    tpu.vector_store %arg5[%c0, %c0_0, %c0_1], %0 {strides = array<i32>} : memref<2x6x768xf32, #tpu.memory_space<vmem>>, vector<2x6x128xf32>,
    %cst_2 = arith.constant 0.000000e+00 : f32
    %2 = vector.broadcast %cst_2 : f32 to vector<2x6x128xf32>
    %c0_3 = arith.constant 0 : index
    %c0_4 = arith.constant 0 : index
    %c640 = arith.constant 640 : index
    %3 = vector.load %arg5[%c0_3, %c0_4, %c640] : memref<2x6x768xf32, #tpu.memory_space<vmem>>, vector<2x6x128xf32>
    tpu.vector_store %arg5[%c0_3, %c0_4, %c640], %2 {strides = array<i32>} : memref<2x6x768xf32, #tpu.memory_space<vmem>>, vector<2x6x128xf32>,
    %c0_5 = arith.constant 0 : index
    %c0_6 = arith.constant 0 : index
    %c0_7 = arith.constant 0 : index
    %4 = vector.load %arg3[%c0_5, %c0_6, %c0_7] : memref<2x3x512xf32, #tpu.memory_space<vmem>>, vector<1x3x512xf32>
    %5 = vector.shape_cast %4 : vector<1x3x512xf32> to vector<3x512xf32>
    %c0_8 = arith.constant 0 : index
    %c0_9 = arith.constant 0 : index
    %c128 = arith.constant 128 : index
    %6 = vector.load %arg5[%c0_8, %c0_9, %c128] : memref<2x6x768xf32, #tpu.memory_space<vmem>>, vector<1x3x512xf32>
    %7 = vector.shape_cast %6 : vector<1x3x512xf32> to vector<3x512xf32>
    %8 = vector.shape_cast %5 : vector<3x512xf32> to vector<1x3x512xf32>
    tpu.vector_store %arg5[%c0_8, %c0_9, %c128], %8 {strides = array<i32>} : memref<2x6x768xf32, #tpu.memory_space<vmem>>, vector<1x3x512xf32>,
    %c0_10 = arith.constant 0 : index
    %c3 = arith.constant 3 : index
    %c128_11 = arith.constant 128 : index
    %9 = vector.load %arg5[%c0_10, %c3, %c128_11] : memref<2x6x768xf32, #tpu.memory_space<vmem>>, vector<1x3x512xf32>
    %10 = vector.shape_cast %9 : vector<1x3x512xf32> to vector<3x512xf32>
    %11 = vector.shape_cast %5 : vector<3x512xf32> to vector<1x3x512xf32>
    tpu.vector_store %arg5[%c0_10, %c3, %c128_11], %11 {strides = array<i32>} : memref<2x6x768xf32, #tpu.memory_space<vmem>>, vector<1x3x512xf32>,
    %c1 = arith.constant 1 : index
    %c0_12 = arith.constant 0 : index
    %c0_13 = arith.constant 0 : index
    %12 = vector.load %arg3[%c1, %c0_12, %c0_13] : memref<2x3x512xf32, #tpu.memory_space<vmem>>, vector<1x3x512xf32>
    %13 = vector.shape_cast %12 : vector<1x3x512xf32> to vector<3x512xf32>
    %c1_14 = arith.constant 1 : index
    %c0_15 = arith.constant 0 : index
    %c128_16 = arith.constant 128 : index
    %14 = vector.load %arg5[%c1_14, %c0_15, %c128_16] : memref<2x6x768xf32, #tpu.memory_space<vmem>>, vector<1x3x512xf32>
    %15 = vector.shape_cast %14 : vector<1x3x512xf32> to vector<3x512xf32>
    %16 = vector.shape_cast %13 : vector<3x512xf32> to vector<1x3x512xf32>
    tpu.vector_store %arg5[%c1_14, %c0_15, %c128_16], %16 {strides = array<i32>} : memref<2x6x768xf32, #tpu.memory_space<vmem>>, vector<1x3x512xf32>,
    %c1_17 = arith.constant 1 : index
    %c3_18 = arith.constant 3 : index
    %c128_19 = arith.constant 128 : index
    %17 = vector.load %arg5[%c1_17, %c3_18, %c128_19] : memref<2x6x768xf32, #tpu.memory_space<vmem>>, vector<1x3x512xf32>
    %18 = vector.shape_cast %17 : vector<1x3x512xf32> to vector<3x512xf32>
    %19 = vector.shape_cast %13 : vector<3x512xf32> to vector<1x3x512xf32>
    tpu.vector_store %arg5[%c1_17, %c3_18, %c128_19], %19 {strides = array<i32>} : memref<2x6x768xf32, #tpu.memory_space<vmem>>, vector<1x3x512xf32>,
    %cst_20 = arith.constant 0.000000e+00 : f32
    %20 = vector.broadcast %cst_20 : f32 to vector<6x512xf32>
    %cst_21 = arith.constant 0.000000e+00 : f32
    %21 = vector.broadcast %cst_21 : f32 to vector<6x512xf32>
    %c0_22 = arith.constant 0 : index
    %c0_23 = arith.constant 0 : index
    %c0_24 = arith.constant 0 : index
    %22 = vector.load %arg2[%c0_22, %c0_23, %c0_24] : memref<27x6x512xf32, #tpu.memory_space<vmem>>, vector<1x6x512xf32>
    %23 = vector.shape_cast %22 : vector<1x6x512xf32> to vector<6x512xf32>
    %c0_25 = arith.constant 0 : index
    %c0_26 = arith.constant 0 : index
    %c55 = arith.constant 55 : index
    %24 = vector.load %arg5[%c0_25, %c0_26, %c55] : memref<2x6x768xf32, #tpu.memory_space<vmem>>, vector<1x6x512xf32>
    %25 = vector.shape_cast %24 : vector<1x6x512xf32> to vector<6x512xf32>
    %26 = arith.mulf %23, %25 : vector<6x512xf32>
    %27 = arith.addf %20, %26 : vector<6x512xf32>
    %c1_27 = arith.constant 1 : index
    %c0_28 = arith.constant 0 : index
    %c55_29 = arith.constant 55 : index
    %28 = vector.load %arg5[%c1_27, %c0_28, %c55_29] : memref<2x6x768xf32, #tpu.memory_space<vmem>>, vector<1x6x512xf32>
    %29 = vector.shape_cast %28 : vector<1x6x512xf32> to vector<6x512xf32>
    %30 = arith.mulf %23, %29 : vector<6x512xf32>
    %31 = arith.addf %21, %30 : vector<6x512xf32>
    %c1_30 = arith.constant 1 : index
    %c0_31 = arith.constant 0 : index
    %c0_32 = arith.constant 0 : index
    %32 = vector.load %arg2[%c1_30, %c0_31, %c0_32] : memref<27x6x512xf32, #tpu.memory_space<vmem>>, vector<1x6x512xf32>
    %33 = vector.shape_cast %32 : vector<1x6x512xf32> to vector<6x512xf32>
    %c0_33 = arith.constant 0 : index
    %c0_34 = arith.constant 0 : index
    %c56 = arith.constant 56 : index
    %34 = vector.load %arg5[%c0_33, %c0_34, %c56] : memref<2x6x768xf32, #tpu.memory_space<vmem>>, vector<1x6x512xf32>
    %35 = vector.shape_cast %34 : vector<1x6x512xf32> to vector<6x512xf32>
    %36 = arith.mulf %33, %35 : vector<6x512xf32>
    %37 = arith.addf %27, %36 : vector<6x512xf32>
    %c1_35 = arith.constant 1 : index
    %c0_36 = arith.constant 0 : index
    %c56_37 = arith.constant 56 : index
    %38 = vector.load %arg5[%c1_35, %c0_36, %c56_37] : memref<2x6x768xf32, #tpu.memory_space<vmem>>, vector<1x6x512xf32>
    %39 = vector.shape_cast %38 : vector<1x6x512xf32> to vector<6x512xf32>
    %40 = arith.mulf %33, %39 : vector<6x512xf32>
    %41 = arith.addf %31, %40 : vector<6x512xf32>
    %c2 = arith.constant 2 : index
    %c0_38 = arith.constant 0 : index
    %c0_39 = arith.constant 0 : index
    %42 = vector.load %arg2[%c2, %c0_38, %c0_39] : memref<27x6x512xf32, #tpu.memory_space<vmem>>, vector<1x6x512xf32>
    %43 = vector.shape_cast %42 : vector<1x6x512xf32> to vector<6x512xf32>
    %c0_40 = arith.constant 0 : index
    %c0_41 = arith.constant 0 : index
    %c57 = arith.constant 57 : index
    %44 = vector.load %arg5[%c0_40, %c0_41, %c57] : memref<2x6x768xf32, #tpu.memory_space<vmem>>, vector<1x6x512xf32>
    %45 = vector.shape_cast %44 : vector<1x6x512xf32> to vector<6x512xf32>
    %46 = arith.mulf %43, %45 : vector<6x512xf32>
    %47 = arith.addf %37, %46 : vector<6x512xf32>
    %c1_42 = arith.constant 1 : index
    %c0_43 = arith.constant 0 : index
    %c57_44 = arith.constant 57 : index
    %48 = vector.load %arg5[%c1_42, %c0_43, %c57_44] : memref<2x6x768xf32, #tpu.memory_space<vmem>>, vector<1x6x512xf32>
    %49 = vector.shape_cast %48 : vector<1x6x512xf32> to vector<6x512xf32>
    %50 = arith.mulf %43, %49 : vector<6x512xf32>
    %51 = arith.addf %41, %50 : vector<6x512xf32>
    %c3_45 = arith.constant 3 : index
    %c0_46 = arith.constant 0 : index
    %c0_47 = arith.constant 0 : index
    %52 = vector.load %arg2[%c3_45, %c0_46, %c0_47] : memref<27x6x512xf32, #tpu.memory_space<vmem>>, vector<1x6x512xf32>
    %53 = vector.shape_cast %52 : vector<1x6x512xf32> to vector<6x512xf32>
    %c0_48 = arith.constant 0 : index
    %c0_49 = arith.constant 0 : index
    %c63 = arith.constant 63 : index
    %54 = vector.load %arg5[%c0_48, %c0_49, %c63] : memref<2x6x768xf32, #tpu.memory_space<vmem>>, vector<1x6x512xf32>
    %55 = vector.shape_cast %54 : vector<1x6x512xf32> to vector<6x512xf32>
    %56 = arith.mulf %53, %55 : vector<6x512xf32>
    %57 = arith.addf %47, %56 : vector<6x512xf32>
    %c1_50 = arith.constant 1 : index
    %c0_51 = arith.constant 0 : index
    %c63_52 = arith.constant 63 : index
    %58 = vector.load %arg5[%c1_50, %c0_51, %c63_52] : memref<2x6x768xf32, #tpu.memory_space<vmem>>, vector<1x6x512xf32>
    %59 = vector.shape_cast %58 : vector<1x6x512xf32> to vector<6x512xf32>
    %60 = arith.mulf %53, %59 : vector<6x512xf32>
    %61 = arith.addf %51, %60 : vector<6x512xf32>
    %c4 = arith.constant 4 : index
    %c0_53 = arith.constant 0 : index
    %c0_54 = arith.constant 0 : index
    %62 = vector.load %arg2[%c4, %c0_53, %c0_54] : memref<27x6x512xf32, #tpu.memory_space<vmem>>, vector<1x6x512xf32>
    %63 = vector.shape_cast %62 : vector<1x6x512xf32> to vector<6x512xf32>
    %c0_55 = arith.constant 0 : index
    %c0_56 = arith.constant 0 : index
    %c64 = arith.constant 64 : index
    %64 = vector.load %arg5[%c0_55, %c0_56, %c64] : memref<2x6x768xf32, #tpu.memory_space<vmem>>, vector<1x6x512xf32>
    %65 = vector.shape_cast %64 : vector<1x6x512xf32> to vector<6x512xf32>
    %66 = arith.mulf %63, %65 : vector<6x512xf32>
    %67 = arith.addf %57, %66 : vector<6x512xf32>
    %c1_57 = arith.constant 1 : index
    %c0_58 = arith.constant 0 : index
    %c64_59 = arith.constant 64 : index
    %68 = vector.load %arg5[%c1_57, %c0_58, %c64_59] : memref<2x6x768xf32, #tpu.memory_space<vmem>>, vector<1x6x512xf32>
    %69 = vector.shape_cast %68 : vector<1x6x512xf32> to vector<6x512xf32>
    %70 = arith.mulf %63, %69 : vector<6x512xf32>
    %71 = arith.addf %61, %70 : vector<6x512xf32>
    %c5 = arith.constant 5 : index
    %c0_60 = arith.constant 0 : index
    %c0_61 = arith.constant 0 : index
    %72 = vector.load %arg2[%c5, %c0_60, %c0_61] : memref<27x6x512xf32, #tpu.memory_space<vmem>>, vector<1x6x512xf32>
    %73 = vector.shape_cast %72 : vector<1x6x512xf32> to vector<6x512xf32>
    %c0_62 = arith.constant 0 : index
    %c0_63 = arith.constant 0 : index
    %c65 = arith.constant 65 : index
    %74 = vector.load %arg5[%c0_62, %c0_63, %c65] : memref<2x6x768xf32, #tpu.memory_space<vmem>>, vector<1x6x512xf32>
    %75 = vector.shape_cast %74 : vector<1x6x512xf32> to vector<6x512xf32>
    %76 = arith.mulf %73, %75 : vector<6x512xf32>
    %77 = arith.addf %67, %76 : vector<6x512xf32>
    %c1_64 = arith.constant 1 : index
    %c0_65 = arith.constant 0 : index
    %c65_66 = arith.constant 65 : index
    %78 = vector.load %arg5[%c1_64, %c0_65, %c65_66] : memref<2x6x768xf32, #tpu.memory_space<vmem>>, vector<1x6x512xf32>
    %79 = vector.shape_cast %78 : vector<1x6x512xf32> to vector<6x512xf32>
    %80 = arith.mulf %73, %79 : vector<6x512xf32>
    %81 = arith.addf %71, %80 : vector<6x512xf32>
    %c6 = arith.constant 6 : index
    %c0_67 = arith.constant 0 : index
    %c0_68 = arith.constant 0 : index
    %82 = vector.load %arg2[%c6, %c0_67, %c0_68] : memref<27x6x512xf32, #tpu.memory_space<vmem>>, vector<1x6x512xf32>
    %83 = vector.shape_cast %82 : vector<1x6x512xf32> to vector<6x512xf32>
    %c0_69 = arith.constant 0 : index
    %c0_70 = arith.constant 0 : index
    %c71 = arith.constant 71 : index
    %84 = vector.load %arg5[%c0_69, %c0_70, %c71] : memref<2x6x768xf32, #tpu.memory_space<vmem>>, vector<1x6x512xf32>
    %85 = vector.shape_cast %84 : vector<1x6x512xf32> to vector<6x512xf32>
    %86 = arith.mulf %83, %85 : vector<6x512xf32>
    %87 = arith.addf %77, %86 : vector<6x512xf32>
    %c1_71 = arith.constant 1 : index
    %c0_72 = arith.constant 0 : index
    %c71_73 = arith.constant 71 : index
    %88 = vector.load %arg5[%c1_71, %c0_72, %c71_73] : memref<2x6x768xf32, #tpu.memory_space<vmem>>, vector<1x6x512xf32>
    %89 = vector.shape_cast %88 : vector<1x6x512xf32> to vector<6x512xf32>
    %90 = arith.mulf %83, %89 : vector<6x512xf32>
    %91 = arith.addf %81, %90 : vector<6x512xf32>
    %c7 = arith.constant 7 : index
    %c0_74 = arith.constant 0 : index
    %c0_75 = arith.constant 0 : index
    %92 = vector.load %arg2[%c7, %c0_74, %c0_75] : memref<27x6x512xf32, #tpu.memory_space<vmem>>, vector<1x6x512xf32>
    %93 = vector.shape_cast %92 : vector<1x6x512xf32> to vector<6x512xf32>
    %c0_76 = arith.constant 0 : index
    %c0_77 = arith.constant 0 : index
    %c72 = arith.constant 72 : index
    %94 = vector.load %arg5[%c0_76, %c0_77, %c72] : memref<2x6x768xf32, #tpu.memory_space<vmem>>, vector<1x6x512xf32>
    %95 = vector.shape_cast %94 : vector<1x6x512xf32> to vector<6x512xf32>
    %96 = arith.mulf %93, %95 : vector<6x512xf32>
    %97 = arith.addf %87, %96 : vector<6x512xf32>
    %c1_78 = arith.constant 1 : index
    %c0_79 = arith.constant 0 : index
    %c72_80 = arith.constant 72 : index
    %98 = vector.load %arg5[%c1_78, %c0_79, %c72_80] : memref<2x6x768xf32, #tpu.memory_space<vmem>>, vector<1x6x512xf32>
    %99 = vector.shape_cast %98 : vector<1x6x512xf32> to vector<6x512xf32>
    %100 = arith.mulf %93, %99 : vector<6x512xf32>
    %101 = arith.addf %91, %100 : vector<6x512xf32>
    %c8 = arith.constant 8 : index
    %c0_81 = arith.constant 0 : index
    %c0_82 = arith.constant 0 : index
    %102 = vector.load %arg2[%c8, %c0_81, %c0_82] : memref<27x6x512xf32, #tpu.memory_space<vmem>>, vector<1x6x512xf32>
    %103 = vector.shape_cast %102 : vector<1x6x512xf32> to vector<6x512xf32>
    %c0_83 = arith.constant 0 : index
    %c0_84 = arith.constant 0 : index
    %c73 = arith.constant 73 : index
    %104 = vector.load %arg5[%c0_83, %c0_84, %c73] : memref<2x6x768xf32, #tpu.memory_space<vmem>>, vector<1x6x512xf32>
    %105 = vector.shape_cast %104 : vector<1x6x512xf32> to vector<6x512xf32>
    %106 = arith.mulf %103, %105 : vector<6x512xf32>
    %107 = arith.addf %97, %106 : vector<6x512xf32>
    %c1_85 = arith.constant 1 : index
    %c0_86 = arith.constant 0 : index
    %c73_87 = arith.constant 73 : index
    %108 = vector.load %arg5[%c1_85, %c0_86, %c73_87] : memref<2x6x768xf32, #tpu.memory_space<vmem>>, vector<1x6x512xf32>
    %109 = vector.shape_cast %108 : vector<1x6x512xf32> to vector<6x512xf32>
    %110 = arith.mulf %103, %109 : vector<6x512xf32>
    %111 = arith.addf %101, %110 : vector<6x512xf32>
    %c9 = arith.constant 9 : index
    %c0_88 = arith.constant 0 : index
    %c0_89 = arith.constant 0 : index
    %112 = vector.load %arg2[%c9, %c0_88, %c0_89] : memref<27x6x512xf32, #tpu.memory_space<vmem>>, vector<1x6x512xf32>
    %113 = vector.shape_cast %112 : vector<1x6x512xf32> to vector<6x512xf32>
    %c0_90 = arith.constant 0 : index
    %c0_91 = arith.constant 0 : index
    %c119 = arith.constant 119 : index
    %114 = vector.load %arg5[%c0_90, %c0_91, %c119] : memref<2x6x768xf32, #tpu.memory_space<vmem>>, vector<1x6x512xf32>
    %115 = vector.shape_cast %114 : vector<1x6x512xf32> to vector<6x512xf32>
    %116 = arith.mulf %113, %115 : vector<6x512xf32>
    %117 = arith.addf %107, %116 : vector<6x512xf32>
    %c1_92 = arith.constant 1 : index
    %c0_93 = arith.constant 0 : index
    %c119_94 = arith.constant 119 : index
    %118 = vector.load %arg5[%c1_92, %c0_93, %c119_94] : memref<2x6x768xf32, #tpu.memory_space<vmem>>, vector<1x6x512xf32>
    %119 = vector.shape_cast %118 : vector<1x6x512xf32> to vector<6x512xf32>
    %120 = arith.mulf %113, %119 : vector<6x512xf32>
    %121 = arith.addf %111, %120 : vector<6x512xf32>
    %c10 = arith.constant 10 : index
    %c0_95 = arith.constant 0 : index
    %c0_96 = arith.constant 0 : index
    %122 = vector.load %arg2[%c10, %c0_95, %c0_96] : memref<27x6x512xf32, #tpu.memory_space<vmem>>, vector<1x6x512xf32>
    %123 = vector.shape_cast %122 : vector<1x6x512xf32> to vector<6x512xf32>
    %c0_97 = arith.constant 0 : index
    %c0_98 = arith.constant 0 : index
    %c120 = arith.constant 120 : index
    %124 = vector.load %arg5[%c0_97, %c0_98, %c120] : memref<2x6x768xf32, #tpu.memory_space<vmem>>, vector<1x6x512xf32>
    %125 = vector.shape_cast %124 : vector<1x6x512xf32> to vector<6x512xf32>
    %126 = arith.mulf %123, %125 : vector<6x512xf32>
    %127 = arith.addf %117, %126 : vector<6x512xf32>
    %c1_99 = arith.constant 1 : index
    %c0_100 = arith.constant 0 : index
    %c120_101 = arith.constant 120 : index
    %128 = vector.load %arg5[%c1_99, %c0_100, %c120_101] : memref<2x6x768xf32, #tpu.memory_space<vmem>>, vector<1x6x512xf32>
    %129 = vector.shape_cast %128 : vector<1x6x512xf32> to vector<6x512xf32>
    %130 = arith.mulf %123, %129 : vector<6x512xf32>
    %131 = arith.addf %121, %130 : vector<6x512xf32>
    %c11 = arith.constant 11 : index
    %c0_102 = arith.constant 0 : index
    %c0_103 = arith.constant 0 : index
    %132 = vector.load %arg2[%c11, %c0_102, %c0_103] : memref<27x6x512xf32, #tpu.memory_space<vmem>>, vector<1x6x512xf32>
    %133 = vector.shape_cast %132 : vector<1x6x512xf32> to vector<6x512xf32>
    %c0_104 = arith.constant 0 : index
    %c0_105 = arith.constant 0 : index
    %c121 = arith.constant 121 : index
    %134 = vector.load %arg5[%c0_104, %c0_105, %c121] : memref<2x6x768xf32, #tpu.memory_space<vmem>>, vector<1x6x512xf32>
    %135 = vector.shape_cast %134 : vector<1x6x512xf32> to vector<6x512xf32>
    %136 = arith.mulf %133, %135 : vector<6x512xf32>
    %137 = arith.addf %127, %136 : vector<6x512xf32>
    %c1_106 = arith.constant 1 : index
    %c0_107 = arith.constant 0 : index
    %c121_108 = arith.constant 121 : index
    %138 = vector.load %arg5[%c1_106, %c0_107, %c121_108] : memref<2x6x768xf32, #tpu.memory_space<vmem>>, vector<1x6x512xf32>
    %139 = vector.shape_cast %138 : vector<1x6x512xf32> to vector<6x512xf32>
    %140 = arith.mulf %133, %139 : vector<6x512xf32>
    %141 = arith.addf %131, %140 : vector<6x512xf32>
    %c12 = arith.constant 12 : index
    %c0_109 = arith.constant 0 : index
    %c0_110 = arith.constant 0 : index
    %142 = vector.load %arg2[%c12, %c0_109, %c0_110] : memref<27x6x512xf32, #tpu.memory_space<vmem>>, vector<1x6x512xf32>
    %143 = vector.shape_cast %142 : vector<1x6x512xf32> to vector<6x512xf32>
    %c0_111 = arith.constant 0 : index
    %c0_112 = arith.constant 0 : index
    %c127 = arith.constant 127 : index
    %144 = vector.load %arg5[%c0_111, %c0_112, %c127] : memref<2x6x768xf32, #tpu.memory_space<vmem>>, vector<1x6x512xf32>
    %145 = vector.shape_cast %144 : vector<1x6x512xf32> to vector<6x512xf32>
    %146 = arith.mulf %143, %145 : vector<6x512xf32>
    %147 = arith.addf %137, %146 : vector<6x512xf32>
    %c1_113 = arith.constant 1 : index
    %c0_114 = arith.constant 0 : index
    %c127_115 = arith.constant 127 : index
    %148 = vector.load %arg5[%c1_113, %c0_114, %c127_115] : memref<2x6x768xf32, #tpu.memory_space<vmem>>, vector<1x6x512xf32>
    %149 = vector.shape_cast %148 : vector<1x6x512xf32> to vector<6x512xf32>
    %150 = arith.mulf %143, %149 : vector<6x512xf32>
    %151 = arith.addf %141, %150 : vector<6x512xf32>
    %c13 = arith.constant 13 : index
    %c0_116 = arith.constant 0 : index
    %c0_117 = arith.constant 0 : index
    %152 = vector.load %arg2[%c13, %c0_116, %c0_117] : memref<27x6x512xf32, #tpu.memory_space<vmem>>, vector<1x6x512xf32>
    %153 = vector.shape_cast %152 : vector<1x6x512xf32> to vector<6x512xf32>
    %c0_118 = arith.constant 0 : index
    %c0_119 = arith.constant 0 : index
    %c128_120 = arith.constant 128 : index
    %154 = vector.load %arg5[%c0_118, %c0_119, %c128_120] : memref<2x6x768xf32, #tpu.memory_space<vmem>>, vector<1x6x512xf32>
    %155 = vector.shape_cast %154 : vector<1x6x512xf32> to vector<6x512xf32>
    %156 = arith.mulf %153, %155 : vector<6x512xf32>
    %157 = arith.addf %147, %156 : vector<6x512xf32>
    %c1_121 = arith.constant 1 : index
    %c0_122 = arith.constant 0 : index
    %c128_123 = arith.constant 128 : index
    %158 = vector.load %arg5[%c1_121, %c0_122, %c128_123] : memref<2x6x768xf32, #tpu.memory_space<vmem>>, vector<1x6x512xf32>
    %159 = vector.shape_cast %158 : vector<1x6x512xf32> to vector<6x512xf32>
    %160 = arith.mulf %153, %159 : vector<6x512xf32>
    %161 = arith.addf %151, %160 : vector<6x512xf32>
    %c14 = arith.constant 14 : index
    %c0_124 = arith.constant 0 : index
    %c0_125 = arith.constant 0 : index
    %162 = vector.load %arg2[%c14, %c0_124, %c0_125] : memref<27x6x512xf32, #tpu.memory_space<vmem>>, vector<1x6x512xf32>
    %163 = vector.shape_cast %162 : vector<1x6x512xf32> to vector<6x512xf32>
    %c0_126 = arith.constant 0 : index
    %c0_127 = arith.constant 0 : index
    %c129 = arith.constant 129 : index
    %164 = vector.load %arg5[%c0_126, %c0_127, %c129] : memref<2x6x768xf32, #tpu.memory_space<vmem>>, vector<1x6x512xf32>
    %165 = vector.shape_cast %164 : vector<1x6x512xf32> to vector<6x512xf32>
    %166 = arith.mulf %163, %165 : vector<6x512xf32>
    %167 = arith.addf %157, %166 : vector<6x512xf32>
    %c1_128 = arith.constant 1 : index
    %c0_129 = arith.constant 0 : index
    %c129_130 = arith.constant 129 : index
    %168 = vector.load %arg5[%c1_128, %c0_129, %c129_130] : memref<2x6x768xf32, #tpu.memory_space<vmem>>, vector<1x6x512xf32>
    %169 = vector.shape_cast %168 : vector<1x6x512xf32> to vector<6x512xf32>
    %170 = arith.mulf %163, %169 : vector<6x512xf32>
    %171 = arith.addf %161, %170 : vector<6x512xf32>
    %c15 = arith.constant 15 : index
    %c0_131 = arith.constant 0 : index
    %c0_132 = arith.constant 0 : index
    %172 = vector.load %arg2[%c15, %c0_131, %c0_132] : memref<27x6x512xf32, #tpu.memory_space<vmem>>, vector<1x6x512xf32>
    %173 = vector.shape_cast %172 : vector<1x6x512xf32> to vector<6x512xf32>
    %c0_133 = arith.constant 0 : index
    %c0_134 = arith.constant 0 : index
    %c135 = arith.constant 135 : index
    %174 = vector.load %arg5[%c0_133, %c0_134, %c135] : memref<2x6x768xf32, #tpu.memory_space<vmem>>, vector<1x6x512xf32>
    %175 = vector.shape_cast %174 : vector<1x6x512xf32> to vector<6x512xf32>
    %176 = arith.mulf %173, %175 : vector<6x512xf32>
    %177 = arith.addf %167, %176 : vector<6x512xf32>
    %c1_135 = arith.constant 1 : index
    %c0_136 = arith.constant 0 : index
    %c135_137 = arith.constant 135 : index
    %178 = vector.load %arg5[%c1_135, %c0_136, %c135_137] : memref<2x6x768xf32, #tpu.memory_space<vmem>>, vector<1x6x512xf32>
    %179 = vector.shape_cast %178 : vector<1x6x512xf32> to vector<6x512xf32>
    %180 = arith.mulf %173, %179 : vector<6x512xf32>
    %181 = arith.addf %171, %180 : vector<6x512xf32>
    %c16 = arith.constant 16 : index
    %c0_138 = arith.constant 0 : index
    %c0_139 = arith.constant 0 : index
    %182 = vector.load %arg2[%c16, %c0_138, %c0_139] : memref<27x6x512xf32, #tpu.memory_space<vmem>>, vector<1x6x512xf32>
    %183 = vector.shape_cast %182 : vector<1x6x512xf32> to vector<6x512xf32>
    %c0_140 = arith.constant 0 : index
    %c0_141 = arith.constant 0 : index
    %c136 = arith.constant 136 : index
    %184 = vector.load %arg5[%c0_140, %c0_141, %c136] : memref<2x6x768xf32, #tpu.memory_space<vmem>>, vector<1x6x512xf32>
    %185 = vector.shape_cast %184 : vector<1x6x512xf32> to vector<6x512xf32>
    %186 = arith.mulf %183, %185 : vector<6x512xf32>
    %187 = arith.addf %177, %186 : vector<6x512xf32>
    %c1_142 = arith.constant 1 : index
    %c0_143 = arith.constant 0 : index
    %c136_144 = arith.constant 136 : index
    %188 = vector.load %arg5[%c1_142, %c0_143, %c136_144] : memref<2x6x768xf32, #tpu.memory_space<vmem>>, vector<1x6x512xf32>
    %189 = vector.shape_cast %188 : vector<1x6x512xf32> to vector<6x512xf32>
    %190 = arith.mulf %183, %189 : vector<6x512xf32>
    %191 = arith.addf %181, %190 : vector<6x512xf32>
    %c17 = arith.constant 17 : index
    %c0_145 = arith.constant 0 : index
    %c0_146 = arith.constant 0 : index
    %192 = vector.load %arg2[%c17, %c0_145, %c0_146] : memref<27x6x512xf32, #tpu.memory_space<vmem>>, vector<1x6x512xf32>
    %193 = vector.shape_cast %192 : vector<1x6x512xf32> to vector<6x512xf32>
    %c0_147 = arith.constant 0 : index
    %c0_148 = arith.constant 0 : index
    %c137 = arith.constant 137 : index
    %194 = vector.load %arg5[%c0_147, %c0_148, %c137] : memref<2x6x768xf32, #tpu.memory_space<vmem>>, vector<1x6x512xf32>
    %195 = vector.shape_cast %194 : vector<1x6x512xf32> to vector<6x512xf32>
    %196 = arith.mulf %193, %195 : vector<6x512xf32>
    %197 = arith.addf %187, %196 : vector<6x512xf32>
    %c1_149 = arith.constant 1 : index
    %c0_150 = arith.constant 0 : index
    %c137_151 = arith.constant 137 : index
    %198 = vector.load %arg5[%c1_149, %c0_150, %c137_151] : memref<2x6x768xf32, #tpu.memory_space<vmem>>, vector<1x6x512xf32>
    %199 = vector.shape_cast %198 : vector<1x6x512xf32> to vector<6x512xf32>
    %200 = arith.mulf %193, %199 : vector<6x512xf32>
    %201 = arith.addf %191, %200 : vector<6x512xf32>
    %c18 = arith.constant 18 : index
    %c0_152 = arith.constant 0 : index
    %c0_153 = arith.constant 0 : index
    %202 = vector.load %arg2[%c18, %c0_152, %c0_153] : memref<27x6x512xf32, #tpu.memory_space<vmem>>, vector<1x6x512xf32>
    %203 = vector.shape_cast %202 : vector<1x6x512xf32> to vector<6x512xf32>
    %c0_154 = arith.constant 0 : index
    %c0_155 = arith.constant 0 : index
    %c183 = arith.constant 183 : index
    %204 = vector.load %arg5[%c0_154, %c0_155, %c183] : memref<2x6x768xf32, #tpu.memory_space<vmem>>, vector<1x6x512xf32>
    %205 = vector.shape_cast %204 : vector<1x6x512xf32> to vector<6x512xf32>
    %206 = arith.mulf %203, %205 : vector<6x512xf32>
    %207 = arith.addf %197, %206 : vector<6x512xf32>
    %c1_156 = arith.constant 1 : index
    %c0_157 = arith.constant 0 : index
    %c183_158 = arith.constant 183 : index
    %208 = vector.load %arg5[%c1_156, %c0_157, %c183_158] : memref<2x6x768xf32, #tpu.memory_space<vmem>>, vector<1x6x512xf32>
    %209 = vector.shape_cast %208 : vector<1x6x512xf32> to vector<6x512xf32>
    %210 = arith.mulf %203, %209 : vector<6x512xf32>
    %211 = arith.addf %201, %210 : vector<6x512xf32>
    %c19 = arith.constant 19 : index
    %c0_159 = arith.constant 0 : index
    %c0_160 = arith.constant 0 : index
    %212 = vector.load %arg2[%c19, %c0_159, %c0_160] : memref<27x6x512xf32, #tpu.memory_space<vmem>>, vector<1x6x512xf32>
    %213 = vector.shape_cast %212 : vector<1x6x512xf32> to vector<6x512xf32>
    %c0_161 = arith.constant 0 : index
    %c0_162 = arith.constant 0 : index
    %c184 = arith.constant 184 : index
    %214 = vector.load %arg5[%c0_161, %c0_162, %c184] : memref<2x6x768xf32, #tpu.memory_space<vmem>>, vector<1x6x512xf32>
    %215 = vector.shape_cast %214 : vector<1x6x512xf32> to vector<6x512xf32>
    %216 = arith.mulf %213, %215 : vector<6x512xf32>
    %217 = arith.addf %207, %216 : vector<6x512xf32>
    %c1_163 = arith.constant 1 : index
    %c0_164 = arith.constant 0 : index
    %c184_165 = arith.constant 184 : index
    %218 = vector.load %arg5[%c1_163, %c0_164, %c184_165] : memref<2x6x768xf32, #tpu.memory_space<vmem>>, vector<1x6x512xf32>
    %219 = vector.shape_cast %218 : vector<1x6x512xf32> to vector<6x512xf32>
    %220 = arith.mulf %213, %219 : vector<6x512xf32>
    %221 = arith.addf %211, %220 : vector<6x512xf32>
    %c20 = arith.constant 20 : index
    %c0_166 = arith.constant 0 : index
    %c0_167 = arith.constant 0 : index
    %222 = vector.load %arg2[%c20, %c0_166, %c0_167] : memref<27x6x512xf32, #tpu.memory_space<vmem>>, vector<1x6x512xf32>
    %223 = vector.shape_cast %222 : vector<1x6x512xf32> to vector<6x512xf32>
    %c0_168 = arith.constant 0 : index
    %c0_169 = arith.constant 0 : index
    %c185 = arith.constant 185 : index
    %224 = vector.load %arg5[%c0_168, %c0_169, %c185] : memref<2x6x768xf32, #tpu.memory_space<vmem>>, vector<1x6x512xf32>
    %225 = vector.shape_cast %224 : vector<1x6x512xf32> to vector<6x512xf32>
    %226 = arith.mulf %223, %225 : vector<6x512xf32>
    %227 = arith.addf %217, %226 : vector<6x512xf32>
    %c1_170 = arith.constant 1 : index
    %c0_171 = arith.constant 0 : index
    %c185_172 = arith.constant 185 : index
    %228 = vector.load %arg5[%c1_170, %c0_171, %c185_172] : memref<2x6x768xf32, #tpu.memory_space<vmem>>, vector<1x6x512xf32>
    %229 = vector.shape_cast %228 : vector<1x6x512xf32> to vector<6x512xf32>
    %230 = arith.mulf %223, %229 : vector<6x512xf32>
    %231 = arith.addf %221, %230 : vector<6x512xf32>
    %c21 = arith.constant 21 : index
    %c0_173 = arith.constant 0 : index
    %c0_174 = arith.constant 0 : index
    %232 = vector.load %arg2[%c21, %c0_173, %c0_174] : memref<27x6x512xf32, #tpu.memory_space<vmem>>, vector<1x6x512xf32>
    %233 = vector.shape_cast %232 : vector<1x6x512xf32> to vector<6x512xf32>
    %c0_175 = arith.constant 0 : index
    %c0_176 = arith.constant 0 : index
    %c191 = arith.constant 191 : index
    %234 = vector.load %arg5[%c0_175, %c0_176, %c191] : memref<2x6x768xf32, #tpu.memory_space<vmem>>, vector<1x6x512xf32>
    %235 = vector.shape_cast %234 : vector<1x6x512xf32> to vector<6x512xf32>
    %236 = arith.mulf %233, %235 : vector<6x512xf32>
    %237 = arith.addf %227, %236 : vector<6x512xf32>
    %c1_177 = arith.constant 1 : index
    %c0_178 = arith.constant 0 : index
    %c191_179 = arith.constant 191 : index
    %238 = vector.load %arg5[%c1_177, %c0_178, %c191_179] : memref<2x6x768xf32, #tpu.memory_space<vmem>>, vector<1x6x512xf32>
    %239 = vector.shape_cast %238 : vector<1x6x512xf32> to vector<6x512xf32>
    %240 = arith.mulf %233, %239 : vector<6x512xf32>
    %241 = arith.addf %231, %240 : vector<6x512xf32>
    %c22 = arith.constant 22 : index
    %c0_180 = arith.constant 0 : index
    %c0_181 = arith.constant 0 : index
    %242 = vector.load %arg2[%c22, %c0_180, %c0_181] : memref<27x6x512xf32, #tpu.memory_space<vmem>>, vector<1x6x512xf32>
    %243 = vector.shape_cast %242 : vector<1x6x512xf32> to vector<6x512xf32>
    %c0_182 = arith.constant 0 : index
    %c0_183 = arith.constant 0 : index
    %c192 = arith.constant 192 : index
    %244 = vector.load %arg5[%c0_182, %c0_183, %c192] : memref<2x6x768xf32, #tpu.memory_space<vmem>>, vector<1x6x512xf32>
    %245 = vector.shape_cast %244 : vector<1x6x512xf32> to vector<6x512xf32>
    %246 = arith.mulf %243, %245 : vector<6x512xf32>
    %247 = arith.addf %237, %246 : vector<6x512xf32>
    %c1_184 = arith.constant 1 : index
    %c0_185 = arith.constant 0 : index
    %c192_186 = arith.constant 192 : index
    %248 = vector.load %arg5[%c1_184, %c0_185, %c192_186] : memref<2x6x768xf32, #tpu.memory_space<vmem>>, vector<1x6x512xf32>
    %249 = vector.shape_cast %248 : vector<1x6x512xf32> to vector<6x512xf32>
    %250 = arith.mulf %243, %249 : vector<6x512xf32>
    %251 = arith.addf %241, %250 : vector<6x512xf32>
    %c23 = arith.constant 23 : index
    %c0_187 = arith.constant 0 : index
    %c0_188 = arith.constant 0 : index
    %252 = vector.load %arg2[%c23, %c0_187, %c0_188] : memref<27x6x512xf32, #tpu.memory_space<vmem>>, vector<1x6x512xf32>
    %253 = vector.shape_cast %252 : vector<1x6x512xf32> to vector<6x512xf32>
    %c0_189 = arith.constant 0 : index
    %c0_190 = arith.constant 0 : index
    %c193 = arith.constant 193 : index
    %254 = vector.load %arg5[%c0_189, %c0_190, %c193] : memref<2x6x768xf32, #tpu.memory_space<vmem>>, vector<1x6x512xf32>
    %255 = vector.shape_cast %254 : vector<1x6x512xf32> to vector<6x512xf32>
    %256 = arith.mulf %253, %255 : vector<6x512xf32>
    %257 = arith.addf %247, %256 : vector<6x512xf32>
    %c1_191 = arith.constant 1 : index
    %c0_192 = arith.constant 0 : index
    %c193_193 = arith.constant 193 : index
    %258 = vector.load %arg5[%c1_191, %c0_192, %c193_193] : memref<2x6x768xf32, #tpu.memory_space<vmem>>, vector<1x6x512xf32>
    %259 = vector.shape_cast %258 : vector<1x6x512xf32> to vector<6x512xf32>
    %260 = arith.mulf %253, %259 : vector<6x512xf32>
    %261 = arith.addf %251, %260 : vector<6x512xf32>
    %c24 = arith.constant 24 : index
    %c0_194 = arith.constant 0 : index
    %c0_195 = arith.constant 0 : index
    %262 = vector.load %arg2[%c24, %c0_194, %c0_195] : memref<27x6x512xf32, #tpu.memory_space<vmem>>, vector<1x6x512xf32>
    %263 = vector.shape_cast %262 : vector<1x6x512xf32> to vector<6x512xf32>
    %c0_196 = arith.constant 0 : index
    %c0_197 = arith.constant 0 : index
    %c199 = arith.constant 199 : index
    %264 = vector.load %arg5[%c0_196, %c0_197, %c199] : memref<2x6x768xf32, #tpu.memory_space<vmem>>, vector<1x6x512xf32>
    %265 = vector.shape_cast %264 : vector<1x6x512xf32> to vector<6x512xf32>
    %266 = arith.mulf %263, %265 : vector<6x512xf32>
    %267 = arith.addf %257, %266 : vector<6x512xf32>
    %c1_198 = arith.constant 1 : index
    %c0_199 = arith.constant 0 : index
    %c199_200 = arith.constant 199 : index
    %268 = vector.load %arg5[%c1_198, %c0_199, %c199_200] : memref<2x6x768xf32, #tpu.memory_space<vmem>>, vector<1x6x512xf32>
    %269 = vector.shape_cast %268 : vector<1x6x512xf32> to vector<6x512xf32>
    %270 = arith.mulf %263, %269 : vector<6x512xf32>
    %271 = arith.addf %261, %270 : vector<6x512xf32>
    %c25 = arith.constant 25 : index
    %c0_201 = arith.constant 0 : index
    %c0_202 = arith.constant 0 : index
    %272 = vector.load %arg2[%c25, %c0_201, %c0_202] : memref<27x6x512xf32, #tpu.memory_space<vmem>>, vector<1x6x512xf32>
    %273 = vector.shape_cast %272 : vector<1x6x512xf32> to vector<6x512xf32>
    %c0_203 = arith.constant 0 : index
    %c0_204 = arith.constant 0 : index
    %c200 = arith.constant 200 : index
    %274 = vector.load %arg5[%c0_203, %c0_204, %c200] : memref<2x6x768xf32, #tpu.memory_space<vmem>>, vector<1x6x512xf32>
    %275 = vector.shape_cast %274 : vector<1x6x512xf32> to vector<6x512xf32>
    %276 = arith.mulf %273, %275 : vector<6x512xf32>
    %277 = arith.addf %267, %276 : vector<6x512xf32>
    %c1_205 = arith.constant 1 : index
    %c0_206 = arith.constant 0 : index
    %c200_207 = arith.constant 200 : index
    %278 = vector.load %arg5[%c1_205, %c0_206, %c200_207] : memref<2x6x768xf32, #tpu.memory_space<vmem>>, vector<1x6x512xf32>
    %279 = vector.shape_cast %278 : vector<1x6x512xf32> to vector<6x512xf32>
    %280 = arith.mulf %273, %279 : vector<6x512xf32>
    %281 = arith.addf %271, %280 : vector<6x512xf32>
    %c26 = arith.constant 26 : index
    %c0_208 = arith.constant 0 : index
    %c0_209 = arith.constant 0 : index
    %282 = vector.load %arg2[%c26, %c0_208, %c0_209] : memref<27x6x512xf32, #tpu.memory_space<vmem>>, vector<1x6x512xf32>
    %283 = vector.shape_cast %282 : vector<1x6x512xf32> to vector<6x512xf32>
    %c0_210 = arith.constant 0 : index
    %c0_211 = arith.constant 0 : index
    %c201 = arith.constant 201 : index
    %284 = vector.load %arg5[%c0_210, %c0_211, %c201] : memref<2x6x768xf32, #tpu.memory_space<vmem>>, vector<1x6x512xf32>
    %285 = vector.shape_cast %284 : vector<1x6x512xf32> to vector<6x512xf32>
    %286 = arith.mulf %283, %285 : vector<6x512xf32>
    %287 = arith.addf %277, %286 : vector<6x512xf32>
    %c1_212 = arith.constant 1 : index
    %c0_213 = arith.constant 0 : index
    %c201_214 = arith.constant 201 : index
    %288 = vector.load %arg5[%c1_212, %c0_213, %c201_214] : memref<2x6x768xf32, #tpu.memory_space<vmem>>, vector<1x6x512xf32>
    %289 = vector.shape_cast %288 : vector<1x6x512xf32> to vector<6x512xf32>
    %290 = arith.mulf %283, %289 : vector<6x512xf32>
    %291 = arith.addf %281, %290 : vector<6x512xf32>
    %292 = vector.extract_strided_slice %287 {offsets = [0, 0], sizes = [1, 512], strides = [1, 1]} : vector<6x512xf32> to vector<1x512xf32>
    %293 = vector.extract_strided_slice %287 {offsets = [1, 0], sizes = [1, 512], strides = [1, 1]} : vector<6x512xf32> to vector<1x512xf32>
    %294 = arith.addf %292, %293 : vector<1x512xf32>
    %295 = vector.extract_strided_slice %287 {offsets = [2, 0], sizes = [1, 512], strides = [1, 1]} : vector<6x512xf32> to vector<1x512xf32>
    %296 = arith.addf %294, %295 : vector<1x512xf32>
    %c0_215 = arith.constant 0 : index
    %297 = memref.load %arg1[%c0_215] : memref<2xf32, #tpu.memory_space<smem>>
    %298 = vector.broadcast %297 : f32 to vector<1x512xf32>
    %299 = arith.addf %296, %298 : vector<1x512xf32>
    %300 = vector.extract_strided_slice %287 {offsets = [3, 0], sizes = [1, 512], strides = [1, 1]} : vector<6x512xf32> to vector<1x512xf32>
    %301 = vector.extract_strided_slice %287 {offsets = [4, 0], sizes = [1, 512], strides = [1, 1]} : vector<6x512xf32> to vector<1x512xf32>
    %302 = arith.addf %300, %301 : vector<1x512xf32>
    %303 = vector.extract_strided_slice %287 {offsets = [5, 0], sizes = [1, 512], strides = [1, 1]} : vector<6x512xf32> to vector<1x512xf32>
    %304 = arith.addf %302, %303 : vector<1x512xf32>
    %c1_216 = arith.constant 1 : index
    %305 = memref.load %arg1[%c1_216] : memref<2xf32, #tpu.memory_space<smem>>
    %306 = vector.broadcast %305 : f32 to vector<1x512xf32>
    %307 = arith.addf %304, %306 : vector<1x512xf32>
    %308 = tpu.concatenate %299, %307 in 0 : vector<1x512xf32>, vector<1x512xf32> -> vector<2x512xf32>
    %cst_217 = arith.constant 0.000000e+00 : f32
    %309 = vector.broadcast %cst_217 : f32 to vector<2x512xf32>
    %310 = arith.cmpf ogt, %308, %309 : vector<2x512xf32>
    %cst_218 = arith.constant 1.52369237 : f32
    %311 = vector.broadcast %cst_218 : f32 to vector<2x512xf32>
    %312 = arith.mulf %308, %311 : vector<2x512xf32>
    %313 = arith.select %310, %308, %312 : vector<2x512xi1>, vector<2x512xf32>
    %c0_219 = arith.constant 0 : index
    %c0_220 = arith.constant 0 : index
    %c0_221 = arith.constant 0 : index
    %314 = vector.load %arg4[%c0_219, %c0_220, %c0_221] : memref<2x2x512xf32, #tpu.memory_space<vmem>>, vector<1x2x512xf32>
    %315 = vector.shape_cast %314 : vector<1x2x512xf32> to vector<2x512xf32>
    %316 = vector.shape_cast %313 : vector<2x512xf32> to vector<1x2x512xf32>
    tpu.vector_store %arg4[%c0_219, %c0_220, %c0_221], %316 {strides = array<i32>} : memref<2x2x512xf32, #tpu.memory_space<vmem>>, vector<1x2x512xf32>,
    %317 = vector.extract_strided_slice %291 {offsets = [0, 0], sizes = [1, 512], strides = [1, 1]} : vector<6x512xf32> to vector<1x512xf32>
    %318 = vector.extract_strided_slice %291 {offsets = [1, 0], sizes = [1, 512], strides = [1, 1]} : vector<6x512xf32> to vector<1x512xf32>
    %319 = arith.addf %317, %318 : vector<1x512xf32>
    %320 = vector.extract_strided_slice %291 {offsets = [2, 0], sizes = [1, 512], strides = [1, 1]} : vector<6x512xf32> to vector<1x512xf32>
    %321 = arith.addf %319, %320 : vector<1x512xf32>
    %c0_222 = arith.constant 0 : index
    %322 = memref.load %arg1[%c0_222] : memref<2xf32, #tpu.memory_space<smem>>
    %323 = vector.broadcast %322 : f32 to vector<1x512xf32>
    %324 = arith.addf %321, %323 : vector<1x512xf32>
    %325 = vector.extract_strided_slice %291 {offsets = [3, 0], sizes = [1, 512], strides = [1, 1]} : vector<6x512xf32> to vector<1x512xf32>
    %326 = vector.extract_strided_slice %291 {offsets = [4, 0], sizes = [1, 512], strides = [1, 1]} : vector<6x512xf32> to vector<1x512xf32>
    %327 = arith.addf %325, %326 : vector<1x512xf32>
    %328 = vector.extract_strided_slice %291 {offsets = [5, 0], sizes = [1, 512], strides = [1, 1]} : vector<6x512xf32> to vector<1x512xf32>
    %329 = arith.addf %327, %328 : vector<1x512xf32>
    %c1_223 = arith.constant 1 : index
    %330 = memref.load %arg1[%c1_223] : memref<2xf32, #tpu.memory_space<smem>>
    %331 = vector.broadcast %330 : f32 to vector<1x512xf32>
    %332 = arith.addf %329, %331 : vector<1x512xf32>
    %333 = tpu.concatenate %324, %332 in 0 : vector<1x512xf32>, vector<1x512xf32> -> vector<2x512xf32>
    %cst_224 = arith.constant 0.000000e+00 : f32
    %334 = vector.broadcast %cst_224 : f32 to vector<2x512xf32>
    %335 = arith.cmpf ogt, %333, %334 : vector<2x512xf32>
    %cst_225 = arith.constant 1.52369237 : f32
    %336 = vector.broadcast %cst_225 : f32 to vector<2x512xf32>
    %337 = arith.mulf %333, %336 : vector<2x512xf32>
    %338 = arith.select %335, %333, %337 : vector<2x512xi1>, vector<2x512xf32>
    %c1_226 = arith.constant 1 : index
    %c0_227 = arith.constant 0 : index
    %c0_228 = arith.constant 0 : index
    %339 = vector.load %arg4[%c1_226, %c0_227, %c0_228] : memref<2x2x512xf32, #tpu.memory_space<vmem>>, vector<1x2x512xf32>
    %340 = vector.shape_cast %339 : vector<1x2x512xf32> to vector<2x512xf32>
    %341 = vector.shape_cast %338 : vector<2x512xf32> to vector<1x2x512xf32>
    tpu.vector_store %arg4[%c1_226, %c0_227, %c0_228], %341 {strides = array<i32>} : memref<2x2x512xf32, #tpu.memory_space<vmem>>, vector<1x2x512xf32>,
    return
  }
  func.func @transform_0(%arg0: i32) -> i32 {
    %c0_i32 = arith.constant 0 : i32
    %c0_i32_0 = arith.constant 0 : i32
    return %c0_i32 : i32
  }
  func.func @transform_1(%arg0: i32) -> (i32, i32, i32) {
    %c0_i32 = arith.constant 0 : i32
    %c0_i32_0 = arith.constant 0 : i32
    %c0_i32_1 = arith.constant 0 : i32
    %c0_i32_2 = arith.constant 0 : i32
    return %c0_i32, %c0_i32_0, %c0_i32_1 : i32, i32, i32
  }
  func.func @transform_2(%arg0: i32) -> (i32, i32, i32) {
    %c0_i32 = arith.constant 0 : i32
    %c0_i32_0 = arith.constant 0 : i32
    %c0_i32_1 = arith.constant 0 : i32
    return %arg0, %c0_i32, %c0_i32_0 : i32, i32, i32
  }
  func.func @transform_3(%arg0: i32) -> (i32, i32, i32) {
    %c0_i32 = arith.constant 0 : i32
    %c0_i32_0 = arith.constant 0 : i32
    %c0_i32_1 = arith.constant 0 : i32
    return %arg0, %c0_i32, %c0_i32_0 : i32, i32, i32
  }
}

</mosaic_0001>

<bundles_post_ra>
// kernel: tpu_custom_call.1
= control target key start
LH: loop header
LB: loop body
LE: loop exit
PB: predicated region body
PF: predicated region fallthrough
CT: control target
= control target key end

     0   :  { %8 = vsyncpa [#allocation5], 0  ;;  %s3725_s0 = inlined_call_operand.vmem [shape: f32[2], index: 0, kind: input, shape index: {}]   ;;  %s3726_s1 = inlined_call_operand.vmem [shape: f32[27,6,512], index: 1, kind: input, shape index: {}]   ;;  %s3727_s2 = inlined_call_operand.vmem [shape: f32[2,3,512], index: 2, kind: input, shape index: {}]   ;;  %s3728_s3 = inlined_call_operand.hbm [shape: f32[2,2,512], index: 3, kind: output, shape index: {}]  }
   0x1   :  { %9 = vsyncpa [#allocation4], 0  ;;  %s16_s14 = sshll.u32 %s3725_s0, 4  ;;  %s17_s14 = int_to_ptr.vmem [resolvable:$true] %s16_s14 }
   0x2   :  { %s1846_s15 = scalar_lea.vmem %s17_s14, 16  ;;  %p1851_p1 = scmp.lt.s32.totalorder %s17_s14, %s17_s14 }
   0x3   :  { %p1847_p0 = scmp.ne.s32.totalorder %s17_s14, %s1846_s15  ;;  %p1852_p2 = scmp.lt.s32.totalorder %s1846_s15, %s1846_s15 }
   0x5   :  { %p1853_p3 = por %p1852_p2, %p1851_p1 }
   0x7   :  { %p1854_p4 = pnand %p1853_p3, %p1847_p0 }
   0x9   :  { %1857 = shalt.err (!%p1854_p4)
}
   0xa   :  { %s1884_s16 = smov [#allocation3]  }
   0xb   :  { %19 = dma.vmem_to_smem %s17_s14, 16, %s1884_s16, [#allocation5]  }
   0xc   :  { %1880 = dma.done.wait [#allocation5], 16  }
   0xd   :  { %1881 = vsyncadd [#allocation5], 4294967280 }
   0xe   :  { %27 = sfence }
   0xf   :  { %v33_v0 = vld [vmem:[%s3727_s2 + $0x8] sm:$0x77]  ;;  %v1574_v1 = vld [vmem:[%s3727_s2 + $0x10] sm:$0x77]  ;;  %v1885_v3 = vmov 0.0   ;;  %s1887_s24 = smov 72  }
  0x10   :  { %42 = vst [vmem:[#allocation2 + $0x18] sm:$0x7] %v33_v0  ;;  %v46_v2 = vrot.slane %v33_v0, 5  ;;  %28 = vst [vmem:[#allocation2] sm:$0x3f] %v1885_v3  ;;  %v70_v4 = vrot.slane %v1574_v1, 5  ;;  %v37_v7 = vcombine.high %v33_v0, %v33_v0  ;;  %v61_v8 = vcombine.high %v1574_v1, %v1574_v1 }
  0x11   :  { %29 = vst [vmem:[#allocation2 + $0x30] sm:$0x3f] %v1885_v3  ;;  %30 = vst [vmem:[#allocation2 + $0x28] sm:$0x3f] %v1885_v3  ;;  %v32_v5 = vld [vmem:[%s3727_s2] sm:$0x77] }
  0x12   :  { %31 = vst [vmem:[#allocation2 + $0x58] sm:$0x3f] %v1885_v3  ;;  %66 = vst [vmem:[#allocation2 + $0x38] sm:$0x7] %v1574_v1  ;;  %v1575_v6 = vld [vmem:[%s3727_s2 + $0x18] sm:$0x77]  ;;  %v36_v11 = vcombine.high %v32_v5, %v32_v5 }
  0x13   :  { %40 = vst [vmem:[#allocation2 + $0x8] sm:$0x7] %v32_v5  ;;  %v44_v9 = vrot.slane %v32_v5, 5  ;;  %68 = vst [vmem:[#allocation2 + $0x48] sm:$0x7] %v1575_v6  ;;  %v72_v10 = vrot.slane %v1575_v6, 5  ;;  %v62_v12 = vcombine.high %v1575_v6, %v1575_v6 }
  0x14   :  { %54 = vst [vmem:[#allocation2 + $0x18] sm:$0x38] %v46_v2  ;;  %78 = vst [vmem:[#allocation2 + $0x38] sm:$0x38] %v70_v4  ;;  %v47_v13 = vrot.slane %v37_v7, 5  ;;  %v71_v14 = vrot.slane %v61_v8, 5 }
  0x15   :  { %43 = vst [vmem:[#allocation2 + $0x20] sm:$0x7] %v37_v7  ;;  %67 = vst [vmem:[#allocation2 + $0x40] sm:$0x7] %v61_v8  ;;  %v45_v15 = vrot.slane %v36_v11, 5  ;;  %v73_v16 = vrot.slane %v62_v12, 5 }
  0x16   :  { %52 = vst [vmem:[#allocation2 + $0x8] sm:$0x38] %v44_v9  ;;  %80 = vst [vmem:[#allocation2 + $0x48] sm:$0x38] %v72_v10  ;;  %s1886_s2 = smov 73   ;;  %s1888_s25 = smov 71  }
  0x17   :  { %41 = vst [vmem:[#allocation2 + $0x10] sm:$0x7] %v36_v11  ;;  %69 = vst [vmem:[#allocation2 + $0x50] sm:$0x7] %v62_v12  ;;  %v86_v17 = vld [vmem:[#allocation2] sm:$0x3f] }
  0x18   :  { %55 = vst [vmem:[#allocation2 + $0x20] sm:$0x38] %v47_v13  ;;  %79 = vst [vmem:[#allocation2 + $0x40] sm:$0x38] %v71_v14  ;;  %v123_v18 = vld [vmem:[#allocation2 + $0x30] sm:$0x3f] }
  0x19   :  { %53 = vst [vmem:[#allocation2 + $0x10] sm:$0x38] %v45_v15  ;;  %81 = vst [vmem:[#allocation2 + $0x50] sm:$0x38] %v73_v16  ;;  %v1941_v19 = vpack.i.bf16 %v123_v18, %v86_v17  ;;  %s1889_s26 = smov 65   ;;  %s1890_s27 = smov 64  }
  0x1a   :  { %s1891_s28 = smov 63   ;;  %s1892_s29 = smov 57   ;;  %vm106_vm0 = vcmask 596992   ;;  %vm174_vm1 = vcmask 588800   ;;  %vm232_vm2 = vcmask 580608   ;;  %vm290_vm3 = vcmask 531456  }
  0x1b   :  { %v1943_v20 = vld [vmem:[#allocation2 + $0x18] sm:$0x3f]  ;;  %1705 = vrot.lane.b32.xlu0 %v1941_v19, %s1886_s2  ;;  %s1893_s30 = smov 56   ;;  %s1894_s4 = smov 55   ;;  %vm348_vm4 = vcmask 523264   ;;  %vm522_vm5 = vcmask 457728  }
  0x1c   :  { %102 = vrot.lane.b32.xlu1 %v1943_v20, %s1886_s2  ;;  %v1949_v21 = vld [vmem:[#allocation2 + $0x38] sm:$0x3f]  ;;  %s1895_s5 = smov 9   ;;  %s1896_s6 = smov 8   ;;  %vm406_vm6 = vcmask 515072   ;;  %vm464_vm7 = vcmask 465920  }
  0x1d   :  { %v1951_v22 = vld [vmem:[#allocation2 + $0x8] sm:$0x3f]  ;;  %s1897_s7 = smov 7   ;;  %s1898_s8 = smov 1   ;;  %vm580_vm8 = vcmask 449536   ;;  %vm638_vm9 = vcmask 72704  }
  0x1e   :  { %v1957_v23 = vld [vmem:[#allocation2 + $0x48] sm:$0x3f]  ;;  %s1899_s15 = smov 127   ;;  %s1901_s9 = smov 120   ;;  %vm696_vm10 = vcmask 64512   ;;  %vm754_vm11 = vcmask 56320  }
  0x1f   :  { %98 = vrot.lane.b32.xlu0 %v1951_v22, %s1886_s2  ;;  %v1959_v24 = vld [vmem:[#allocation2 + $0x20] sm:$0x3f]  ;;  %vm812_vm12 = vcmask 7168   ;;  %vm893_vm13 = vcmask 1039360   ;;  %s3292_s14 = sld [smem:[#allocation3]]  ;;  %s3310_s19 = sld [smem:[#allocation3 + $0x1]] }
  0x20   :  { %135 = vrot.lane.b32.xlu1 %v1949_v21, %s1886_s2  ;;  %v1965_v25 = vld [vmem:[#allocation2 + $0x10] sm:$0x3f]  ;;  %v1967_v26 = vld [vmem:[#allocation2 + $0x40] sm:$0x3f]  ;;  %vm953_vm14 = vcmask 990208   ;;  %vm1011_vm15 = vcmask 982016  }
  0x21   :  { %v1973_v27 = vld [vmem:[#allocation2 + $0x50] sm:$0x3f] }
  0x23   :  { %104 = vrot.lane.b32.xlu0 %v1959_v24, %s1886_s2 }
  0x24   :  { %139 = vrot.lane.b32.xlu1 %v1957_v23, %s1886_s2 }
  0x27   :  { %137 = vrot.lane.b32.xlu0 %v1967_v26, %s1886_s2 }
  0x28   :  { %100 = vrot.lane.b32.xlu1 %v1965_v25, %s1886_s2 }
  0x2b   :  { %141 = vrot.lane.b32.xlu0 %v1973_v27, %s1886_s2 }
  0x2c   :  { %1710 = vrot.lane.b32.xlu1 %v1941_v19, %s1887_s24 }
  0x2f   :  { %166 = vrot.lane.b32.xlu0 %v1951_v22, %s1887_s24 }
  0x30   :  { %168 = vrot.lane.b32.xlu1 %v1965_v25, %s1887_s24 }
  0x33   :  { %170 = vrot.lane.b32.xlu0 %v1943_v20, %s1887_s24 }
  0x34   :  { %172 = vrot.lane.b32.xlu1 %v1959_v24, %s1887_s24 }
  0x37   :  { %193 = vrot.lane.b32.xlu0 %v1949_v21, %s1887_s24 }
  0x38   :  { %195 = vrot.lane.b32.xlu1 %v1967_v26, %s1887_s24 }
  0x3b   :  { %197 = vrot.lane.b32.xlu0 %v1957_v23, %s1887_s24 }
  0x3c   :  { %199 = vrot.lane.b32.xlu1 %v1973_v27, %s1887_s24 }
  0x3f   :  { %1715 = vrot.lane.b32.xlu0 %v1941_v19, %s1888_s25 }
  0x40   :  { %224 = vrot.lane.b32.xlu1 %v1951_v22, %s1888_s25 }
  0x43   :  { %226 = vrot.lane.b32.xlu0 %v1965_v25, %s1888_s25 }
  0x44   :  { %228 = vrot.lane.b32.xlu1 %v1943_v20, %s1888_s25 }
  0x47   :  { %230 = vrot.lane.b32.xlu0 %v1959_v24, %s1888_s25 }
  0x48   :  { %251 = vrot.lane.b32.xlu1 %v1949_v21, %s1888_s25 }
  0x4b   :  { %253 = vrot.lane.b32.xlu0 %v1967_v26, %s1888_s25 }
  0x4c   :  { %255 = vrot.lane.b32.xlu1 %v1957_v23, %s1888_s25 }
  0x4f   :  { %257 = vrot.lane.b32.xlu0 %v1973_v27, %s1888_s25 }
  0x50   :  { %1720 = vrot.lane.b32.xlu1 %v1941_v19, %s1889_s26 }
  0x53   :  { %282 = vrot.lane.b32.xlu0 %v1951_v22, %s1889_s26 }
  0x54   :  { %284 = vrot.lane.b32.xlu1 %v1965_v25, %s1889_s26 }
  0x57   :  { %286 = vrot.lane.b32.xlu0 %v1943_v20, %s1889_s26 }
  0x58   :  { %288 = vrot.lane.b32.xlu1 %v1959_v24, %s1889_s26 }
  0x5b   :  { %309 = vrot.lane.b32.xlu0 %v1949_v21, %s1889_s26 }
  0x5c   :  { %311 = vrot.lane.b32.xlu1 %v1967_v26, %s1889_s26 }
  0x5f   :  { %313 = vrot.lane.b32.xlu0 %v1957_v23, %s1889_s26 }
  0x60   :  { %315 = vrot.lane.b32.xlu1 %v1973_v27, %s1889_s26 }
  0x63   :  { %1725 = vrot.lane.b32.xlu0 %v1941_v19, %s1890_s27 }
  0x64   :  { %340 = vrot.lane.b32.xlu1 %v1951_v22, %s1890_s27 }
  0x67   :  { %342 = vrot.lane.b32.xlu0 %v1965_v25, %s1890_s27 }
  0x68   :  { %344 = vrot.lane.b32.xlu1 %v1943_v20, %s1890_s27 }
  0x6b   :  { %346 = vrot.lane.b32.xlu0 %v1959_v24, %s1890_s27 }
  0x6c   :  { %367 = vrot.lane.b32.xlu1 %v1949_v21, %s1890_s27 }
  0x6f   :  { %369 = vrot.lane.b32.xlu0 %v1967_v26, %s1890_s27 }
  0x70   :  { %371 = vrot.lane.b32.xlu1 %v1957_v23, %s1890_s27 }
  0x73   :  { %373 = vrot.lane.b32.xlu0 %v1973_v27, %s1890_s27 }
  0x74   :  { %1730 = vrot.lane.b32.xlu1 %v1941_v19, %s1891_s28 }
  0x77   :  { %398 = vrot.lane.b32.xlu0 %v1951_v22, %s1891_s28 }
  0x78   :  { %400 = vrot.lane.b32.xlu1 %v1965_v25, %s1891_s28 }
  0x7b   :  { %402 = vrot.lane.b32.xlu0 %v1943_v20, %s1891_s28 }
  0x7c   :  { %404 = vrot.lane.b32.xlu1 %v1959_v24, %s1891_s28 }
  0x7f   :  { %425 = vrot.lane.b32.xlu0 %v1949_v21, %s1891_s28 }
  0x80   :  { %427 = vrot.lane.b32.xlu1 %v1967_v26, %s1891_s28 }
  0x83   :  { %429 = vrot.lane.b32.xlu0 %v1957_v23, %s1891_s28 }
  0x84   :  { %431 = vrot.lane.b32.xlu1 %v1973_v27, %s1891_s28 }
  0x87   :  { %1735 = vrot.lane.b32.xlu0 %v1941_v19, %s1892_s29 }
  0x88   :  { %456 = vrot.lane.b32.xlu1 %v1951_v22, %s1892_s29 }
  0x8b   :  { %458 = vrot.lane.b32.xlu0 %v1965_v25, %s1892_s29 }
  0x8c   :  { %460 = vrot.lane.b32.xlu1 %v1943_v20, %s1892_s29 }
  0x8d   :  { %v2077_v29 = vpop.permute.xlu0 %1705 }
  0x8e   :  { %v2075_v28 = vpop.permute.xlu1 %102  ;;  %v1708_v17 = vunpack.i.h.bf16 %v2077_v29  ;;  %v1707_v18 = vunpack.i.l.bf16 %v2077_v29 }
  0x8f   :  { %462 = vrot.lane.b32.xlu0 %v1959_v24, %s1892_s29 }
  0x90   :  { %483 = vrot.lane.b32.xlu1 %v1949_v21, %s1892_s29 }
  0x91   :  { %v2085_v31 = vpop.permute.xlu0 %98 }
  0x92   :  { %v2083_v30 = vpop.permute.xlu1 %135 }
  0x93   :  { %485 = vrot.lane.b32.xlu0 %v1967_v26, %s1892_s29 }
  0x94   :  { %487 = vrot.lane.b32.xlu1 %v1957_v23, %s1892_s29 }
  0x95   :  { %v2093_v33 = vpop.permute.xlu0 %104 }
  0x96   :  { %v2091_v32 = vpop.permute.xlu1 %139  ;;  %3796 = vst [vmem:[#allocation9_spill] sm:$0xff] %v2093_v33 }
  0x97   :  { %489 = vrot.lane.b32.xlu0 %v1973_v27, %s1892_s29 }
  0x98   :  { %1740 = vrot.lane.b32.xlu1 %v1941_v19, %s1893_s30 }
  0x99   :  { %v2101_v35 = vpop.permute.xlu0 %137 }
  0x9a   :  { %v2099_v34 = vpop.permute.xlu1 %100 }
  0x9b   :  { %514 = vrot.lane.b32.xlu0 %v1951_v22, %s1893_s30 }
  0x9c   :  { %516 = vrot.lane.b32.xlu1 %v1965_v25, %s1893_s30 }
  0x9d   :  { %v2109_v37 = vpop.permute.xlu0 %141 }
  0x9e   :  { %v2107_v36 = vpop.permute.xlu1 %1710  ;;  %3797 = vst [vmem:[#allocation10_spill] sm:$0xff] %v2109_v37 }
  0x9f   :  { %518 = vrot.lane.b32.xlu0 %v1943_v20, %s1893_s30  ;;  %v1712_v16 = vunpack.i.l.bf16 %v2107_v36 }
  0xa0   :  { %520 = vrot.lane.b32.xlu1 %v1959_v24, %s1893_s30 }
  0xa1   :  { %v2117_v39 = vpop.permute.xlu0 %166 }
  0xa2   :  { %v2115_v38 = vpop.permute.xlu1 %168 }
  0xa3   :  { %541 = vrot.lane.b32.xlu0 %v1949_v21, %s1893_s30 }
  0xa4   :  { %543 = vrot.lane.b32.xlu1 %v1967_v26, %s1893_s30 }
  0xa5   :  { %v2125_v41 = vpop.permute.xlu0 %170 }
  0xa6   :  { %v2123_v40 = vpop.permute.xlu1 %172 }
  0xa7   :  { %3798 = vst [vmem:[#allocation11_spill] sm:$0xff] %v2123_v40  ;;  %545 = vrot.lane.b32.xlu0 %v1957_v23, %s1893_s30 }
  0xa8   :  { %547 = vrot.lane.b32.xlu1 %v1973_v27, %s1893_s30 }
  0xa9   :  { %v2133_v43 = vpop.permute.xlu0 %193 }
  0xaa   :  { %v2131_v42 = vpop.permute.xlu1 %195 }
  0xab   :  { %1745 = vrot.lane.b32.xlu0 %v1941_v19, %s1894_s4 }
  0xac   :  { %572 = vrot.lane.b32.xlu1 %v1951_v22, %s1894_s4 }
  0xad   :  { %v2141_v45 = vpop.permute.xlu0 %197 }
  0xae   :  { %v2139_v44 = vpop.permute.xlu1 %199 }
  0xaf   :  { %3799 = vst [vmem:[#allocation12_spill] sm:$0xff] %v2139_v44  ;;  %574 = vrot.lane.b32.xlu0 %v1965_v25, %s1894_s4 }
  0xb0   :  { %576 = vrot.lane.b32.xlu1 %v1943_v20, %s1894_s4 }
  0xb1   :  { %v2149_v47 = vpop.permute.xlu0 %1715 }
  0xb2   :  { %v2147_v46 = vpop.permute.xlu1 %224 }
  0xb3   :  { %578 = vrot.lane.b32.xlu0 %v1959_v24, %s1894_s4 }
  0xb4   :  { %599 = vrot.lane.b32.xlu1 %v1949_v21, %s1894_s4 }
  0xb5   :  { %v2157_v49 = vpop.permute.xlu0 %226 }
  0xb6   :  { %v2155_v48 = vpop.permute.xlu1 %228 }
  0xb7   :  { %601 = vrot.lane.b32.xlu0 %v1967_v26, %s1894_s4 }
  0xb8   :  { %603 = vrot.lane.b32.xlu1 %v1957_v23, %s1894_s4 }
  0xb9   :  { %v2165_v51 = vpop.permute.xlu0 %230 }
  0xba   :  { %v2163_v50 = vpop.permute.xlu1 %251  ;;  %3800 = vst [vmem:[#allocation13_spill] sm:$0xff] %v2165_v51 }
  0xbb   :  { %605 = vrot.lane.b32.xlu0 %v1973_v27, %s1894_s4 }
  0xbc   :  { %1750 = vrot.lane.b32.xlu1 %v1941_v19, %s1895_s5 }
  0xbd   :  { %v2172_v53 = vpop.permute.xlu0 %253 }
  0xbe   :  { %v2170_v52 = vpop.permute.xlu1 %255 }
  0xbf   :  { %630 = vrot.lane.b32.xlu0 %v1951_v22, %s1895_s5 }
  0xc0   :  { %632 = vrot.lane.b32.xlu1 %v1965_v25, %s1895_s5 }
  0xc1   :  { %v2178_v55 = vpop.permute.xlu0 %257 }
  0xc2   :  { %v2176_v54 = vpop.permute.xlu1 %1720  ;;  %3801 = vst [vmem:[#allocation14_spill] sm:$0xff] %v2178_v55 }
  0xc3   :  { %634 = vrot.lane.b32.xlu0 %v1943_v20, %s1895_s5 }
  0xc4   :  { %636 = vrot.lane.b32.xlu1 %v1959_v24, %s1895_s5 }
  0xc5   :  { %v2184_v57 = vpop.permute.xlu0 %282 }
  0xc6   :  { %v2182_v56 = vpop.permute.xlu1 %284 }
  0xc7   :  { %657 = vrot.lane.b32.xlu0 %v1949_v21, %s1895_s5 }
  0xc8   :  { %659 = vrot.lane.b32.xlu1 %v1967_v26, %s1895_s5 }
  0xc9   :  { %v2190_v59 = vpop.permute.xlu0 %286 }
  0xca   :  { %v2188_v58 = vpop.permute.xlu1 %288 }
  0xcb   :  { %3802 = vst [vmem:[#allocation15_spill] sm:$0xff] %v2188_v58  ;;  %661 = vrot.lane.b32.xlu0 %v1957_v23, %s1895_s5 }
  0xcc   :  { %663 = vrot.lane.b32.xlu1 %v1973_v27, %s1895_s5 }
  0xcd   :  { %v2196_v61 = vpop.permute.xlu0 %309 }
  0xce   :  { %v2194_v60 = vpop.permute.xlu1 %311 }
  0xcf   :  { %1755 = vrot.lane.b32.xlu0 %v1941_v19, %s1896_s6 }
  0xd0   :  { %688 = vrot.lane.b32.xlu1 %v1951_v22, %s1896_s6 }
  0xd1   :  { %v2204_v63 = vpop.permute.xlu0 %313 }
  0xd2   :  { %v2202_v62 = vpop.permute.xlu1 %315 }
  0xd3   :  { %3803 = vst [vmem:[#allocation16_spill] sm:$0xff] %v2202_v62  ;;  %690 = vrot.lane.b32.xlu0 %v1965_v25, %s1896_s6 }
  0xd4   :  { %692 = vrot.lane.b32.xlu1 %v1943_v20, %s1896_s6 }
  0xd5   :  { %v2212_v1 = vpop.permute.xlu0 %1725 }
  0xd6   :  { %v2210_v0 = vpop.permute.xlu1 %340 }
  0xd7   :  { %694 = vrot.lane.b32.xlu0 %v1959_v24, %s1896_s6 }
  0xd8   :  { %715 = vrot.lane.b32.xlu1 %v1949_v21, %s1896_s6 }
  0xd9   :  { %v2220_v3 = vpop.permute.xlu0 %342 }
  0xda   :  { %v2218_v2 = vpop.permute.xlu1 %344 }
  0xdb   :  { %717 = vrot.lane.b32.xlu0 %v1967_v26, %s1896_s6 }
  0xdc   :  { %719 = vrot.lane.b32.xlu1 %v1957_v23, %s1896_s6 }
  0xdd   :  { %v2228_v5 = vpop.permute.xlu0 %346 }
  0xde   :  { %v2226_v4 = vpop.permute.xlu1 %367  ;;  %3805 = vst [vmem:[#allocation18_spill] sm:$0xff] %v2228_v5  ;;  %v2323_v5 = vsel %vm106_vm0, %v2083_v30, %v2101_v35 }
  0xdf   :  { %3804 = vst [vmem:[#allocation17_spill] sm:$0xff] %v2226_v4  ;;  %721 = vrot.lane.b32.xlu0 %v1973_v27, %s1896_s6  ;;  %3822 = vst [vmem:[#allocation35_spill] sm:$0xff] %v2323_v5 }
  0xe0   :  { %1760 = vrot.lane.b32.xlu1 %v1941_v19, %s1897_s7 }
  0xe1   :  { %v2235_v7 = vpop.permute.xlu0 %369 }
  0xe2   :  { %v2233_v6 = vpop.permute.xlu1 %371  ;;  %3807 = vst [vmem:[#allocation20_spill] sm:$0xff] %v2235_v7 }
  0xe3   :  { %3806 = vst [vmem:[#allocation19_spill] sm:$0xff] %v2233_v6  ;;  %746 = vrot.lane.b32.xlu0 %v1951_v22, %s1897_s7  ;;  %v83_v6 = vld [vmem:[%s3726_s1 + $0x8] sm:$0x3f] }
  0xe4   :  { %748 = vrot.lane.b32.xlu1 %v1965_v25, %s1897_s7 }
  0xe5   :  { %v2241_v9 = vpop.permute.xlu0 %373 }
  0xe6   :  { %v2239_v8 = vpop.permute.xlu1 %1730  ;;  %3809 = vst [vmem:[#allocation22_spill] sm:$0xff] %v2241_v9 }
  0xe7   :  { %3808 = vst [vmem:[#allocation21_spill] sm:$0xff] %v2239_v8  ;;  %750 = vrot.lane.b32.xlu0 %v1943_v20, %s1897_s7  ;;  %v84_v8 = vld [vmem:[%s3726_s1 + $0x10] sm:$0x3f] }
  0xe8   :  { %752 = vrot.lane.b32.xlu1 %v1959_v24, %s1897_s7 }
  0xe9   :  { %v2247_v11 = vpop.permute.xlu0 %398 }
  0xea   :  { %v2245_v10 = vpop.permute.xlu1 %400  ;;  %3811 = vst [vmem:[#allocation24_spill] sm:$0xff] %v2247_v11  ;;  %v1576_v11 = vld [vmem:[%s3726_s1 + $0x20] sm:$0x3f] }
  0xeb   :  { %3810 = vst [vmem:[#allocation23_spill] sm:$0xff] %v2245_v10  ;;  %773 = vrot.lane.b32.xlu0 %v1949_v21, %s1897_s7  ;;  %v910_v10 = vld [vmem:[#allocation2 + $0x58] sm:$0x3f] }
  0xec   :  { %775 = vrot.lane.b32.xlu1 %v1967_v26, %s1897_s7 }
  0xed   :  { %v2253_v13 = vpop.permute.xlu0 %402 }
  0xee   :  { %v2251_v12 = vpop.permute.xlu1 %404  ;;  %3813 = vst [vmem:[#allocation26_spill] sm:$0xff] %v2253_v13  ;;  %v881_v13 = vld [vmem:[#allocation2 + $0x28] sm:$0x3f] }
  0xef   :  { %3812 = vst [vmem:[#allocation25_spill] sm:$0xff] %v2251_v12  ;;  %777 = vrot.lane.b32.xlu0 %v1957_v23, %s1897_s7  ;;  %v107_v12 = vsel %vm106_vm0, %v1707_v18, %v2085_v31  ;;  %v175_v18 = vsel %vm174_vm1, %v1712_v16, %v2117_v39  ;;  %v2309_v16 = vsel %vm106_vm0, %v2085_v31, %v2099_v34 }
  0xf0   :  { %779 = vrot.lane.b32.xlu1 %v1973_v27, %s1897_s7  ;;  %3820 = vst [vmem:[#allocation33_spill] sm:$0xff] %v2309_v16  ;;  %v2327_v31 = vpack.i.bf16 %v910_v10, %v881_v13  ;;  %v116_v13 = vmul.f32 %v2309_v16, %v83_v6 }
  0xf1   :  { %v2259_v15 = vpop.permute.xlu0 %425 }
  0xf2   :  { %v2257_v14 = vpop.permute.xlu1 %427  ;;  %3815 = vst [vmem:[#allocation28_spill] sm:$0xff] %v2259_v15  ;;  %v143_v15 = vsel %vm106_vm0, %v1708_v17, %v2083_v30  ;;  %v1577_v17 = vld [vmem:[%s3726_s1 + $0x28] sm:$0x3f]  ;;  %3823 = vst [vmem:[#allocation36_spill] sm:$0xff] %v2327_v31  ;;  %v152_v31 = vmul.f32 %v2323_v5, %v83_v6  ;;  %v1717_v6 = vunpack.i.l.bf16 %v2149_v47 }
  0xf3   :  { %3814 = vst [vmem:[#allocation27_spill] sm:$0xff] %v2257_v14  ;;  %1765 = vrot.lane.b32.xlu0 %v1941_v19, %s1898_s8  ;;  %v82_v14 = vld [vmem:[%s3726_s1] sm:$0x3f]  ;;  %v85_v19 = vld [vmem:[%s3726_s1 + $0x18] sm:$0x3f] }
  0xf4   :  { %804 = vrot.lane.b32.xlu1 %v1951_v22, %s1898_s8  ;;  %v115_v7 = vmul.f32 %v107_v12, %v82_v14  ;;  %v183_v12 = vmul.f32 %v1576_v11, %v175_v18  ;;  %v1579_v18 = vld [vmem:[%s3726_s1 + $0x38] sm:$0x3f] }
  0xf5   :  { %v2277_v29 = vpop.permute.xlu0 %429 }
  0xf6   :  { %v2275_v9 = vpop.permute.xlu1 %431  ;;  %3817 = vst [vmem:[#allocation30_spill] sm:$0xff] %v2277_v29  ;;  %v2298_v29 = vsel %vm106_vm0, %v2075_v28, %v2093_v33  ;;  %v2318_v33 = vmul.f32 %v143_v15, %v82_v14 }
  0xf7   :  { %3816 = vst [vmem:[#allocation29_spill] sm:$0xff] %v2275_v9  ;;  %v2293_v9 = vsel %vm174_vm1, %v2117_v39, %v2115_v38  ;;  %3819 = vst [vmem:[#allocation32_spill] sm:$0xff] %v2298_v29  ;;  %v2314_v39 = vsel %vm106_vm0, %v2099_v34, %v2075_v28  ;;  %806 = vrot.lane.b32.xlu0 %v1965_v25, %s1898_s8  ;;  %v2332_v28 = vsel %vm106_vm0, %v2101_v35, %v2091_v32 }
  0xf8   :  { %3818 = vst [vmem:[#allocation31_spill] sm:$0xff] %v2293_v9  ;;  %3821 = vst [vmem:[#allocation34_spill] sm:$0xff] %v2314_v39  ;;  %808 = vrot.lane.b32.xlu1 %v1943_v20, %s1898_s8  ;;  %v2337_v34 = vsel %vm106_vm0, %v2091_v32, %v2109_v37  ;;  %v184_v14 = vmul.f32 %v1577_v17, %v2293_v9  ;;  %v118_v10 = vmul.f32 %v2298_v29, %v85_v19  ;;  %v1578_v32 = vld [vmem:[%s3726_s1 + $0x30] sm:$0x3f] }
  0xf9   :  { %3824 = vst [vmem:[#allocation37_spill] sm:$0xff] %v2332_v28  ;;  %3825 = vst [vmem:[#allocation38_spill] sm:$0xff] %v2337_v34  ;;  %v2342_v15 = vpop.permute.xlu0 %1735  ;;  %v117_v4 = vmul.f32 %v2314_v39, %v84_v8  ;;  %v1713_v35 = vunpack.i.h.bf16 %v2107_v36  ;;  %v2358_v37 = vsel %vm174_vm1, %v2115_v38, %v2125_v41  ;;  %v2363_v36 = vsel %vm174_vm1, %v2125_v41, %v2123_v40 }
  0xfa   :  { %v2340_v30 = vpop.permute.xlu1 %456  ;;  %3826 = vst [vmem:[#allocation39_spill] sm:$0xff] %v2358_v37  ;;  %3827 = vst [vmem:[#allocation40_spill] sm:$0xff] %v2363_v36  ;;  %v153_v9 = vmul.f32 %v2332_v28, %v84_v8  ;;  %v154_v5 = vmul.f32 %v2337_v34, %v85_v19  ;;  %v187_v38 = vadd.f32 %v183_v12, %v115_v7 }
  0xfb   :  { %v201_v39 = vsel %vm174_vm1, %v1713_v35, %v2133_v43  ;;  %810 = vrot.lane.b32.xlu0 %v1959_v24, %s1898_s8  ;;  %v188_v16 = vadd.f32 %v184_v14, %v116_v13  ;;  %v2377_v41 = vsel %vm174_vm1, %v2133_v43, %v2131_v42  ;;  %v2382_v40 = vsel %vm174_vm1, %v2131_v42, %v2141_v45  ;;  %v1581_v42 = vld [vmem:[%s3726_s1 + $0x48] sm:$0x3f]  ;;  %v1582_v14 = vld [vmem:[%s3726_s1 + $0x50] sm:$0x3f] }
  0xfc   :  { %831 = vrot.lane.b32.xlu1 %v1949_v21, %s1898_s8  ;;  %3828 = vst [vmem:[#allocation41_spill] sm:$0xff] %v2377_v41  ;;  %3829 = vst [vmem:[#allocation42_spill] sm:$0xff] %v2382_v40  ;;  %v185_v35 = vmul.f32 %v1578_v32, %v2358_v37  ;;  %v186_v34 = vmul.f32 %v1579_v18, %v2363_v36  ;;  %v2393_v7 = vsel %vm174_vm1, %v2141_v45, %v2139_v44 }
  0xfd   :  { %v2386_v19 = vpop.permute.xlu0 %458  ;;  %3830 = vst [vmem:[#allocation43_spill] sm:$0xff] %v2393_v7  ;;  %v1718_v43 = vunpack.i.h.bf16 %v2149_v47  ;;  %v209_v12 = vmul.f32 %v1576_v11, %v201_v39  ;;  %v2405_v13 = vsel %vm232_vm2, %v2147_v46, %v2157_v49  ;;  %v2410_v45 = vsel %vm232_vm2, %v2157_v49, %v2155_v48  ;;  %v1580_v47 = vld [vmem:[%s3726_s1 + $0x40] sm:$0x3f]  ;;  %v1583_v49 = vld [vmem:[%s3726_s1 + $0x58] sm:$0x3f] }
  0xfe   :  { %v2384_v8 = vpop.permute.xlu1 %460  ;;  %3831 = vst [vmem:[#allocation44_spill] sm:$0xff] %v2405_v13  ;;  %3832 = vst [vmem:[#allocation45_spill] sm:$0xff] %v2410_v45  ;;  %v233_v11 = vsel %vm232_vm2, %v1717_v6, %v2147_v46  ;;  %v210_v39 = vmul.f32 %v1577_v17, %v2377_v41  ;;  %v211_v44 = vmul.f32 %v1578_v32, %v2382_v40  ;;  %v1722_v6 = vunpack.i.l.bf16 %v2176_v54 }
  0xff   :  { %v259_v36 = vsel %vm232_vm2, %v1718_v43, %v2163_v50  ;;  %v2429_v37 = vsel %vm232_vm2, %v2155_v48, %v2165_v51  ;;  %833 = vrot.lane.b32.xlu0 %v1967_v26, %s1898_s8  ;;  %v212_v46 = vmul.f32 %v1579_v18, %v2393_v7  ;;  %v2437_v17 = vsel %vm232_vm2, %v2163_v50, %v2172_v53 }
 0x100   :  { %835 = vrot.lane.b32.xlu1 %v1957_v23, %s1898_s8  ;;  %v2442_v32 = vsel %vm232_vm2, %v2172_v53, %v2170_v52  ;;  %v242_v51 = vmul.f32 %v1581_v42, %v2405_v13  ;;  %v243_v18 = vmul.f32 %v1582_v14, %v2410_v45  ;;  %v241_v7 = vmul.f32 %v1580_v47, %v233_v11 }
 0x101   :  { %v2447_v48 = vpop.permute.xlu0 %462  ;;  %v2454_v50 = vsel %vm232_vm2, %v2170_v52, %v2178_v55  ;;  %v189_v40 = vadd.f32 %v185_v35, %v117_v4  ;;  %v190_v41 = vadd.f32 %v186_v34, %v118_v10  ;;  %v267_v53 = vmul.f32 %v1580_v47, %v259_v36  ;;  %v1584_v10 = vld [vmem:[%s3726_s1 + $0x60] sm:$0x3f]  ;;  %v1585_v47 = vld [vmem:[%s3726_s1 + $0x68] sm:$0x3f] }
 0x102   :  { %v2445_v43 = vpop.permute.xlu1 %483  ;;  %3833 = vst [vmem:[#allocation46_spill] sm:$0xff] %v2447_v48  ;;  %3834 = vst [vmem:[#allocation47_spill] sm:$0xff] %v2454_v50  ;;  %v244_v28 = vmul.f32 %v1583_v49, %v2429_v37  ;;  %v213_v29 = vadd.f32 %v209_v12, %v2318_v33  ;;  %v214_v13 = vadd.f32 %v210_v39, %v152_v31 }
 0x103   :  { %v268_v45 = vmul.f32 %v1581_v42, %v2437_v17  ;;  %v269_v11 = vmul.f32 %v1582_v14, %v2442_v32  ;;  %837 = vrot.lane.b32.xlu0 %v1973_v27, %s1898_s8  ;;  %v215_v52 = vadd.f32 %v211_v44, %v153_v9  ;;  %v216_v4 = vadd.f32 %v212_v46, %v154_v5  ;;  %s1902_s8 = smov 119  }
 0x104   :  { %883 = vrot.lane.b32.xlu1 %v1951_v22, %s1899_s15  ;;  %v270_v34 = vmul.f32 %v1583_v49, %v2454_v50  ;;  %v291_v33 = vsel %vm290_vm3, %v1722_v6, %v2184_v57  ;;  %v246_v35 = vadd.f32 %v242_v51, %v188_v16  ;;  %v247_v12 = vadd.f32 %v243_v18, %v189_v40  ;;  %v3868_v50 = vld [vmem:[#allocation30_spill] sm:$0xff] }
 0x105   :  { %v2472_v36 = vpop.permute.xlu0 %485  ;;  %v245_v42 = vadd.f32 %v241_v7, %v187_v38  ;;  %v1727_v14 = vunpack.i.l.bf16 %v2212_v1  ;;  %v271_v44 = vadd.f32 %v267_v53, %v213_v29  ;;  %v248_v5 = vadd.f32 %v244_v28, %v190_v41  ;;  %v1586_v29 = vld [vmem:[%s3726_s1 + $0x70] sm:$0x3f]  ;;  %v1587_v28 = vld [vmem:[%s3726_s1 + $0x78] sm:$0x3f] }
 0x106   :  { %v2470_v31 = vpop.permute.xlu1 %487  ;;  %v1723_v9 = vunpack.i.h.bf16 %v2176_v54  ;;  %v2482_v39 = vsel %vm290_vm3, %v2184_v57, %v2182_v56  ;;  %v272_v40 = vadd.f32 %v268_v45, %v214_v13  ;;  %v273_v51 = vadd.f32 %v269_v11, %v215_v52 }
 0x107   :  { %3835 = vst [vmem:[#allocation48_spill] sm:$0xff] %v2482_v39  ;;  %v299_v16 = vmul.f32 %v1584_v10, %v291_v33  ;;  %v2492_v54 = vsel %vm290_vm3, %v2182_v56, %v2190_v59  ;;  %885 = vrot.lane.b32.xlu0 %v1965_v25, %s1899_s15  ;;  %v274_v57 = vadd.f32 %v270_v34, %v216_v4  ;;  %v1728_v18 = vunpack.i.h.bf16 %v2212_v1  ;;  %v3844_v1 = vld [vmem:[#allocation36_spill] sm:$0xff] }
 0x108   :  { %887 = vrot.lane.b32.xlu1 %v1943_v20, %s1899_s15  ;;  %3836 = vst [vmem:[#allocation49_spill] sm:$0xff] %v2492_v54  ;;  %v2502_v38 = vsel %vm290_vm3, %v2190_v59, %v2188_v58  ;;  %v317_v41 = vsel %vm290_vm3, %v1723_v9, %v2196_v61  ;;  %v2509_v56 = vsel %vm290_vm3, %v2196_v61, %v2194_v60  ;;  %v1588_v61 = vld [vmem:[%s3726_s1 + $0x80] sm:$0x3f]  ;;  %v3845_v58 = vld [vmem:[#allocation17_spill] sm:$0xff] }
 0x109   :  { %3837 = vst [vmem:[#allocation50_spill] sm:$0xff] %v2502_v38  ;;  %3838 = vst [vmem:[#allocation51_spill] sm:$0xff] %v2509_v56  ;;  %v2513_v13 = vpop.permute.xlu0 %489  ;;  %v300_v45 = vmul.f32 %v1585_v47, %v2482_v39  ;;  %v2519_v49 = vsel %vm290_vm3, %v2194_v60, %v2204_v63  ;;  %v2524_v59 = vsel %vm290_vm3, %v2204_v63, %v2202_v62  ;;  %v1589_v60 = vld [vmem:[%s3726_s1 + $0x88] sm:$0x3f]  ;;  %v1590_v63 = vld [vmem:[%s3726_s1 + $0x90] sm:$0x3f] }
 0x10a   :  { %v2511_v7 = vpop.permute.xlu1 %1740  ;;  %3839 = vst [vmem:[#allocation52_spill] sm:$0xff] %v2513_v13  ;;  %3840 = vst [vmem:[#allocation53_spill] sm:$0xff] %v2519_v49  ;;  %v349_v46 = vsel %vm348_vm4, %v1727_v14, %v2210_v0  ;;  %v301_v6 = vmul.f32 %v1586_v29, %v2492_v54  ;;  %v2542_v53 = vsel %vm348_vm4, %v2210_v0, %v2220_v3 }
 0x10b   :  { %3841 = vst [vmem:[#allocation54_spill] sm:$0xff] %v2524_v59  ;;  %3842 = vst [vmem:[#allocation55_spill] sm:$0xff] %v2542_v53  ;;  %v2547_v11 = vsel %vm348_vm4, %v2220_v3, %v2218_v2  ;;  %v303_v52 = vadd.f32 %v299_v16, %v245_v42  ;;  %v302_v4 = vmul.f32 %v1587_v28, %v2502_v38  ;;  %889 = vrot.lane.b32.xlu0 %v1959_v24, %s1899_s15 }
 0x10c   :  { %3843 = vst [vmem:[#allocation56_spill] sm:$0xff] %v2547_v11  ;;  %1770 = vrot.lane.b32.xlu1 %v3844_v1, %s1899_s15  ;;  %v325_v34 = vmul.f32 %v1584_v10, %v317_v41  ;;  %v326_v33 = vmul.f32 %v1585_v47, %v2509_v56  ;;  %v327_v0 = vmul.f32 %v1586_v29, %v2519_v49  ;;  %v1591_v10 = vld [vmem:[%s3726_s1 + $0x98] sm:$0x3f]  ;;  %v3851_v56 = vld [vmem:[#allocation19_spill] sm:$0xff] }
 0x10d   :  { %v328_v14 = vmul.f32 %v1587_v28, %v2524_v59  ;;  %v357_v9 = vmul.f32 %v1588_v61, %v349_v46  ;;  %v375_v3 = vsel %vm348_vm4, %v1728_v18, %v3845_v58  ;;  %v358_v42 = vmul.f32 %v1589_v60, %v2542_v53  ;;  %v3846_v47 = vld [vmem:[#allocation18_spill] sm:$0xff]  ;;  %v3848_v28 = vld [vmem:[#allocation20_spill] sm:$0xff]  ;;  %v2574_v46 = vpop.permute.xlu0 %514  ;;  %v3850_v53 = vld [vmem:[#allocation21_spill] sm:$0xff] }
 0x10e   :  { %v517_v62 = vpop.permute.xlu1 %516  ;;  %v359_v16 = vmul.f32 %v1590_v63, %v2547_v11  ;;  %v2567_v29 = vsel %vm348_vm4, %v2218_v2, %v3846_v47  ;;  %v2572_v41 = vsel %vm348_vm4, %v3845_v58, %v3848_v28  ;;  %v304_v18 = vadd.f32 %v300_v45, %v246_v35 }
 0x10f   :  { %3847 = vst [vmem:[#allocation36_spill] sm:$0xff] %v2567_v29  ;;  %3849 = vst [vmem:[#allocation17_spill] sm:$0xff] %v2572_v41  ;;  %v305_v55 = vadd.f32 %v301_v6, %v247_v12  ;;  %v1732_v11 = vunpack.i.l.bf16 %v3850_v53  ;;  %v2579_v59 = vsel %vm522_vm5, %v2574_v46, %v517_v62  ;;  %v306_v2 = vadd.f32 %v302_v4, %v248_v5 }
 0x110   :  { %914 = vrot.lane.b32.xlu1 %v1967_v26, %s1899_s15  ;;  %v329_v47 = vadd.f32 %v325_v34, %v271_v44  ;;  %v383_v49 = vmul.f32 %v1588_v61, %v375_v3  ;;  %v2586_v58 = vsel %vm348_vm4, %v3848_v28, %v3851_v56  ;;  %912 = vrot.lane.b32.xlu0 %v1949_v21, %s1899_s15  ;;  %v1737_v3 = vunpack.i.l.bf16 %v2342_v15 }
 0x111   :  { %3852 = vst [vmem:[#allocation20_spill] sm:$0xff] %v2586_v58  ;;  %v330_v35 = vadd.f32 %v326_v33, %v272_v40  ;;  %v331_v12 = vadd.f32 %v327_v0, %v273_v51  ;;  %v360_v45 = vmul.f32 %v1591_v10, %v2567_v29  ;;  %v384_v6 = vmul.f32 %v1589_v60, %v2572_v41  ;;  %v2596_v4 = vpop.permute.xlu0 %518  ;;  %v1592_v40 = vld [vmem:[%s3726_s1 + $0xa0] sm:$0x3f]  ;;  %v1593_v51 = vld [vmem:[%s3726_s1 + $0xa8] sm:$0x3f] }
 0x112   :  { %v2592_v38 = vpop.permute.xlu1 %520  ;;  %v2594_v54 = vadd.f32 %v328_v14, %v274_v57  ;;  %v362_v44 = vadd.f32 %v358_v42, %v304_v18  ;;  %v363_v5 = vadd.f32 %v359_v16, %v305_v55  ;;  %v361_v61 = vadd.f32 %v357_v9, %v303_v52  ;;  %v3854_v60 = vld [vmem:[#allocation24_spill] sm:$0xff]  ;;  %v3855_v57 = vld [vmem:[#allocation23_spill] sm:$0xff]  ;;  %v1594_v14 = vld [vmem:[%s3726_s1 + $0xb0] sm:$0x3f] }
 0x113   :  { %3853 = vst [vmem:[#allocation21_spill] sm:$0xff] %v2592_v38  ;;  %v385_v34 = vmul.f32 %v1590_v63, %v2586_v58  ;;  %v407_v33 = vsel %vm406_vm6, %v1732_v11, %v3854_v60  ;;  %v2610_v55 = vsel %vm406_vm6, %v3854_v60, %v3855_v57  ;;  %v2614_v52 = vsel %vm522_vm5, %v517_v62, %v2596_v4  ;;  %v3857_v11 = vld [vmem:[#allocation26_spill] sm:$0xff]  ;;  %v2686_v41 = vld [vmem:[%s3726_s1 + $0xd0] sm:$0x3f] }
 0x114   :  { %3856 = vst [vmem:[#allocation19_spill] sm:$0xff] %v2610_v55  ;;  %918 = vrot.lane.b32.xlu1 %v1973_v27, %s1899_s15  ;;  %v387_v63 = vadd.f32 %v383_v49, %v329_v47  ;;  %v1733_v0 = vunpack.i.h.bf16 %v3850_v53  ;;  %v2625_v9 = vsel %vm406_vm6, %v3855_v57, %v3857_v11  ;;  %916 = vrot.lane.b32.xlu0 %v1957_v23, %s1899_s15  ;;  %v3859_v16 = vld [vmem:[#allocation22_spill] sm:$0xff]  ;;  %v3861_v47 = vld [vmem:[#allocation25_spill] sm:$0xff]  ;;  %s1900_s15 = smov 121  }
 0x115   :  { %3858 = vst [vmem:[#allocation24_spill] sm:$0xff] %v2625_v9  ;;  %v364_v62 = vadd.f32 %v360_v45, %v306_v2  ;;  %v388_v42 = vadd.f32 %v384_v6, %v330_v35  ;;  %v2633_v49 = vsel %vm348_vm4, %v3851_v56, %v3859_v16  ;;  %v1595_v53 = vld [vmem:[%s3726_s1 + $0xb8] sm:$0x3f]  ;;  %v2641_v28 = vsel %vm406_vm6, %v3857_v11, %v3861_v47  ;;  %v3863_v2 = vld [vmem:[#allocation28_spill] sm:$0xff]  ;;  %v3864_v45 = vld [vmem:[#allocation27_spill] sm:$0xff]  ;;  %v542_v6 = vpop.permute.xlu0 %541 }
 0x116   :  { %3860 = vst [vmem:[#allocation23_spill] sm:$0xff] %v2633_v49  ;;  %3862 = vst [vmem:[#allocation26_spill] sm:$0xff] %v2641_v28  ;;  %v544_v18 = vpop.permute.xlu1 %543  ;;  %v415_v60 = vmul.f32 %v1592_v40, %v407_v33  ;;  %v416_v57 = vmul.f32 %v1593_v51, %v2610_v55  ;;  %v433_v35 = vsel %vm406_vm6, %v1733_v0, %v3863_v2  ;;  %v1742_v11 = vunpack.i.l.bf16 %v2511_v7  ;;  %v1596_v47 = vld [vmem:[%s3726_s1 + $0xc0] sm:$0x3f] }
 0x117   :  { %v2649_v56 = vsel %vm406_vm6, %v3863_v2, %v3864_v45  ;;  %v2651_v16 = vadd.f32 %v385_v34, %v331_v12  ;;  %v417_v58 = vmul.f32 %v1594_v14, %v2625_v9  ;;  %v2656_v33 = vsel %vm522_vm5, %v542_v6, %v544_v18  ;;  %v2665_v12 = vld [vmem:[%s3726_s1 + $0xc8] sm:$0x3f] }
 0x118   :  { %3865 = vst [vmem:[#allocation28_spill] sm:$0xff] %v2649_v56  ;;  %945 = vrot.lane.b32.xlu1 %v1965_v25, %s1900_s15  ;;  %v418_v0 = vmul.f32 %v1595_v53, %v2641_v28  ;;  %v1738_v2 = vunpack.i.h.bf16 %v2342_v15  ;;  %v2670_v34 = vsel %vm464_vm7, %v2340_v30, %v2386_v19  ;;  %v465_v9 = vsel %vm464_vm7, %v1737_v3, %v2340_v30 }
 0x119   :  { %3866 = vst [vmem:[#allocation27_spill] sm:$0xff] %v2670_v34  ;;  %943 = vrot.lane.b32.xlu0 %v1951_v22, %s1900_s15  ;;  %v2680_v15 = vmul.f32 %v1591_v10, %v2633_v49  ;;  %v441_v28 = vmul.f32 %v1592_v40, %v433_v35  ;;  %v442_v55 = vmul.f32 %v1593_v51, %v2649_v56  ;;  %v2702_v51 = vpop.permute.xlu0 %545 }
 0x11a   :  { %v2691_v29 = vsel %vm464_vm7, %v2386_v19, %v2384_v8  ;;  %v2693_v30 = vpop.permute.xlu1 %547  ;;  %v419_v3 = vadd.f32 %v415_v60, %v361_v61  ;;  %v420_v39 = vadd.f32 %v416_v57, %v362_v44  ;;  %v2698_v10 = vsel %vm406_vm6, %v3864_v45, %v3868_v50  ;;  %v1600_v19 = vld [vmem:[%s3726_s1 + $0xe0] sm:$0x3f]  ;;  %v2712_v44 = vld [vmem:[%s3726_s1 + $0xe8] sm:$0x3f]  ;;  %v3869_v45 = vld [vmem:[#allocation29_spill] sm:$0xff] }
 0x11b   :  { %3867 = vst [vmem:[#allocation57_spill] sm:$0xff] %v2693_v30  ;;  %v491_v40 = vsel %vm464_vm7, %v1738_v2, %v2445_v43  ;;  %v474_v35 = vmul.f32 %v2665_v12, %v2670_v34  ;;  %v473_v56 = vmul.f32 %v1596_v47, %v465_v9  ;;  %v523_v61 = vsel %vm522_vm5, %v1742_v11, %v2574_v46 }
 0x11c   :  { %v2718_v60 = vsel %vm522_vm5, %v544_v18, %v2702_v51  ;;  %949 = vrot.lane.b32.xlu1 %v1959_v24, %s1900_s15  ;;  %v421_v9 = vadd.f32 %v417_v58, %v363_v5  ;;  %v422_v57 = vadd.f32 %v418_v0, %v364_v62  ;;  %v2725_v2 = vsel %vm406_vm6, %v3868_v50, %v3869_v45  ;;  %v1602_v24 = vld [vmem:[%s3726_s1 + $0xf0] sm:$0x3f]  ;;  %v2740_v50 = vld [vmem:[%s3726_s1 + $0xd8] sm:$0x3f] }
 0x11d   :  { %v475_v34 = vmul.f32 %v2686_v41, %v2691_v29  ;;  %947 = vrot.lane.b32.xlu0 %v1943_v20, %s1900_s15  ;;  %v445_v46 = vadd.f32 %v441_v28, %v387_v63  ;;  %v2731_v11 = vadd.f32 %v442_v55, %v388_v42  ;;  %v443_v18 = vmul.f32 %v1594_v14, %v2698_v10  ;;  %v1746_v14 = vpop.permute.xlu0 %1745 }
 0x11e   :  { %v499_v49 = vmul.f32 %v1596_v47, %v491_v40  ;;  %v573_v58 = vpop.permute.xlu1 %572  ;;  %v2745_v20 = vsel %vm464_vm7, %v2384_v8, %v2447_v48  ;;  %v1743_v5 = vunpack.i.h.bf16 %v2511_v7  ;;  %v531_v55 = vmul.f32 %v1600_v19, %v523_v61  ;;  %v1604_v8 = vld [vmem:[%s3726_s1 + $0x100] sm:$0x3f]  ;;  %v2761_v7 = vld [vmem:[%s3726_s1 + $0xf8] sm:$0x3f] }
 0x11f   :  { %v532_v63 = vmul.f32 %v2712_v44, %v2579_v59  ;;  %v2751_v62 = vmul.f32 %v1595_v53, %v2725_v2  ;;  %v478_v42 = vadd.f32 %v474_v35, %v420_v39  ;;  %v477_v47 = vadd.f32 %v473_v56, %v419_v3 }
 0x120   :  { %v1747_v28 = vunpack.i.l.bf16 %v1746_v14  ;;  %970 = vrot.lane.b32.xlu1 %v1949_v21, %s1900_s15  ;;  %v479_v0 = vadd.f32 %v475_v34, %v421_v9  ;;  %v2766_v53 = vsel %vm522_vm5, %v2596_v4, %v2592_v38  ;;  %v533_v39 = vmul.f32 %v1602_v24, %v2614_v52  ;;  %v1605_v4 = vld [vmem:[%s3726_s1 + $0x108] sm:$0x3f] }
 0x121   :  { %v549_v56 = vsel %vm522_vm5, %v1743_v5, %v542_v6  ;;  %1775 = vrot.lane.b32.xlu0 %v3844_v1, %s1900_s15  ;;  %v503_v21 = vadd.f32 %v499_v49, %v445_v46  ;;  %v476_v34 = vmul.f32 %v2740_v50, %v2745_v20  ;;  %v2777_v3 = vsel %vm464_vm7, %v2445_v43, %v2472_v36  ;;  %v1606_v6 = vld [vmem:[%s3726_s1 + $0x110] sm:$0x3f]  ;;  %v575_v43 = vpop.permute.xlu0 %574 }
 0x122   :  { %v577_v40 = vpop.permute.xlu1 %576  ;;  %v581_v35 = vsel %vm580_vm8, %v1747_v28, %v573_v58  ;;  %v2789_v49 = vsel %vm464_vm7, %v2472_v36, %v2470_v31  ;;  %v535_v61 = vadd.f32 %v531_v55, %v477_v47  ;;  %v536_v9 = vadd.f32 %v532_v63, %v478_v42 }
 0x123   :  { %v589_v46 = vmul.f32 %v1604_v8, %v581_v35  ;;  %v534_v5 = vmul.f32 %v2761_v7, %v2766_v53  ;;  %v557_v38 = vmul.f32 %v1600_v19, %v549_v56  ;;  %v2794_v45 = vsel %vm580_vm8, %v573_v58, %v575_v43 }
 0x124   :  { %v2797_v48 = vsel %vm580_vm8, %v575_v43, %v577_v40  ;;  %974 = vrot.lane.b32.xlu1 %v1957_v23, %s1900_s15  ;;  %v537_v28 = vadd.f32 %v533_v39, %v479_v0  ;;  %v1748_v36 = vunpack.i.h.bf16 %v1746_v14  ;;  %v590_v55 = vmul.f32 %v1605_v4, %v2794_v45  ;;  %v1607_v23 = vld [vmem:[%s3726_s1 + $0x118] sm:$0x3f] }
 0x125   :  { %v591_v63 = vmul.f32 %v1606_v6, %v2797_v48  ;;  %972 = vrot.lane.b32.xlu0 %v1967_v26, %s1900_s15  ;;  %v480_v42 = vadd.f32 %v476_v34, %v422_v57  ;;  %v500_v19 = vmul.f32 %v2665_v12, %v2777_v3  ;;  %v501_v58 = vmul.f32 %v2686_v41, %v2789_v49  ;;  %v2824_v39 = vpop.permute.xlu0 %578 }
 0x126   :  { %v600_v47 = vpop.permute.xlu1 %599  ;;  %v2812_v14 = vadd.f32 %v589_v46, %v535_v61  ;;  %v2817_v0 = vsel %vm464_vm7, %v2470_v31, %v2513_v13  ;;  %v2819_v26 = vadd.f32 %v590_v55, %v536_v9  ;;  %3870 = vst [vmem:[#allocation30_spill] sm:$0xff] %v2824_v39  ;;  %v558_v41 = vmul.f32 %v2712_v44, %v2656_v33 }
 0x127   :  { %v2821_v57 = vadd.f32 %v591_v63, %v537_v28  ;;  %v607_v12 = vsel %vm580_vm8, %v1748_v36, %v600_v47  ;;  %v561_v56 = vadd.f32 %v557_v38, %v503_v21  ;;  %v2830_v35 = vsel %vm580_vm8, %v577_v40, %v2824_v39  ;;  %v3886_v39 = vld [vmem:[#allocation34_spill] sm:$0xff] }
 0x128   :  { %v615_v34 = vmul.f32 %v1604_v8, %v607_v12  ;;  %1001 = vrot.lane.b32.xlu1 %v1951_v22, %s1901_s9  ;;  %v447_v31 = vadd.f32 %v443_v18, %v2651_v16  ;;  %v538_v61 = vadd.f32 %v534_v5, %v480_v42  ;;  %v559_v9 = vmul.f32 %v1602_v24, %v2718_v60  ;;  %v1609_v12 = vld [vmem:[%s3726_s1 + $0x128] sm:$0x3f] }
 0x129   :  { %v592_v43 = vmul.f32 %v1607_v23, %v2830_v35  ;;  %976 = vrot.lane.b32.xlu0 %v1973_v27, %s1900_s15  ;;  %v390_v38 = vadd.f32 %v2680_v15, %v2594_v54  ;;  %v504_v44 = vadd.f32 %v500_v19, %v2731_v11  ;;  %v2845_v8 = vsel %vm522_vm5, %v2702_v51, %v2693_v30  ;;  %v602_v40 = vpop.permute.xlu0 %601  ;;  %v2858_v51 = vld [vmem:[#allocation2 + $0x18] sm:$0x3f] }
 0x12a   :  { %v2847_v22 = vadd.f32 %v615_v34, %v561_v56  ;;  %v604_v16 = vpop.permute.xlu1 %603  ;;  %v505_v18 = vadd.f32 %v501_v58, %v447_v31  ;;  %v502_v24 = vmul.f32 %v2740_v50, %v2817_v0  ;;  %v2853_v54 = vsel %vm580_vm8, %v600_v47, %v602_v40  ;;  %v1608_v47 = vld [vmem:[%s3726_s1 + $0x120] sm:$0x3f] }
 0x12b   :  { %v596_v21 = vadd.f32 %v592_v43, %v538_v61  ;;  %v448_v27 = vadd.f32 %v2751_v62, %v390_v38  ;;  %v562_v46 = vadd.f32 %v558_v41, %v504_v44  ;;  %v2856_v15 = vsel %vm580_vm8, %v602_v40, %v604_v16  ;;  %v2889_v31 = vld [vmem:[#allocation2 + $0x40] sm:$0x3f]  ;;  %v2893_v43 = vld [vmem:[#allocation2 + $0x38] sm:$0x3f]  ;;  %v1610_v44 = vld [vmem:[%s3726_s1 + $0x130] sm:$0x3f] }
 0x12c   :  { %1005 = vrot.lane.b32.xlu1 %v2858_v51, %s1901_s9  ;;  %v560_v11 = vmul.f32 %v2761_v7, %v2845_v8  ;;  %v563_v50 = vadd.f32 %v559_v9, %v505_v18  ;;  %v616_v5 = vmul.f32 %v1605_v4, %v2853_v54  ;;  %v617_v62 = vmul.f32 %v1606_v6, %v2856_v15  ;;  %v2877_v6 = vld [vmem:[#allocation2 + $0x20] sm:$0x3f] }
 0x12d   :  { %1003 = vrot.lane.b32.xlu0 %v1965_v25, %s1901_s9  ;;  %v506_v36 = vadd.f32 %v502_v24, %v448_v27  ;;  %v2868_v42 = vpop.permute.xlu0 %605 }
 0x12e   :  { %v1751_v28 = vpop.permute.xlu1 %1750  ;;  %v620_v55 = vadd.f32 %v616_v5, %v562_v46  ;;  %v621_v63 = vadd.f32 %v617_v62, %v563_v50  ;;  %3871 = vst [vmem:[#allocation58_spill] sm:$0xff] %v2868_v42  ;;  %v2872_v58 = vsel %vm580_vm8, %v604_v16, %v2868_v42  ;;  %v1611_v16 = vld [vmem:[%s3726_s1 + $0x138] sm:$0x3f]  ;;  %v2911_v62 = vld [vmem:[#allocation2 + $0x48] sm:$0x3f] }
 0x12f   :  { %v1752_v19 = vunpack.i.l.bf16 %v1751_v28  ;;  %v564_v7 = vadd.f32 %v560_v11, %v506_v36  ;;  %v618_v4 = vmul.f32 %v1607_v23, %v2872_v58  ;;  %v2907_v11 = vld [vmem:[#allocation2 + $0x50] sm:$0x3f] }
 0x130   :  { %1780 = vrot.lane.b32.xlu1 %v3844_v1, %s1901_s9 }
 0x131   :  { %1007 = vrot.lane.b32.xlu0 %v2877_v6, %s1901_s9  ;;  %v622_v41 = vadd.f32 %v618_v4, %v564_v7  ;;  %v631_v56 = vpop.permute.xlu0 %630 }
 0x132   :  { %v633_v25 = vpop.permute.xlu1 %632  ;;  %v639_v34 = vsel %vm638_vm9, %v1752_v19, %v631_v56 }
 0x133   :  { %v640_v23 = vsel %vm638_vm9, %v631_v56, %v633_v25  ;;  %v647_v61 = vmul.f32 %v1608_v47, %v639_v34  ;;  %v2918_v56 = vld [vmem:[#allocation2 + $0x10] sm:$0x3f] }
 0x134   :  { %1030 = vrot.lane.b32.xlu1 %v2889_v31, %s1901_s9  ;;  %v648_v9 = vmul.f32 %v1609_v12, %v640_v23 }
 0x135   :  { %1028 = vrot.lane.b32.xlu0 %v2893_v43, %s1901_s9  ;;  %v651_v18 = vadd.f32 %v647_v61, %v2812_v14  ;;  %v635_v40 = vpop.permute.xlu0 %634  ;;  %v1753_v14 = vunpack.i.h.bf16 %v1751_v28  ;;  %v2922_v61 = vld [vmem:[#allocation2 + $0x8] sm:$0x3f] }
 0x136   :  { %v637_v38 = vpop.permute.xlu1 %636  ;;  %v652_v24 = vadd.f32 %v648_v9, %v2819_v26  ;;  %v641_v27 = vsel %vm638_vm9, %v633_v25, %v635_v40 }
 0x137   :  { %v642_v46 = vsel %vm638_vm9, %v635_v40, %v637_v38  ;;  %v649_v50 = vmul.f32 %v1610_v44, %v641_v27 }
 0x138   :  { %1034 = vrot.lane.b32.xlu1 %v2907_v11, %s1901_s9  ;;  %v650_v5 = vmul.f32 %v1611_v16, %v642_v46 }
 0x139   :  { %1032 = vrot.lane.b32.xlu0 %v2911_v62, %s1901_s9  ;;  %v653_v26 = vadd.f32 %v649_v50, %v2821_v57  ;;  %v658_v7 = vpop.permute.xlu0 %657 }
 0x13a   :  { %v660_v36 = vpop.permute.xlu1 %659  ;;  %v654_v19 = vadd.f32 %v650_v5, %v596_v21  ;;  %v665_v4 = vsel %vm638_vm9, %v1753_v14, %v658_v7 }
 0x13b   :  { %v666_v25 = vsel %vm638_vm9, %v658_v7, %v660_v36  ;;  %v673_v34 = vmul.f32 %v1608_v47, %v665_v4 }
 0x13c   :  { %1061 = vrot.lane.b32.xlu1 %v2918_v56, %s1902_s8  ;;  %v674_v23 = vmul.f32 %v1609_v12, %v666_v25 }
 0x13d   :  { %1059 = vrot.lane.b32.xlu0 %v2922_v61, %s1902_s8  ;;  %v677_v21 = vadd.f32 %v673_v34, %v2847_v22  ;;  %v662_v9 = vpop.permute.xlu0 %661 }
 0x13e   :  { %v664_v57 = vpop.permute.xlu1 %663  ;;  %v678_v28 = vadd.f32 %v674_v23, %v620_v55  ;;  %v667_v38 = vsel %vm638_vm9, %v660_v36, %v662_v9  ;;  %v1612_v55 = vld [vmem:[%s3726_s1 + $0x140] sm:$0x3f] }
 0x13f   :  { %v668_v40 = vsel %vm638_vm9, %v662_v9, %v664_v57  ;;  %v675_v27 = vmul.f32 %v1610_v44, %v667_v38  ;;  %v1615_v38 = vld [vmem:[%s3726_s1 + $0x158] sm:$0x3f]  ;;  %vm1069_vm9 = vcmask 973824  }
 0x140   :  { %1065 = vrot.lane.b32.xlu1 %v2877_v6, %s1902_s8  ;;  %v676_v47 = vmul.f32 %v1611_v16, %v668_v40  ;;  %v1613_v16 = vld [vmem:[%s3726_s1 + $0x148] sm:$0x3f] }
 0x141   :  { %1063 = vrot.lane.b32.xlu0 %v2858_v51, %s1902_s8  ;;  %v679_v46 = vadd.f32 %v675_v27, %v621_v63  ;;  %v1756_v5 = vpop.permute.xlu0 %1755  ;;  %v1614_v63 = vld [vmem:[%s3726_s1 + $0x150] sm:$0x3f] }
 0x142   :  { %v689_v12 = vpop.permute.xlu1 %688  ;;  %v680_v50 = vadd.f32 %v676_v47, %v622_v41  ;;  %v1757_v22 = vunpack.i.l.bf16 %v1756_v5  ;;  %v1758_v25 = vunpack.i.h.bf16 %v1756_v5 }
 0x144   :  { %1086 = vrot.lane.b32.xlu1 %v2893_v43, %s1902_s8  ;;  %v697_v41 = vsel %vm696_vm10, %v1757_v22, %v689_v12 }
 0x145   :  { %1785 = vrot.lane.b32.xlu0 %v3844_v1, %s1902_s8  ;;  %v691_v14 = vpop.permute.xlu0 %690  ;;  %v705_v36 = vmul.f32 %v1612_v55, %v697_v41 }
 0x146   :  { %v693_v44 = vpop.permute.xlu1 %692  ;;  %v698_v7 = vsel %vm696_vm10, %v689_v12, %v691_v14 }
 0x147   :  { %v699_v4 = vsel %vm696_vm10, %v691_v14, %v693_v44  ;;  %v706_v34 = vmul.f32 %v1613_v16, %v698_v7  ;;  %v709_v57 = vadd.f32 %v705_v36, %v651_v18 }
 0x148   :  { %1090 = vrot.lane.b32.xlu1 %v2911_v62, %s1902_s8  ;;  %v707_v23 = vmul.f32 %v1614_v63, %v699_v4 }
 0x149   :  { %1088 = vrot.lane.b32.xlu0 %v2889_v31, %s1902_s8  ;;  %v710_v40 = vadd.f32 %v706_v34, %v652_v24  ;;  %v695_v12 = vpop.permute.xlu0 %694 }
 0x14a   :  { %v716_v9 = vpop.permute.xlu1 %715  ;;  %v711_v27 = vadd.f32 %v707_v23, %v653_v26  ;;  %v700_v41 = vsel %vm696_vm10, %v693_v44, %v695_v12 }
 0x14b   :  { %v723_v47 = vsel %vm696_vm10, %v1758_v25, %v716_v9  ;;  %v708_v5 = vmul.f32 %v1615_v38, %v700_v41 }
 0x14c   :  { %v731_v22 = vmul.f32 %v1612_v55, %v723_v47  ;;  %1790 = vrot.lane.b32.xlu1 %v3844_v1, %s1886_s2 }
 0x14d   :  { %1092 = vrot.lane.b32.xlu0 %v2907_v11, %s1902_s8  ;;  %v712_v36 = vadd.f32 %v708_v5, %v654_v19  ;;  %v718_v7 = vpop.permute.xlu0 %717 }
 0x14e   :  { %v735_v18 = vadd.f32 %v731_v22, %v677_v21  ;;  %v720_v14 = vpop.permute.xlu1 %719  ;;  %v724_v24 = vsel %vm696_vm10, %v716_v9, %v718_v7 }
 0x14f   :  { %v725_v26 = vsel %vm696_vm10, %v718_v7, %v720_v14  ;;  %v732_v55 = vmul.f32 %v1613_v16, %v724_v24 }
 0x150   :  { %1800 = vrot.lane.b32.xlu1 %v3844_v1, %s1888_s25  ;;  %v733_v44 = vmul.f32 %v1614_v63, %v725_v26  ;;  %v1616_v63 = vld [vmem:[%s3726_s1 + $0x160] sm:$0x3f] }
 0x151   :  { %1795 = vrot.lane.b32.xlu0 %v3844_v1, %s1887_s24  ;;  %v736_v25 = vadd.f32 %v732_v55, %v678_v28  ;;  %v722_v23 = vpop.permute.xlu0 %721  ;;  %v1617_v28 = vld [vmem:[%s3726_s1 + $0x168] sm:$0x3f] }
 0x152   :  { %v1761_v4 = vpop.permute.xlu1 %1760  ;;  %v737_v34 = vadd.f32 %v733_v44, %v679_v46  ;;  %v726_v19 = vsel %vm696_vm10, %v720_v14, %v722_v23  ;;  %v1618_v14 = vld [vmem:[%s3726_s1 + $0x170] sm:$0x3f] }
 0x153   :  { %v1762_v21 = vunpack.i.l.bf16 %v1761_v4  ;;  %v734_v9 = vmul.f32 %v1615_v38, %v726_v19  ;;  %v1763_v19 = vunpack.i.h.bf16 %v1761_v4 }
 0x154   :  { %1810 = vrot.lane.b32.xlu1 %v3844_v1, %s1890_s27 }
 0x155   :  { %1805 = vrot.lane.b32.xlu0 %v3844_v1, %s1889_s26  ;;  %v738_v46 = vadd.f32 %v734_v9, %v680_v50  ;;  %v747_v47 = vpop.permute.xlu0 %746  ;;  %v1619_v50 = vld [vmem:[%s3726_s1 + $0x178] sm:$0x3f] }
 0x156   :  { %v749_v16 = vpop.permute.xlu1 %748  ;;  %v755_v12 = vsel %vm754_vm11, %v1762_v21, %v747_v47 }
 0x157   :  { %v756_v22 = vsel %vm754_vm11, %v747_v47, %v749_v16  ;;  %v763_v38 = vmul.f32 %v1616_v63, %v755_v12 }
 0x158   :  { %1820 = vrot.lane.b32.xlu1 %v3844_v1, %s1892_s29  ;;  %v764_v41 = vmul.f32 %v1617_v28, %v756_v22 }
 0x159   :  { %1815 = vrot.lane.b32.xlu0 %v3844_v1, %s1891_s28  ;;  %v767_v7 = vadd.f32 %v763_v38, %v709_v57  ;;  %v751_v26 = vpop.permute.xlu0 %750 }
 0x15a   :  { %v753_v5 = vpop.permute.xlu1 %752  ;;  %v768_v24 = vadd.f32 %v764_v41, %v710_v40  ;;  %v757_v55 = vsel %vm754_vm11, %v749_v16, %v751_v26 }
 0x15b   :  { %v758_v44 = vsel %vm754_vm11, %v751_v26, %v753_v5  ;;  %v765_v23 = vmul.f32 %v1618_v14, %v757_v55 }
 0x15c   :  { %1830 = vrot.lane.b32.xlu1 %v3844_v1, %s1894_s4  ;;  %v766_v21 = vmul.f32 %v1619_v50, %v758_v44 }
 0x15d   :  { %1825 = vrot.lane.b32.xlu0 %v3844_v1, %s1893_s30  ;;  %v769_v47 = vadd.f32 %v765_v23, %v711_v27  ;;  %v774_v22 = vpop.permute.xlu0 %773 }
 0x15e   :  { %v776_v9 = vpop.permute.xlu1 %775  ;;  %v770_v12 = vadd.f32 %v766_v21, %v712_v36  ;;  %v781_v57 = vsel %vm754_vm11, %v1763_v19, %v774_v22 }
 0x15f   :  { %v782_v40 = vsel %vm754_vm11, %v774_v22, %v776_v9  ;;  %v789_v16 = vmul.f32 %v1616_v63, %v781_v57  ;;  %v1620_v63 = vld [vmem:[%s3726_s1 + $0x180] sm:$0x3f] }
 0x160   :  { %v790_v38 = vmul.f32 %v1617_v28, %v782_v40 }
 0x161   :  { %v793_v5 = vadd.f32 %v789_v16, %v735_v18  ;;  %v778_v30 = vpop.permute.xlu0 %777  ;;  %v1621_v18 = vld [vmem:[%s3726_s1 + $0x188] sm:$0x3f]  ;;  %v1623_v16 = vld [vmem:[%s3726_s1 + $0x198] sm:$0x3f] }
 0x162   :  { %v780_v41 = vpop.permute.xlu1 %779  ;;  %v794_v26 = vadd.f32 %v790_v38, %v736_v25  ;;  %v783_v55 = vsel %vm754_vm11, %v776_v9, %v778_v30 }
 0x163   :  { %v784_v44 = vsel %vm754_vm11, %v778_v30, %v780_v41  ;;  %v791_v1 = vmul.f32 %v1618_v14, %v783_v55  ;;  %v1622_v30 = vld [vmem:[%s3726_s1 + $0x190] sm:$0x3f] }
 0x164   :  { %v792_v4 = vmul.f32 %v1619_v50, %v784_v44 }
 0x165   :  { %v795_v27 = vadd.f32 %v791_v1, %v737_v34  ;;  %v1766_v23 = vpop.permute.xlu0 %1765 }
 0x166   :  { %v805_v42 = vpop.permute.xlu1 %804  ;;  %v796_v36 = vadd.f32 %v792_v4, %v738_v46  ;;  %v1767_v21 = vunpack.i.l.bf16 %v1766_v23  ;;  %v1768_v19 = vunpack.i.h.bf16 %v1766_v23 }
 0x168   :  { %v813_v25 = vsel %vm812_vm12, %v1767_v21, %v805_v42 }
 0x169   :  { %v807_v34 = vpop.permute.xlu0 %806  ;;  %v821_v46 = vmul.f32 %v1620_v63, %v813_v25 }
 0x16a   :  { %v809_v28 = vpop.permute.xlu1 %808  ;;  %v814_v14 = vsel %vm812_vm12, %v805_v42, %v807_v34 }
 0x16b   :  { %v815_v50 = vsel %vm812_vm12, %v807_v34, %v809_v28  ;;  %v822_v9 = vmul.f32 %v1621_v18, %v814_v14  ;;  %v825_v57 = vadd.f32 %v821_v46, %v767_v7 }
 0x16c   :  { %v823_v22 = vmul.f32 %v1622_v30, %v815_v50 }
 0x16d   :  { %v826_v38 = vadd.f32 %v822_v9, %v768_v24  ;;  %v811_v44 = vpop.permute.xlu0 %810 }
 0x16e   :  { %v832_v40 = vpop.permute.xlu1 %831  ;;  %v3016_v41 = vadd.f32 %v823_v22, %v769_v47  ;;  %v816_v42 = vsel %vm812_vm12, %v809_v28, %v811_v44 }
 0x16f   :  { %v839_v55 = vsel %vm812_vm12, %v1768_v19, %v832_v40  ;;  %v824_v4 = vmul.f32 %v1623_v16, %v816_v42 }
 0x170   :  { %v847_v1 = vmul.f32 %v1620_v63, %v839_v55  ;;  %v3029_v63 = vld [vmem:[%s3726_s1 + $0x1a0] sm:$0x3f] }
 0x171   :  { %v3022_v25 = vadd.f32 %v824_v4, %v770_v12  ;;  %v834_v7 = vpop.permute.xlu0 %833 }
 0x172   :  { %v3020_v21 = vadd.f32 %v847_v1, %v793_v5  ;;  %v836_v23 = vpop.permute.xlu1 %835  ;;  %v840_v34 = vsel %vm812_vm12, %v832_v40, %v834_v7  ;;  %v3034_v5 = vld [vmem:[%s3726_s1 + $0x1a8] sm:$0x3f] }
 0x173   :  { %v841_v46 = vsel %vm812_vm12, %v834_v7, %v836_v23  ;;  %v848_v24 = vmul.f32 %v1621_v18, %v840_v34  ;;  %v861_v9 = vmul.f32 %v2918_v56, %v3034_v5 }
 0x174   :  { %3872 = vst [vmem:[#allocation59_spill] sm:$0xff] %v3020_v21  ;;  %v849_v47 = vmul.f32 %v1622_v30, %v841_v46  ;;  %v860_v30 = vmul.f32 %v2922_v61, %v3029_v63 }
 0x175   :  { %v3036_v12 = vadd.f32 %v848_v24, %v794_v26  ;;  %v838_v50 = vpop.permute.xlu0 %837  ;;  %v3050_v26 = vld [vmem:[%s3726_s1 + $0x1c0] sm:$0x3f]  ;;  %v865_v55 = vadd.f32 %v861_v9, %v826_v38 }
 0x176   :  { %v884_v14 = vpop.permute.xlu1 %883  ;;  %v3038_v28 = vadd.f32 %v849_v47, %v795_v27  ;;  %v842_v19 = vsel %vm812_vm12, %v836_v23, %v838_v50  ;;  %v3055_v27 = vld [vmem:[%s3726_s1 + $0x1c8] sm:$0x3f]  ;;  %v864_v44 = vadd.f32 %v860_v30, %v825_v57  ;;  %v1648_v9 = vld [vmem:[%s3726_s1 + $0x260] sm:$0x3f] }
 0x177   :  { %3873 = vst [vmem:[#allocation60_spill] sm:$0xff] %v3036_v12  ;;  %v850_v18 = vmul.f32 %v1623_v16, %v842_v19  ;;  %3875 = vst [vmem:[#allocation62_spill] sm:$0xff] %v3055_v27  ;;  %v1646_v19 = vld [vmem:[%s3726_s1 + $0x250] sm:$0x3f]  ;;  %v1645_v30 = vld [vmem:[%s3726_s1 + $0x248] sm:$0x3f] }
 0x178   :  { %3874 = vst [vmem:[#allocation61_spill] sm:$0xff] %v3038_v28  ;;  %v3115_v13 = vmul.f32 %v1645_v30, %v3886_v39  ;;  %v1652_v28 = vld [vmem:[%s3726_s1 + $0x280] sm:$0x3f]  ;;  %v3908_v12 = vld [vmem:[#allocation45_spill] sm:$0xff] }
 0x179   :  { %v3057_v40 = vadd.f32 %v850_v18, %v796_v36  ;;  %v886_v16 = vpop.permute.xlu0 %885  ;;  %v1644_v18 = vld [vmem:[%s3726_s1 + $0x240] sm:$0x3f] }
 0x17a   :  { %v3045_v22 = vpop.permute.xlu1 %887  ;;  %v894_v61 = vsel %vm893_vm13, %v884_v14, %v886_v16  ;;  %3887 = vst [vmem:[#allocation34_spill] sm:$0xff] %v3115_v13  ;;  %v3892_v13 = vld [vmem:[#allocation38_spill] sm:$0xff] }
 0x17b   :  { %3876 = vst [vmem:[#allocation63_spill] sm:$0xff] %v3057_v40  ;;  %v895_v56 = vsel %vm893_vm13, %v886_v16, %v3045_v22  ;;  %v902_v1 = vmul.f32 %v3050_v26, %v894_v61  ;;  %v1649_v16 = vld [vmem:[%s3726_s1 + $0x268] sm:$0x3f]  ;;  %v1650_v61 = vld [vmem:[%s3726_s1 + $0x270] sm:$0x3f] }
 0x17c   :  { %v903_v42 = vmul.f32 %v3055_v27, %v895_v56  ;;  %v1657_v40 = vld [vmem:[%s3726_s1 + $0x2a8] sm:$0x3f] }
 0x17d   :  { %v3066_v23 = vadd.f32 %v902_v1, %v864_v44  ;;  %v3070_v36 = vpop.permute.xlu0 %889  ;;  %v3884_v1 = vld [vmem:[#allocation33_spill] sm:$0xff]  ;;  %v3898_v27 = vld [vmem:[#allocation40_spill] sm:$0xff] }
 0x17e   :  { %v3064_v4 = vpop.permute.xlu1 %1770  ;;  %v3068_v7 = vadd.f32 %v903_v42, %v865_v55  ;;  %v3882_v55 = vld [vmem:[#allocation32_spill] sm:$0xff]  ;;  %v3112_v42 = vmul.f32 %v1644_v18, %v3884_v1 }
 0x17f   :  { %3877 = vst [vmem:[#allocation64_spill] sm:$0xff] %v3066_v23  ;;  %v3109_v44 = vmul.f32 %v1646_v19, %v3882_v55  ;;  %v1654_v55 = vld [vmem:[%s3726_s1 + $0x290] sm:$0x3f] }
 0x180   :  { %3878 = vst [vmem:[#allocation65_spill] sm:$0xff] %v3068_v7  ;;  %3885 = vst [vmem:[#allocation33_spill] sm:$0xff] %v3112_v42  ;;  %v3888_v7 = vld [vmem:[#allocation35_spill] sm:$0xff] }
 0x181   :  { %3883 = vst [vmem:[#allocation32_spill] sm:$0xff] %v3109_v44  ;;  %v3118_v23 = vmul.f32 %v1644_v18, %v3888_v7  ;;  %v3890_v44 = vld [vmem:[#allocation37_spill] sm:$0xff]  ;;  %v3135_v7 = vmul.f32 %v1646_v19, %v3892_v13  ;;  %v3894_v18 = vld [vmem:[#allocation31_spill] sm:$0xff]  ;;  %v3902_v19 = vld [vmem:[#allocation42_spill] sm:$0xff] }
 0x182   :  { %v3072_v34 = vpop.permute.xlu1 %914  ;;  %v3074_v46 = vpop.permute.xlu0 %912  ;;  %v3132_v39 = vmul.f32 %v1645_v30, %v3890_v44  ;;  %v3896_v42 = vld [vmem:[#allocation39_spill] sm:$0xff]  ;;  %v3150_v30 = vmul.f32 %v1650_v61, %v3898_v27  ;;  %v3900_v44 = vld [vmem:[#allocation41_spill] sm:$0xff]  ;;  %v3171_v27 = vmul.f32 %v1654_v55, %v2429_v37 }
 0x183   :  { %3889 = vst [vmem:[#allocation35_spill] sm:$0xff] %v3118_v23  ;;  %3893 = vst [vmem:[#allocation38_spill] sm:$0xff] %v3135_v7  ;;  %v3138_v23 = vmul.f32 %v1648_v9, %v3894_v18  ;;  %v3153_v13 = vmul.f32 %v1648_v9, %v3900_v44  ;;  %v3156_v18 = vmul.f32 %v1649_v16, %v3902_v19  ;;  %v3904_v7 = vld [vmem:[#allocation43_spill] sm:$0xff]  ;;  %v3917_v19 = vld [vmem:[#allocation49_spill] sm:$0xff] }
 0x184   :  { %3891 = vst [vmem:[#allocation37_spill] sm:$0xff] %v3132_v39  ;;  %3899 = vst [vmem:[#allocation40_spill] sm:$0xff] %v3150_v30  ;;  %v1658_v39 = vld [vmem:[%s3726_s1 + $0x2b0] sm:$0x3f]  ;;  %v3174_v9 = vmul.f32 %v1652_v28, %v2437_v17 }
 0x185   :  { %3895 = vst [vmem:[#allocation31_spill] sm:$0xff] %v3138_v23  ;;  %3901 = vst [vmem:[#allocation41_spill] sm:$0xff] %v3153_v13 }
 0x186   :  { %v3076_v24 = vpop.permute.xlu1 %918  ;;  %v3078_v38 = vpop.permute.xlu0 %916  ;;  %3903 = vst [vmem:[#allocation42_spill] sm:$0xff] %v3156_v18  ;;  %3910 = vst [vmem:[#allocation69_spill] sm:$0xff] %v3171_v27  ;;  %v1665_v18 = vld [vmem:[%s3726_s1 + $0x2e8] sm:$0x3f]  ;;  %v1626_v27 = vld [vmem:[%s3726_s1 + $0x1b0] sm:$0x3f] }
 0x187   :  { %3911 = vst [vmem:[#allocation70_spill] sm:$0xff] %v3174_v9  ;;  %v1664_v9 = vld [vmem:[%s3726_s1 + $0x2e0] sm:$0x3f] }
 0x18a   :  { %v3080_v57 = vpop.permute.xlu1 %945 }
 0x18b   :  { %v3082_v47 = vpop.permute.xlu0 %943 }
 0x18e   :  { %v3084_v14 = vpop.permute.xlu1 %949 }
 0x18f   :  { %3879 = vst [vmem:[#allocation66_spill] sm:$0xff] %v3084_v14  ;;  %v3086_v50 = vpop.permute.xlu0 %947  ;;  %v3141_v14 = vmul.f32 %v1649_v16, %v3896_v42  ;;  %v3159_v42 = vmul.f32 %v1650_v61, %v3904_v7  ;;  %v1660_v16 = vld [vmem:[%s3726_s1 + $0x2c0] sm:$0x3f]  ;;  %v1661_v61 = vld [vmem:[%s3726_s1 + $0x2c8] sm:$0x3f] }
 0x190   :  { %3880 = vst [vmem:[#allocation67_spill] sm:$0xff] %v3086_v50  ;;  %v1656_v50 = vld [vmem:[%s3726_s1 + $0x2a0] sm:$0x3f] }
 0x191   :  { %3897 = vst [vmem:[#allocation39_spill] sm:$0xff] %v3141_v14  ;;  %3905 = vst [vmem:[#allocation43_spill] sm:$0xff] %v3159_v42  ;;  %v3906_v14 = vld [vmem:[#allocation44_spill] sm:$0xff]  ;;  %v3913_v7 = vld [vmem:[#allocation47_spill] sm:$0xff]  ;;  %v3197_v42 = vmul.f32 %v1657_v40, %v3917_v19 }
 0x192   :  { %v3106_v56 = vpop.permute.xlu1 %970  ;;  %v3165_v23 = vmul.f32 %v1652_v28, %v3906_v14  ;;  %v1662_v14 = vld [vmem:[%s3726_s1 + $0x2d0] sm:$0x3f]  ;;  %v3191_v17 = vmul.f32 %v1654_v55, %v3913_v7  ;;  %v3915_v28 = vld [vmem:[#allocation48_spill] sm:$0xff]  ;;  %v3921_v55 = vld [vmem:[#allocation51_spill] sm:$0xff] }
 0x193   :  { %3881 = vst [vmem:[#allocation68_spill] sm:$0xff] %v3106_v56  ;;  %v1653_v56 = vld [vmem:[%s3726_s1 + $0x288] sm:$0x3f]  ;;  %v3129_v1 = vpop.permute.xlu0 %1775  ;;  %v3194_v44 = vmul.f32 %v1656_v50, %v3915_v28  ;;  %3918 = vst [vmem:[#allocation49_spill] sm:$0xff] %v3197_v42  ;;  %v3211_v7 = vmul.f32 %v1656_v50, %v3921_v55  ;;  %v3923_v28 = vld [vmem:[#allocation53_spill] sm:$0xff] }
 0x194   :  { %3907 = vst [vmem:[#allocation44_spill] sm:$0xff] %v3165_v23  ;;  %v3168_v21 = vmul.f32 %v1653_v56, %v3908_v12  ;;  %v3188_v37 = vmul.f32 %v1653_v56, %v2442_v32  ;;  %3914 = vst [vmem:[#allocation47_spill] sm:$0xff] %v3191_v17  ;;  %v3919_v32 = vld [vmem:[#allocation50_spill] sm:$0xff]  ;;  %v3214_v17 = vmul.f32 %v1657_v40, %v3923_v28  ;;  %v1666_v42 = vld [vmem:[%s3726_s1 + $0x2f0] sm:$0x3f] }
 0x195   :  { %3916 = vst [vmem:[#allocation48_spill] sm:$0xff] %v3194_v44  ;;  %v3208_v56 = vmul.f32 %v1658_v39, %v3919_v32  ;;  %3922 = vst [vmem:[#allocation51_spill] sm:$0xff] %v3211_v7  ;;  %v3925_v19 = vld [vmem:[#allocation54_spill] sm:$0xff]  ;;  %v3927_v50 = vld [vmem:[#allocation55_spill] sm:$0xff] }
 0x196   :  { %3909 = vst [vmem:[#allocation45_spill] sm:$0xff] %v3168_v21  ;;  %v3185_v12 = vpop.permute.xlu1 %974  ;;  %3912 = vst [vmem:[#allocation71_spill] sm:$0xff] %v3188_v37  ;;  %v3217_v37 = vmul.f32 %v1658_v39, %v3925_v19  ;;  %v1627_v32 = vld [vmem:[%s3726_s1 + $0x1b8] sm:$0x3f]  ;;  %v3229_v55 = vmul.f32 %v1660_v16, %v3927_v50  ;;  %v3929_v40 = vld [vmem:[#allocation56_spill] sm:$0xff] }
 0x197   :  { %v3205_v13 = vpop.permute.xlu0 %972  ;;  %3920 = vst [vmem:[#allocation50_spill] sm:$0xff] %v3208_v56  ;;  %3924 = vst [vmem:[#allocation53_spill] sm:$0xff] %v3214_v17  ;;  %v3232_v28 = vmul.f32 %v1661_v61, %v3929_v40  ;;  %v3930_v39 = vld [vmem:[#allocation36_spill] sm:$0xff]  ;;  %v3934_v21 = vld [vmem:[#allocation23_spill] sm:$0xff] }
 0x198   :  { %3926 = vst [vmem:[#allocation54_spill] sm:$0xff] %v3217_v37  ;;  %3928 = vst [vmem:[#allocation55_spill] sm:$0xff] %v3229_v55  ;;  %v3235_v19 = vmul.f32 %v1662_v14, %v3930_v39  ;;  %v3931_v37 = vld [vmem:[#allocation17_spill] sm:$0xff]  ;;  %v3932_v7 = vld [vmem:[#allocation20_spill] sm:$0xff]  ;;  %v3244_v30 = vmul.f32 %v1662_v14, %v3934_v21  ;;  %v862_v39 = vmul.f32 %v2858_v51, %v1626_v27 }
 0x199   :  { %v3238_v17 = vmul.f32 %v1660_v16, %v3931_v37  ;;  %v3241_v56 = vmul.f32 %v1661_v61, %v3932_v7  ;;  %v3936_v44 = vld [vmem:[#allocation19_spill] sm:$0xff]  ;;  %v3937_v50 = vld [vmem:[#allocation24_spill] sm:$0xff]  ;;  %v3938_v61 = vld [vmem:[#allocation26_spill] sm:$0xff]  ;;  %v3290_v51 = vmul.f32 %v2889_v31, %v3034_v5  ;;  %v3308_v31 = vmul.f32 %v2911_v62, %v1626_v27 }
 0x19a   :  { %3935 = vst [vmem:[#allocation36_spill] sm:$0xff] %v3244_v30  ;;  %v3247_v23 = vmul.f32 %v1664_v9, %v3936_v44  ;;  %v3250_v55 = vmul.f32 %v1665_v18, %v3937_v50  ;;  %v1668_v40 = vld [vmem:[%s3726_s1 + $0x300] sm:$0x3f]  ;;  %v1669_v16 = vld [vmem:[%s3726_s1 + $0x308] sm:$0x3f]  ;;  %v3258_v37 = vpop.permute.xlu1 %1001  ;;  %v3261_v7 = vmul.f32 %v1666_v42, %v3938_v61  ;;  %v3271_v50 = vmul.f32 %v2877_v6, %v1627_v32 }
 0x19b   :  { %3933 = vst [vmem:[#allocation56_spill] sm:$0xff] %v3241_v56  ;;  %v3939_v21 = vld [vmem:[#allocation28_spill] sm:$0xff]  ;;  %v1670_v44 = vld [vmem:[%s3726_s1 + $0x310] sm:$0x3f]  ;;  %v3273_v30 = vpop.permute.xlu0 %976  ;;  %v3276_v56 = vmul.f32 %v1665_v18, %v2698_v10  ;;  %v3279_v61 = vmul.f32 %v1666_v42, %v2725_v2  ;;  %v3942_v6 = vld [vmem:[#allocation27_spill] sm:$0xff]  ;;  %v3298_v2 = vmul.f32 %v1669_v16, %v2691_v29  ;;  %v3316_v29 = vmul.f32 %v1668_v40, %v2777_v3 }
 0x19c   :  { %v3264_v14 = vmul.f32 %v1664_v9, %v3939_v21  ;;  %v1672_v9 = vld [vmem:[%s3726_s1 + $0x320] sm:$0x3f]  ;;  %v3286_v21 = vmul.f32 %v2893_v43, %v3029_v63  ;;  %v3295_v10 = vmul.f32 %v1668_v40, %v3942_v6  ;;  %v1673_v18 = vld [vmem:[%s3726_s1 + $0x328] sm:$0x3f]  ;;  %v1674_v43 = vld [vmem:[%s3726_s1 + $0x330] sm:$0x3f]  ;;  %v871_v63 = vmul.f32 %v2907_v11, %v1627_v32 }
 0x19d   :  { %3940 = vst [vmem:[#allocation17_spill] sm:$0xff] %v3276_v56  ;;  %3941 = vst [vmem:[#allocation20_spill] sm:$0xff] %v3279_v61  ;;  %v3313_v5 = vmul.f32 %v1670_v44, %v2745_v20  ;;  %v3319_v42 = vmul.f32 %v1669_v16, %v2789_v49  ;;  %v1676_v6 = vld [vmem:[%s3726_s1 + $0x340] sm:$0x3f]  ;;  %v3327_v11 = vmul.f32 %v1670_v44, %v2817_v0  ;;  %v1677_v20 = vld [vmem:[%s3726_s1 + $0x348] sm:$0x3f]  ;;  %v1772_v49 = vunpack.i.l.bf16 %v3064_v4 }
 0x19e   :  { %3943 = vst [vmem:[#allocation23_spill] sm:$0xff] %v3316_v29  ;;  %v3324_v61 = vpop.permute.xlu1 %1005  ;;  %v3330_v62 = vmul.f32 %v1672_v9, %v2579_v59  ;;  %v1678_v3 = vld [vmem:[%s3726_s1 + $0x350] sm:$0x3f]  ;;  %v3342_v32 = vmul.f32 %v1673_v18, %v2614_v52  ;;  %v3345_v0 = vmul.f32 %v1674_v43, %v2766_v53  ;;  %v3348_v59 = vmul.f32 %v1672_v9, %v2656_v33 }
 0x19f   :  { %3944 = vst [vmem:[#allocation19_spill] sm:$0xff] %v3319_v42  ;;  %3945 = vst [vmem:[#allocation24_spill] sm:$0xff] %v3327_v11  ;;  %v3339_v27 = vpop.permute.xlu0 %1003  ;;  %v3351_v40 = vmul.f32 %v1673_v18, %v2718_v60  ;;  %v3354_v16 = vmul.f32 %v1674_v43, %v2845_v8  ;;  %v1903_v44 = vmov 1983009808   ;;  %v1451_v42 = vlaneseq }
 0x1a0   :  { %3946 = vst [vmem:[#allocation26_spill] sm:$0xff] %v3348_v59  ;;  %v3356_v11 = vunpack.c.l.s4 %v1903_v44  ;;  %v3359_v52 = vmul.f32 %v1676_v6, %v2794_v45  ;;  %v3362_v53 = vmul.f32 %v1677_v20, %v2797_v48  ;;  %v3365_v33 = vmul.f32 %v1678_v3, %v2830_v35  ;;  %v1630_v45 = vld [vmem:[%s3726_s1 + $0x1d0] sm:$0x3f]  ;;  %v1631_v48 = vld [vmem:[%s3726_s1 + $0x1d8] sm:$0x3f] }
 0x1a1   :  { %3947 = vst [vmem:[#allocation28_spill] sm:$0xff] %v3351_v40  ;;  %3948 = vst [vmem:[#allocation27_spill] sm:$0xff] %v3354_v16  ;;  %v1773_v60 = vunpack.i.h.bf16 %v3064_v4  ;;  %v3371_v9 = vmul.f32 %v1676_v6, %v2853_v54  ;;  %v3374_v18 = vmul.f32 %v1677_v20, %v2856_v15  ;;  %v896_v35 = vsel %vm893_vm13, %v3045_v22, %v3070_v36 }
 0x1a2   :  { %3949 = vst [vmem:[#allocation72_spill] sm:$0xff] %v3356_v11  ;;  %v3368_v8 = vpop.permute.xlu1 %1780  ;;  %v897_v4 = vsel %vm893_vm13, %v3070_v36, %v1772_v49  ;;  %v3390_v15 = vmul.f32 %v1678_v3, %v2872_v58  ;;  %v922_v43 = vsel %vm893_vm13, %v3074_v46, %v3072_v34  ;;  %v3398_v20 = vstv %s3292_s14 }
 0x1a3   :  { %3950 = vst [vmem:[#allocation73_spill] sm:$0xff] %v3371_v9  ;;  %3951 = vst [vmem:[#allocation74_spill] sm:$0xff] %v3374_v18  ;;  %v3387_v54 = vpop.permute.xlu0 %1007  ;;  %v925_v6 = vsel %vm893_vm13, %v3076_v24, %v1773_v60  ;;  %v923_v22 = vsel %vm893_vm13, %v3072_v34, %v3078_v38  ;;  %v3404_v36 = vstv %s3310_s19  ;;  %v3407_v58 = vshrl.u32 %v1451_v42, 7 }
 0x1a4   :  { %3952 = vst [vmem:[#allocation75_spill] sm:$0xff] %v3390_v15  ;;  %3953 = vst [vmem:[#allocation76_spill] sm:$0xff] %v3398_v20  ;;  %v866_v3 = vadd.f32 %v862_v39, %v3016_v41  ;;  %v904_v44 = vmul.f32 %v1630_v45, %v896_v35  ;;  %v905_v46 = vmul.f32 %v1631_v48, %v897_v4  ;;  %v1777_v41 = vunpack.i.l.bf16 %v3129_v1  ;;  %v3958_v4 = vld [vmem:[#allocation62_spill] sm:$0xff] }
 0x1a5   :  { %3954 = vst [vmem:[#allocation77_spill] sm:$0xff] %v3404_v36  ;;  %3955 = vst [vmem:[#allocation78_spill] sm:$0xff] %v3407_v58  ;;  %v924_v60 = vsel %vm893_vm13, %v3078_v38, %v3076_v24  ;;  %v930_v15 = vmul.f32 %v3050_v26, %v922_v43  ;;  %v933_v34 = vmul.f32 %v1631_v48, %v925_v6  ;;  %v1632_v36 = vld [vmem:[%s3726_s1 + $0x1e0] sm:$0x3f]  ;;  %v3957_v26 = vld [vmem:[#allocation60_spill] sm:$0xff] }
 0x1a6   :  { %v3413_v20 = vpop.permute.xlu1 %1030  ;;  %v954_v42 = vsel %vm953_vm14, %v3082_v47, %v3080_v57  ;;  %v867_v24 = vadd.f32 %v3271_v50, %v3022_v25  ;;  %v3956_v38 = vld [vmem:[#allocation59_spill] sm:$0xff]  ;;  %v873_v48 = vadd.f32 %v3290_v51, %v3957_v26  ;;  %v931_v43 = vmul.f32 %v3958_v4, %v923_v22  ;;  %v1633_v47 = vld [vmem:[%s3726_s1 + $0x1e8] sm:$0x3f]  ;;  %v1634_v58 = vld [vmem:[%s3726_s1 + $0x1f0] sm:$0x3f] }
 0x1a7   :  { %v3423_v39 = vpop.permute.xlu0 %1028  ;;  %v872_v35 = vadd.f32 %v3286_v21, %v3956_v38  ;;  %v3959_v6 = vld [vmem:[#allocation63_spill] sm:$0xff]  ;;  %v932_v11 = vmul.f32 %v1630_v45, %v924_v60  ;;  %v3961_v21 = vld [vmem:[#allocation66_spill] sm:$0xff]  ;;  %v908_v22 = vadd.f32 %v904_v44, %v866_v3  ;;  %v3962_v38 = vld [vmem:[#allocation61_spill] sm:$0xff]  ;;  %v962_v45 = vmul.f32 %v1632_v36, %v954_v42 }
 0x1a8   :  { %v875_v49 = vadd.f32 %v871_v63, %v3959_v6  ;;  %v3960_v25 = vld [vmem:[#allocation67_spill] sm:$0xff]  ;;  %v874_v63 = vadd.f32 %v3308_v31, %v3962_v38  ;;  %v1012_v26 = vsel %vm1011_vm15, %v3258_v37, %v3339_v27  ;;  %v1635_v3 = vld [vmem:[%s3726_s1 + $0x1f8] sm:$0x3f]  ;;  %v957_v31 = vsel %vm953_vm14, %v3961_v21, %v1777_v41  ;;  %v1637_v37 = vld [vmem:[%s3726_s1 + $0x208] sm:$0x3f] }
 0x1a9   :  { %v955_v50 = vsel %vm953_vm14, %v3080_v57, %v3960_v25  ;;  %v956_v51 = vsel %vm953_vm14, %v3960_v25, %v3961_v21  ;;  %v1636_v60 = vld [vmem:[%s3726_s1 + $0x200] sm:$0x3f]  ;;  %v909_v57 = vadd.f32 %v905_v46, %v867_v24  ;;  %v934_v6 = vadd.f32 %v930_v15, %v872_v35  ;;  %v3472_v41 = vld [vmem:[%s3726_s1 + $0x210] sm:$0x3f]  ;;  %v3963_v35 = vld [vmem:[#allocation64_spill] sm:$0xff] }
 0x1aa   :  { %v3453_v4 = vpop.permute.xlu1 %1034  ;;  %v3455_v16 = vadd.f32 %v933_v34, %v875_v49  ;;  %v935_v42 = vadd.f32 %v931_v43, %v873_v48  ;;  %v963_v25 = vmul.f32 %v1633_v47, %v955_v50  ;;  %v964_v38 = vmul.f32 %v1634_v58, %v956_v51  ;;  %v3964_v43 = vld [vmem:[#allocation68_spill] sm:$0xff]  ;;  %v3487_v21 = vld [vmem:[%s3726_s1 + $0x220] sm:$0x3f] }
 0x1ab   :  { %v1033_v44 = vpop.permute.xlu0 %1032  ;;  %v1013_v15 = vsel %vm1011_vm15, %v3339_v27, %v3324_v61  ;;  %v936_v49 = vadd.f32 %v932_v11, %v874_v63  ;;  %v1778_v46 = vunpack.i.h.bf16 %v3129_v1  ;;  %v1020_v34 = vmul.f32 %v1636_v60, %v1012_v26 }
 0x1ac   :  { %v1014_v24 = vsel %vm1011_vm15, %v3324_v61, %v3387_v54  ;;  %v966_v48 = vadd.f32 %v962_v45, %v3963_v35  ;;  %v980_v50 = vsel %vm953_vm14, %v3964_v43, %v3205_v13  ;;  %v981_v1 = vsel %vm953_vm14, %v3205_v13, %v3185_v12  ;;  %v3965_v35 = vld [vmem:[#allocation65_spill] sm:$0xff] }
 0x1ad   :  { %v965_v11 = vmul.f32 %v1635_v3, %v957_v31  ;;  %v982_v61 = vsel %vm953_vm14, %v3185_v12, %v3273_v30  ;;  %v983_v51 = vsel %vm953_vm14, %v3273_v30, %v1778_v46  ;;  %v1021_v63 = vmul.f32 %v1637_v37, %v1013_v15 }
 0x1ae   :  { %v1062_v27 = vpop.permute.xlu1 %1061  ;;  %v1782_v45 = vunpack.i.l.bf16 %v3368_v8  ;;  %v967_v13 = vadd.f32 %v963_v25, %v3965_v35  ;;  %v968_v31 = vadd.f32 %v964_v38, %v908_v22  ;;  %v1022_v43 = vmul.f32 %v3472_v41, %v1014_v24  ;;  %v1641_v25 = vld [vmem:[%s3726_s1 + $0x228] sm:$0x3f]  ;;  %v3506_v22 = vld [vmem:[%s3726_s1 + $0x230] sm:$0x3f] }
 0x1af   :  { %v1060_v26 = vpop.permute.xlu0 %1059  ;;  %v988_v9 = vmul.f32 %v1632_v36, %v980_v50  ;;  %v989_v40 = vmul.f32 %v1633_v47, %v981_v1  ;;  %v1024_v59 = vadd.f32 %v1020_v34, %v966_v48  ;;  %v990_v12 = vmul.f32 %v1634_v58, %v982_v61  ;;  %v3966_v50 = vld [vmem:[#allocation33_spill] sm:$0xff] }
 0x1b0   :  { %v1070_v18 = vsel %vm1069_vm9, %v1060_v26, %v1062_v27  ;;  %v991_v56 = vmul.f32 %v1635_v3, %v983_v51  ;;  %v1783_v30 = vunpack.i.h.bf16 %v3368_v8  ;;  %v969_v15 = vadd.f32 %v965_v11, %v909_v57 }
 0x1b1   :  { %v1078_v29 = vmul.f32 %v3487_v21, %v1070_v18  ;;  %v1025_v36 = vadd.f32 %v1021_v63, %v967_v13  ;;  %v1639_v18 = vld [vmem:[%s3726_s1 + $0x218] sm:$0x3f]  ;;  %v1015_v58 = vsel %vm1011_vm15, %v3387_v54, %v1782_v45  ;;  %v1038_v8 = vsel %vm1011_vm15, %v3423_v39, %v3413_v20  ;;  %v3967_v45 = vld [vmem:[#allocation31_spill] sm:$0xff] }
 0x1b2   :  { %v1066_v46 = vpop.permute.xlu1 %1065  ;;  %v1026_v3 = vadd.f32 %v1022_v43, %v968_v31  ;;  %v1041_v38 = vsel %vm1011_vm15, %v3453_v4, %v1783_v30  ;;  %v1039_v48 = vsel %vm1011_vm15, %v3413_v20, %v1033_v44  ;;  %v992_v61 = vadd.f32 %v988_v9, %v934_v6  ;;  %v1643_v9 = vld [vmem:[%s3726_s1 + $0x238] sm:$0x3f] }
 0x1b3   :  { %v1082_v47 = vadd.f32 %v1078_v29, %v1024_v59  ;;  %v1064_v57 = vpop.permute.xlu0 %1063  ;;  %v993_v39 = vadd.f32 %v989_v40, %v935_v42  ;;  %v1023_v29 = vmul.f32 %v1639_v18, %v1015_v58  ;;  %v1046_v59 = vmul.f32 %v1636_v60, %v1038_v8  ;;  %v3968_v60 = vld [vmem:[#allocation44_spill] sm:$0xff]  ;;  %v3969_v42 = vld [vmem:[#allocation34_spill] sm:$0xff] }
 0x1b4   :  { %v1071_v34 = vsel %vm1069_vm9, %v1062_v27, %v1064_v57  ;;  %v1072_v24 = vsel %vm1069_vm9, %v1064_v57, %v1066_v46  ;;  %v1040_v63 = vsel %vm1011_vm15, %v1033_v44, %v3453_v4  ;;  %v994_v31 = vadd.f32 %v990_v12, %v936_v49  ;;  %v3970_v4 = vld [vmem:[#allocation32_spill] sm:$0xff]  ;;  %v3972_v57 = vld [vmem:[#allocation39_spill] sm:$0xff] }
 0x1b5   :  { %v1125_v1 = vadd.f32 %v3966_v50, %v1082_v47  ;;  %v1079_v54 = vmul.f32 %v1641_v25, %v1071_v34  ;;  %v1080_v11 = vmul.f32 %v3506_v22, %v1072_v24  ;;  %v1049_v20 = vmul.f32 %v1639_v18, %v1041_v38  ;;  %v3971_v12 = vld [vmem:[#allocation48_spill] sm:$0xff] }
 0x1b6   :  { %v1087_v51 = vpop.permute.xlu1 %1086  ;;  %v1047_v43 = vmul.f32 %v1637_v37, %v1039_v48  ;;  %v995_v40 = vadd.f32 %v991_v56, %v3455_v16  ;;  %v1027_v8 = vadd.f32 %v1023_v29, %v969_v15  ;;  %v1048_v47 = vmul.f32 %v3472_v41, %v1040_v63  ;;  %v3973_v38 = vld [vmem:[#allocation40_spill] sm:$0xff]  ;;  %v3975_v41 = vld [vmem:[#allocation45_spill] sm:$0xff] }
 0x1b7   :  { %v1154_v27 = vadd.f32 %v3967_v45, %v1125_v1  ;;  %v1083_v26 = vadd.f32 %v1079_v54, %v1025_v36  ;;  %v1084_v35 = vadd.f32 %v1080_v11, %v1026_v3  ;;  %v1786_v13 = vpop.permute.xlu0 %1785  ;;  %v1050_v36 = vadd.f32 %v1046_v59, %v992_v61  ;;  %v3974_v1 = vld [vmem:[#allocation55_spill] sm:$0xff]  ;;  %v3976_v61 = vld [vmem:[#allocation69_spill] sm:$0xff] }
 0x1b8   :  { %v1787_v30 = vunpack.i.l.bf16 %v1786_v13  ;;  %v1053_v24 = vadd.f32 %v1049_v20, %v995_v40  ;;  %v1051_v48 = vadd.f32 %v1047_v43, %v993_v39  ;;  %v1052_v59 = vadd.f32 %v1048_v47, %v994_v31  ;;  %v3977_v39 = vld [vmem:[#allocation49_spill] sm:$0xff]  ;;  %v3979_v31 = vld [vmem:[#allocation35_spill] sm:$0xff] }
 0x1b9   :  { %v1183_v6 = vadd.f32 %v3968_v60, %v1154_v27  ;;  %v1126_v58 = vadd.f32 %v3969_v42, %v1083_v26  ;;  %v1127_v44 = vadd.f32 %v3970_v4, %v1084_v35  ;;  %v1788_v63 = vunpack.i.h.bf16 %v1786_v13 }
 0x1ba   :  { %v1091_v49 = vpop.permute.xlu1 %1090  ;;  %v1073_v37 = vsel %vm1069_vm9, %v1066_v46, %v1787_v30 }
 0x1bb   :  { %v1212_v18 = vadd.f32 %v3971_v12, %v1183_v6  ;;  %v1155_v3 = vadd.f32 %v3972_v57, %v1126_v58  ;;  %v1156_v34 = vadd.f32 %v3973_v38, %v1127_v44  ;;  %v1089_v56 = vpop.permute.xlu0 %1088  ;;  %v1081_v16 = vmul.f32 %v1643_v9, %v1073_v37  ;;  %v3980_v44 = vld [vmem:[#allocation37_spill] sm:$0xff]  ;;  %v3982_v37 = vld [vmem:[#allocation10_spill] sm:$0xff] }
 0x1bc   :  { %v1096_v50 = vsel %vm1069_vm9, %v1087_v51, %v1089_v56  ;;  %v1097_v15 = vsel %vm1069_vm9, %v1089_v56, %v1091_v49  ;;  %v3978_v51 = vld [vmem:[#allocation50_spill] sm:$0xff] }
 0x1bd   :  { %v1241_v54 = vadd.f32 %v3974_v1, %v1212_v18  ;;  %v1184_v11 = vadd.f32 %v3975_v41, %v1155_v3  ;;  %v1185_v46 = vadd.f32 %v3976_v61, %v1156_v34  ;;  %v1104_v29 = vmul.f32 %v3487_v21, %v1096_v50  ;;  %v3983_v18 = vld [vmem:[#allocation41_spill] sm:$0xff]  ;;  %v3984_v38 = vld [vmem:[#allocation42_spill] sm:$0xff] }
 0x1be   :  { %v1105_v45 = vmul.f32 %v1641_v25, %v1097_v15  ;;  %v1791_v27 = vpop.permute.xlu1 %1790  ;;  %v1085_v26 = vadd.f32 %v1081_v16, %v1027_v8 }
 0x1bf   :  { %v1270_v35 = vadd.f32 %v3247_v23, %v1241_v54  ;;  %v1213_v20 = vadd.f32 %v3977_v39, %v1184_v11  ;;  %v1214_v43 = vadd.f32 %v3978_v51, %v1185_v46  ;;  %v1108_v30 = vadd.f32 %v1104_v29, %v1050_v36  ;;  %v1093_v40 = vpop.permute.xlu0 %1092  ;;  %v1647_v23 = vld [vmem:[%s3726_s1 + $0x258] sm:$0x3f]  ;;  %v3981_v36 = vld [vmem:[#allocation9_spill] sm:$0xff] }
 0x1c0   :  { %v1109_v60 = vadd.f32 %v1105_v45, %v1051_v48  ;;  %v1793_v6 = vunpack.i.h.bf16 %v1791_v27  ;;  %v1792_v42 = vunpack.i.l.bf16 %v1791_v27  ;;  %v1098_v58 = vsel %vm1069_vm9, %v1091_v49, %v1093_v40 }
 0x1c1   :  { %v1299_v21 = vadd.f32 %v3295_v10, %v1270_v35  ;;  %v1242_v13 = vadd.f32 %v3232_v28, %v1213_v20  ;;  %v1243_v25 = vadd.f32 %v3235_v19, %v1214_v43  ;;  %v1137_v4 = vadd.f32 %v3979_v31, %v1108_v30  ;;  %v3994_v31 = vld [vmem:[#allocation17_spill] sm:$0xff] }
 0x1c2   :  { %v1138_v8 = vadd.f32 %v3980_v44, %v1109_v60  ;;  %v1119_v47 = vsel %vm106_vm0, %v3981_v36, %v1792_v42  ;;  %v1131_v49 = vsel %vm106_vm0, %v3982_v37, %v1793_v6  ;;  %v1099_v10 = vsel %vm1069_vm9, %v1093_v40, %v1788_v63  ;;  %v1801_v3 = vpop.permute.xlu1 %1800  ;;  %v3992_v60 = vld [vmem:[#allocation43_spill] sm:$0xff]  ;;  %v3993_v42 = vld [vmem:[#allocation13_spill] sm:$0xff] }
 0x1c3   :  { %v1328_v28 = vadd.f32 %v3330_v62, %v1299_v21  ;;  %v1271_v19 = vadd.f32 %v3250_v55, %v1242_v13  ;;  %v1272_v12 = vadd.f32 %v3261_v7, %v1243_v25  ;;  %v1166_v57 = vadd.f32 %v3983_v18, %v1137_v4  ;;  %v1796_v50 = vpop.permute.xlu0 %1795  ;;  %v3985_v55 = vld [vmem:[#allocation70_spill] sm:$0xff]  ;;  %v3986_v7 = vld [vmem:[#allocation71_spill] sm:$0xff] }
 0x1c4   :  { %v1167_v34 = vadd.f32 %v3984_v38, %v1138_v8  ;;  %v1124_v56 = vmul.f32 %v1647_v23, %v1119_v47  ;;  %v1136_v16 = vmul.f32 %v1647_v23, %v1131_v49  ;;  %v1106_v48 = vmul.f32 %v3506_v22, %v1098_v58  ;;  %v3987_v22 = vld [vmem:[#allocation51_spill] sm:$0xff]  ;;  %v3997_v49 = vld [vmem:[#allocation12_spill] sm:$0xff] }
 0x1c5   :  { %v3569_v15 = vadd.f32 %v3359_v52, %v1328_v28  ;;  %v1300_v1 = vadd.f32 %v3298_v2, %v1271_v19  ;;  %v1301_v62 = vadd.f32 %v3313_v5, %v1272_v12  ;;  %v1195_v54 = vadd.f32 %v3985_v55, %v1166_v57  ;;  %v3988_v52 = vld [vmem:[#allocation53_spill] sm:$0xff]  ;;  %v3989_v2 = vld [vmem:[#allocation38_spill] sm:$0xff]  ;;  %v3995_v23 = vld [vmem:[#allocation47_spill] sm:$0xff] }
 0x1c6   :  { %v1196_v41 = vadd.f32 %v3986_v7, %v1167_v34  ;;  %v1107_v11 = vmul.f32 %v1643_v9, %v1099_v10  ;;  %v1110_v61 = vadd.f32 %v1106_v48, %v1052_v59  ;;  %v1128_v46 = vadd.f32 %v1124_v56, %v1085_v26  ;;  %v1655_v5 = vld [vmem:[%s3726_s1 + $0x298] sm:$0x3f]  ;;  %v1811_v43 = vpop.permute.xlu1 %1810  ;;  %v3996_v47 = vld [vmem:[#allocation23_spill] sm:$0xff] }
 0x1c7   :  { %v1329_v29 = vadd.f32 %v3342_v32, %v1300_v1  ;;  %v1330_v63 = vadd.f32 %v3345_v0, %v1301_v62  ;;  %v1224_v45 = vadd.f32 %v3987_v22, %v1195_v54  ;;  %v1803_v27 = vunpack.i.h.bf16 %v1801_v3  ;;  %v3990_v59 = vld [vmem:[#allocation14_spill] sm:$0xff]  ;;  %v1806_v21 = vpop.permute.xlu0 %1805  ;;  %v3998_v12 = vld [vmem:[#allocation19_spill] sm:$0xff] }
 0x1c8   :  { %v1225_v35 = vadd.f32 %v3988_v52, %v1196_v41  ;;  %v1111_v39 = vadd.f32 %v1107_v11, %v1053_v24  ;;  %v1139_v20 = vadd.f32 %v3989_v2, %v1110_v61  ;;  %v1802_v51 = vunpack.i.l.bf16 %v1801_v3  ;;  %v3991_v24 = vld [vmem:[#allocation56_spill] sm:$0xff]  ;;  %v3999_v57 = vld [vmem:[#allocation54_spill] sm:$0xff]  ;;  %v4000_v34 = vld [vmem:[#allocation11_spill] sm:$0xff] }
 0x1c9   :  { %v3584_v9 = vadd.f32 %v3362_v53, %v1329_v29  ;;  %v3587_v32 = vadd.f32 %v3365_v33, %v1330_v63  ;;  %v1253_v0 = vadd.f32 %v3238_v17, %v1224_v45  ;;  %v1189_v26 = vsel %vm232_vm2, %v3990_v59, %v1803_v27  ;;  %v1651_v17 = vld [vmem:[%s3726_s1 + $0x278] sm:$0x3f]  ;;  %v4004_v11 = vld [vmem:[#allocation28_spill] sm:$0xff]  ;;  %v4006_v52 = vld [vmem:[#allocation73_spill] sm:$0xff] }
 0x1ca   :  { %v1254_v30 = vadd.f32 %v3991_v24, %v1225_v35  ;;  %v1140_v40 = vadd.f32 %v1136_v16, %v1111_v39  ;;  %v1168_v6 = vadd.f32 %v3992_v60, %v1139_v20  ;;  %v1177_v58 = vsel %vm232_vm2, %v3993_v42, %v1802_v51  ;;  %v4001_v16 = vld [vmem:[#allocation26_spill] sm:$0xff]  ;;  %v1821_v41 = vpop.permute.xlu1 %1820  ;;  %v4005_v29 = vld [vmem:[#allocation36_spill] sm:$0xff] }
 0x1cb   :  { %v1282_v53 = vadd.f32 %v3264_v14, %v1253_v0  ;;  %v1182_v13 = vmul.f32 %v1655_v5, %v1177_v58  ;;  %v1194_v33 = vmul.f32 %v1655_v5, %v1189_v26  ;;  %v1798_v25 = vunpack.i.h.bf16 %v1796_v50  ;;  %v1663_v14 = vld [vmem:[%s3726_s1 + $0x2d8] sm:$0x3f]  ;;  %v1816_v27 = vpop.permute.xlu0 %1815  ;;  %v4007_v20 = vld [vmem:[#allocation16_spill] sm:$0xff] }
 0x1cc   :  { %v1283_v4 = vadd.f32 %v3994_v31, %v1254_v30  ;;  %v1197_v44 = vadd.f32 %v3995_v23, %v1168_v6  ;;  %v1797_v8 = vunpack.i.l.bf16 %v1796_v50  ;;  %v1813_v36 = vunpack.i.h.bf16 %v1811_v43  ;;  %v4002_v1 = vld [vmem:[#allocation18_spill] sm:$0xff]  ;;  %v4009_v59 = vld [vmem:[#allocation20_spill] sm:$0xff] }
 0x1cd   :  { %v1311_v37 = vadd.f32 %v3996_v47, %v1282_v53  ;;  %v1160_v10 = vsel %vm174_vm1, %v3997_v49, %v1798_v25  ;;  %v1812_v28 = vunpack.i.l.bf16 %v1811_v43  ;;  %v1808_v19 = vunpack.i.h.bf16 %v1806_v21  ;;  %v4003_v55 = vld [vmem:[#allocation22_spill] sm:$0xff]  ;;  %v4011_v53 = vld [vmem:[#allocation15_spill] sm:$0xff] }
 0x1ce   :  { %v1312_v18 = vadd.f32 %v3998_v12, %v1283_v4  ;;  %v1226_v3 = vadd.f32 %v3999_v57, %v1197_v44  ;;  %v1165_v38 = vmul.f32 %v1651_v17, %v1160_v10  ;;  %v1148_v56 = vsel %vm174_vm1, %v4000_v34, %v1797_v8  ;;  %v1659_v7 = vld [vmem:[%s3726_s1 + $0x2b8] sm:$0x3f]  ;;  %v4013_v44 = vld [vmem:[#allocation52_spill] sm:$0xff]  ;;  %v4014_v47 = vld [vmem:[#allocation27_spill] sm:$0xff] }
 0x1cf   :  { %v1340_v48 = vadd.f32 %v4001_v16, %v1311_v37  ;;  %v1153_v50 = vmul.f32 %v1651_v17, %v1148_v56  ;;  %v1235_v62 = vsel %vm348_vm4, %v4002_v1, %v1812_v28  ;;  %v1247_v54 = vsel %vm348_vm4, %v4003_v55, %v1813_v36  ;;  %v4008_v51 = vld [vmem:[#allocation74_spill] sm:$0xff]  ;;  %v1831_v36 = vpop.permute.xlu1 %1830  ;;  %v4017_v34 = vld [vmem:[#allocation75_spill] sm:$0xff] }
 0x1d0   :  { %v1341_v61 = vadd.f32 %v4004_v11, %v1312_v18  ;;  %v1255_v63 = vadd.f32 %v4005_v29, %v1226_v3  ;;  %v1169_v22 = vadd.f32 %v1165_v38, %v1140_v40  ;;  %v1240_v45 = vmul.f32 %v1663_v14, %v1235_v62  ;;  %v1671_v40 = vld [vmem:[%s3726_s1 + $0x318] sm:$0x3f]  ;;  %v4016_v3 = vld [vmem:[#allocation25_spill] sm:$0xff] }
 0x1d1   :  { %v3623_v35 = vadd.f32 %v4006_v52, %v1340_v48  ;;  %v1157_v39 = vadd.f32 %v1153_v50, %v1128_v46  ;;  %v1252_v2 = vmul.f32 %v1663_v14, %v1247_v54  ;;  %v1218_v5 = vsel %vm290_vm3, %v4007_v20, %v1808_v19  ;;  %v4010_v46 = vld [vmem:[#allocation24_spill] sm:$0xff]  ;;  %v1667_v25 = vld [vmem:[%s3726_s1 + $0x2f8] sm:$0x3f]  ;;  %v4015_v14 = vld [vmem:[#allocation29_spill] sm:$0xff]  ;;  %v1826_v19 = vpop.permute.xlu0 %1825 }
 0x1d2   :  { %v3628_v0 = vadd.f32 %v4008_v51, %v1341_v61  ;;  %v1284_v26 = vadd.f32 %v4009_v59, %v1255_v63  ;;  %v1223_v43 = vmul.f32 %v1659_v7, %v1218_v5  ;;  %v1807_v24 = vunpack.i.l.bf16 %v1806_v21  ;;  %v1679_v48 = vld [vmem:[%s3726_s1 + $0x358] sm:$0x3f]  ;;  %v4021_v59 = vld [vmem:[#allocation21_spill] sm:$0xff] }
 0x1d3   :  { %v1186_v30 = vadd.f32 %v1182_v13, %v1157_v39  ;;  %v1198_v60 = vadd.f32 %v1194_v33, %v1169_v22  ;;  %v1823_v6 = vunpack.i.h.bf16 %v1821_v41  ;;  %v1822_v42 = vunpack.i.l.bf16 %v1821_v41  ;;  %v4012_v33 = vld [vmem:[#allocation46_spill] sm:$0xff] }
 0x1d4   :  { %v1313_v58 = vadd.f32 %v4010_v46, %v1284_v26  ;;  %v1206_v17 = vsel %vm290_vm3, %v4011_v53, %v1807_v24  ;;  %v1818_v31 = vunpack.i.h.bf16 %v1816_v27  ;;  %v1817_v4 = vunpack.i.l.bf16 %v1816_v27  ;;  %v1675_v54 = vld [vmem:[%s3726_s1 + $0x338] sm:$0x3f]  ;;  %s1904_s1 = smov [#allocation6]  }
 0x1d5   :  { %v1211_v21 = vmul.f32 %v1659_v7, %v1206_v17  ;;  %v1227_v13 = vadd.f32 %v1223_v43, %v1198_v60  ;;  %v1293_v23 = vsel %vm464_vm7, %v4012_v33, %v1822_v42  ;;  %v1305_v8 = vsel %vm464_vm7, %v4013_v44, %v1823_v6  ;;  %v4018_v11 = vld [vmem:[#allocation30_spill] sm:$0xff]  ;;  %s1562_s17 = sshll.u32 %s1904_s1, 4  ;;  %s1563_s17 = int_to_ptr.vmem [resolvable:$true] %s1562_s17 }
 0x1d6   :  { %v1342_v37 = vadd.f32 %v4014_v47, %v1313_v58  ;;  %v1298_v49 = vmul.f32 %v1671_v40, %v1293_v23  ;;  %v1310_v10 = vmul.f32 %v1671_v40, %v1305_v8  ;;  %v1276_v28 = vsel %vm406_vm6, %v4015_v14, %v1818_v31  ;;  %v4019_v29 = vld [vmem:[#allocation58_spill] sm:$0xff]  ;;  %v4022_v47 = vld [vmem:[#allocation76_spill] sm:$0xff]  ;;  %s1858_s8 = scalar_lea.vmem %s1563_s17, 256  ;;  %p1863_p6 = scmp.lt.s32.totalorder %s1563_s17, %s1563_s17 }
 0x1d7   :  { %v1215_v12 = vadd.f32 %v1211_v21, %v1186_v30  ;;  %v1281_v18 = vmul.f32 %v1667_v25, %v1276_v28  ;;  %v1256_v57 = vadd.f32 %v1252_v2, %v1227_v13  ;;  %v1264_v38 = vsel %vm406_vm6, %v4016_v3, %v1817_v4  ;;  %v4020_v2 = vld [vmem:[#allocation57_spill] sm:$0xff]  ;;  %p1859_p5 = scmp.ne.s32.totalorder %s1563_s17, %s1858_s8  ;;  %p1864_p7 = scmp.lt.s32.totalorder %s1858_s8, %s1858_s8 }
 0x1d8   :  { %v3650_v56 = vadd.f32 %v4017_v34, %v1342_v37  ;;  %v1269_v16 = vmul.f32 %v1667_v25, %v1264_v38  ;;  %v1833_v50 = vunpack.i.h.bf16 %v1831_v36  ;;  %v1832_v1 = vunpack.i.l.bf16 %v1831_v36  ;;  %v4023_v28 = vld [vmem:[#allocation77_spill] sm:$0xff] }
 0x1d9   :  { %v1244_v62 = vadd.f32 %v1240_v45, %v1215_v12  ;;  %v1285_v55 = vadd.f32 %v1281_v18, %v1256_v57  ;;  %v1828_v7 = vunpack.i.h.bf16 %v1826_v19  ;;  %v1827_v41 = vunpack.i.l.bf16 %v1826_v19  ;;  %p1865_p8 = por %p1864_p7, %p1863_p6 }
 0x1da   :  { %v1351_v61 = vsel %vm580_vm8, %v4018_v11, %v1832_v1  ;;  %v1363_v63 = vsel %vm580_vm8, %v4019_v29, %v1833_v50  ;;  %v1377_v22 = vrot.slane %v3569_v15, 1  ;;  %v1378_v27 = vrot.slane %v3584_v9, 1 }
 0x1db   :  { %v1273_v52 = vadd.f32 %v1269_v16, %v1244_v62  ;;  %v1356_v39 = vmul.f32 %v1679_v48, %v1351_v61  ;;  %v1368_v45 = vmul.f32 %v1679_v48, %v1363_v63  ;;  %v1334_v20 = vsel %vm522_vm5, %v4020_v2, %v1828_v7  ;;  %p1866_p9 = pnand %p1865_p8, %p1859_p5 }
 0x1dc   :  { %v1339_v5 = vmul.f32 %v1675_v54, %v1334_v20  ;;  %v1314_v51 = vadd.f32 %v1310_v10, %v1285_v55  ;;  %v1322_v26 = vsel %vm522_vm5, %v4021_v59, %v1827_v41  ;;  %v1379_v43 = vrot.slane %v3587_v32, 1 }
 0x1dd   :  { %vm1425_vm0 = vcmask 1040384   ;;  %v1302_v24 = vadd.f32 %v1298_v49, %v1273_v52  ;;  %v1327_v30 = vmul.f32 %v1675_v54, %v1322_v26  ;;  %v1385_v60 = vadd.f32 %v1377_v22, %v3569_v15  ;;  %v4025_v22 = vld [vmem:[#allocation72_spill] sm:$0xff] }
 0x1de   :  { %v1386_v40 = vadd.f32 %v1378_v27, %v3584_v9  ;;  %v1343_v6 = vadd.f32 %v1339_v5, %v1314_v51  ;;  %v1387_v42 = vadd.f32 %v1379_v43, %v3587_v32  ;;  %v1389_v46 = vrot.slane %v3569_v15, 2 }
 0x1df   :  { %v1390_v58 = vrot.slane %v3584_v9, 2  ;;  %v1331_v53 = vadd.f32 %v1327_v30, %v1302_v24  ;;  %v1391_v17 = vrot.slane %v3587_v32, 2  ;;  %v1469_v25 = vrot.slane %v3623_v35, 1 }
 0x1e0   :  { %v1470_v31 = vrot.slane %v3628_v0, 1  ;;  %v1372_v4 = vadd.f32 %v1368_v45, %v1343_v6  ;;  %v1397_v21 = vadd.f32 %v1389_v46, %v1385_v60  ;;  %v1471_v33 = vrot.slane %v3650_v56, 1 }
 0x1e1   :  { %v1398_v13 = vadd.f32 %v1390_v58, %v1386_v40  ;;  %v1360_v23 = vadd.f32 %v1356_v39, %v1331_v53  ;;  %v1399_v44 = vadd.f32 %v1391_v17, %v1387_v42  ;;  %v1477_v8 = vadd.f32 %v1469_v25, %v3623_v35 }
 0x1e2   :  { %v1478_v15 = vadd.f32 %v1470_v31, %v3628_v0  ;;  %v1472_v36 = vrot.slane %v1372_v4, 1  ;;  %v1484_v9 = vrot.slane %v1372_v4, 2  ;;  %v1403_v37 = vadd.f32 %v4022_v47, %v1397_v21 }
 0x1e3   :  { %v1404_v32 = vadd.f32 %v4022_v47, %v1398_v13  ;;  %v1380_v49 = vrot.slane %v1360_v23, 1  ;;  %v1392_v10 = vrot.slane %v1360_v23, 2  ;;  %v1405_v14 = vadd.f32 %v4022_v47, %v1399_v44 }
 0x1e4   :  { %v1409_v19 = vadd.f32 %v4023_v28, %v1397_v21  ;;  %v1480_v12 = vadd.f32 %v1472_v36, %v1372_v4  ;;  %v1410_v18 = vadd.f32 %v4023_v28, %v1398_v13  ;;  %v1411_v57 = vadd.f32 %v4023_v28, %v1399_v44 }
 0x1e5   :  { %v1479_v3 = vadd.f32 %v1471_v33, %v3650_v56  ;;  %v1388_v38 = vadd.f32 %v1380_v49, %v1360_v23  ;;  %v1481_v16 = vrot.slane %v3623_v35, 2  ;;  %v1482_v48 = vrot.slane %v3628_v0, 2  ;;  %v4024_v0 = vld [vmem:[#allocation78_spill] sm:$0xff] }
 0x1e6   :  { %v1417_v34 = vrot.slane %v1409_v19, 2  ;;  %v1492_v50 = vadd.f32 %v1484_v9, %v1480_v12  ;;  %v1418_v1 = vrot.slane %v1410_v18, 2  ;;  %v1419_v62 = vrot.slane %v1411_v57, 2 }
 0x1e7   :  { %v1483_v55 = vrot.slane %v3650_v56, 2  ;;  %v1400_v54 = vadd.f32 %v1392_v10, %v1388_v38  ;;  %v1489_v41 = vadd.f32 %v1481_v16, %v1477_v8  ;;  %v1490_v11 = vadd.f32 %v1482_v48, %v1478_v15 }
 0x1e8   :  { %v1426_v7 = vsel %vm1425_vm0, %v1403_v37, %v1417_v34  ;;  %v1427_v61 = vsel %vm1425_vm0, %v1404_v32, %v1418_v1  ;;  %v1428_v29 = vsel %vm1425_vm0, %v1405_v14, %v1419_v62  ;;  %v4026_v27 = vunpack.c.0.s8 %v4025_v22 }
 0x1e9   :  { %vm1430_vm1 = vcmp.gt.f32.partialorder %v1426_v7, 0.0  ;;  %v1434_v63 = vmul.f32 1.5236924, %v1426_v7  ;;  %v1412_v35 = vadd.f32 %v4023_v28, %v1400_v54  ;;  %vm1431_vm2 = vcmp.gt.f32.partialorder %v1427_v61, 0.0 }
 0x1ea   :  { %v1453_v52 = vsub.s32 %v4026_v27, %v4024_v0  ;;  %v1406_v56 = vadd.f32 %v4022_v47, %v1400_v54  ;;  %vm1432_vm3 = vcmp.gt.f32.partialorder %v1428_v29, 0.0  ;;  %v1435_v39 = vmul.f32 1.5236924, %v1427_v61 }
 0x1eb   :  { %v1491_v45 = vadd.f32 %v1483_v55, %v1479_v3  ;;  %v1420_v2 = vrot.slane %v1412_v35, 2  ;;  %v1436_v20 = vmul.f32 1.5236924, %v1428_v29  ;;  %v1438_v5 = vsel %vm1430_vm1, %v1426_v7, %v1434_v63 }
 0x1ec   :  { %v1495_v51 = vadd.f32 %v1489_v41, %v4022_v47  ;;  %v1439_v59 = vsel %vm1431_vm2, %v1427_v61, %v1435_v39  ;;  %v1496_v26 = vadd.f32 %v1490_v11, %v4022_v47  ;;  %v1498_v43 = vadd.f32 %v1492_v50, %v4022_v47 }
 0x1ed   :  { %v1501_v24 = vadd.f32 %v1489_v41, %v4023_v28  ;;  %v1429_v30 = vsel %vm1425_vm0, %v1406_v56, %v1420_v2  ;;  %v1446_v60 = vcombine.low %v1438_v5, %v1439_v59  ;;  %v1502_v40 = vadd.f32 %v1490_v11, %v4023_v28 }
 0x1ee   :  { %v1503_v6 = vadd.f32 %v1491_v45, %v4023_v28  ;;  %vm1433_vm4 = vcmp.gt.f32.partialorder %v1429_v30, 0.0  ;;  %v1437_v42 = vmul.f32 1.5236924, %v1429_v30  ;;  %v1504_v46 = vadd.f32 %v1492_v50, %v4023_v28 }
 0x1ef   :  { %v1509_v58 = vrot.slane %v1501_v24, 2  ;;  %v1440_v53 = vsel %vm1432_vm3, %v1428_v29, %v1436_v20  ;;  %v1497_v17 = vadd.f32 %v1491_v45, %v4022_v47  ;;  %v1510_v25 = vrot.slane %v1502_v40, 2 }
 0x1f0   :  { %v1511_v31 = vrot.slane %v1503_v6, 2  ;;  %v1441_v4 = vsel %vm1433_vm4, %v1429_v30, %v1437_v42  ;;  %v1454_v21 = vrot.slane %v1446_v60, %v1453_v52  ;;  %v1512_v13 = vrot.slane %v1504_v46, 2 }
 0x1f1   :  { %v1517_v33 = vsel %vm1425_vm0, %v1495_v51, %v1509_v58  ;;  %v1447_v23 = vcombine.low %v1440_v53, %v1441_v4  ;;  %v1518_v44 = vsel %vm1425_vm0, %v1496_v26, %v1510_v25 }
 0x1f2   :  { %v1519_v8 = vsel %vm1425_vm0, %v1497_v17, %v1511_v31  ;;  %vm1521_vm5 = vcmp.gt.f32.partialorder %v1517_v33, 0.0  ;;  %v1520_v15 = vsel %vm1425_vm0, %v1498_v43, %v1512_v13  ;;  %vm1522_vm6 = vcmp.gt.f32.partialorder %v1518_v44, 0.0 }
 0x1f3   :  { %vm1523_vm7 = vcmp.gt.f32.partialorder %v1519_v8, 0.0  ;;  %v1525_v36 = vmul.f32 1.5236924, %v1517_v33  ;;  %v1461_v9 = vrot.slane %v1447_v23, %v1453_v52  ;;  %vm1524_vm8 = vcmp.gt.f32.partialorder %v1520_v15, 0.0 }
 0x1f4   :  { %v1526_v47 = vmul.f32 1.5236924, %v1518_v44  ;;  %v1527_v37 = vmul.f32 1.5236924, %v1519_v8  ;;  %v1528_v32 = vmul.f32 1.5236924, %v1520_v15 }
 0x1f5   :  { %v1529_v49 = vsel %vm1521_vm5, %v1517_v33, %v1525_v36  ;;  %v1462_v10 = vcombine.low %v1454_v21, %v1461_v9 }
 0x1f6   :  { %v1530_v14 = vsel %vm1522_vm6, %v1518_v44, %v1526_v47  ;;  %v1531_v28 = vsel %vm1523_vm7, %v1519_v8, %v1527_v37  ;;  %v1532_v19 = vsel %vm1524_vm8, %v1520_v15, %v1528_v32 }
 0x1f7   :  { %v1537_v12 = vcombine.low %v1529_v49, %v1530_v14  ;;  %1464 = vst [vmem:[#allocation6] sm:$0xff] %v1462_v10  ;;  %v1538_v18 = vcombine.low %v1531_v28, %v1532_v19 }
 0x1f9   :  { %v1545_v57 = vrot.slane %v1537_v12, %v1453_v52  ;;  %v1552_v3 = vrot.slane %v1538_v18, %v1453_v52 }
 0x1fb   :  { %v1553_v38 = vcombine.low %v1545_v57, %v1552_v3 }
 0x1fd   :  { %1556 = vst [vmem:[#allocation6 + $0x8] sm:$0xff] %v1553_v38 }
 0x1fe   :  { %1869 = shalt.err (!%p1866_p9)
}
 0x1ff   :  { %s1870_s20 = scalar_lea.hbm %s3728_s3, 256 }
 0x200   :  { %p1871_p10 = scmp.ne.s32.totalorder %s3728_s3, %s1870_s20  ;;  %p1874_p11 = scmp.lt.u32.totalorder %s1870_s20, %s3728_s3 }
 0x202   :  { %p1876_p12 = pnand %p1874_p11, %p1871_p10 }
 0x204   :  { %1879 = shalt.err (!%p1876_p12)
}
 0x205   :  { %s1905_s5 = smov 128  }
 0x206   :  { %1568 = dma.vmem_to_hbm [thread:$0]  %s1563_s17, 256, %s3728_s3, [#allocation4], %s1905_s5, %s1905_s5, %s1896_s6  }
 0x207   :  { %1882 = dma.done.wait [#allocation4], 256  }
 0x208   :  { %1883 = vsyncadd [#allocation4], 4294967040 }
 0x209   :  { %1572 = vsyncpa [#allocation4], 1 }
 0x20a   :  { %1573 = vsyncpa [#allocation5], 1 }

</bundles_post_ra>
